<compile_context>
chip_gen: v5e
topology: v5e:2x2
jax: 0.10.0
libtpu: 0.0.40
codegen_flags: <defaults>
</compile_context>

<pallas_src>
import functools

import jax
import jax.numpy as jnp
from jax.experimental import pallas as pl
from jax.experimental.pallas import tpu as pltpu


# Lane-dense tile: (512 rows x 1024 lanes) f32 = 2 MiB per tile.
# Double-buffered input + output = 4 buffers * 2 MiB = 8 MiB, which fits the
# default scoped-VMEM limit on every generation (16 MiB v5e, 32 MiB v6e/v7x,
# 64 MiB physical v7x) while keeping per-grid-step overhead (~0.35 us) small
# relative to each tile's HBM traffic.
_LANES = 1024
_TILE_R = 512


def _linear_kernel(w_ref, b_ref, x_ref, o_ref):
    # w_ref / b_ref: (1, 1) scalars in SMEM (scalar-slot reads, no VMEM tile).
    # x_ref / o_ref: (_TILE_R, _LANES) VMEM tiles.  Pure VPU elementwise FMA;
    # the scalar broadcasts over the whole lane-dense tile.
    w = w_ref[0, 0]
    b = b_ref[0, 0]
    o_ref[...] = x_ref[...] * w + b


@functools.partial(jax.jit, static_argnums=())
def _linear_forward_pallas(x, weight, bias):
    """Pallas path: lane-dense, row-tiled, double-buffered scale-and-shift."""
    N, F = x.shape
    assert F == 1
    dtype = x.dtype

    w2d = weight.reshape(1, 1).astype(dtype)
    b2d = bias.reshape(1, 1).astype(dtype)

    # View the N scalars as a lane-dense (rows, _LANES) slab, padding up to a
    # whole number of (_TILE_R, _LANES) tiles.  Padding is layout plumbing only;
    # the padded tail is sliced away after the kernel.
    total = N
    chunk = _TILE_R * _LANES
    padded = pl.cdiv(total, chunk) * chunk
    flat = jnp.ravel(x)
    if padded != total:
        flat = jnp.pad(flat, (0, padded - total))
    rows = padded // _LANES
    x2d = flat.reshape(rows, _LANES)

    grid = (rows // _TILE_R,)

    out2d = pl.pallas_call(
        _linear_kernel,
        out_shape=jax.ShapeDtypeStruct((rows, _LANES), dtype),
        grid=grid,
        in_specs=[
            pl.BlockSpec(memory_space=pltpu.SMEM),            # weight scalar
            pl.BlockSpec(memory_space=pltpu.SMEM),            # bias scalar
            pl.BlockSpec((_TILE_R, _LANES), lambda i: (i, 0)),  # x row-tile
        ],
        out_specs=pl.BlockSpec((_TILE_R, _LANES), lambda i: (i, 0)),
        compiler_params=pltpu.CompilerParams(
            # Row tiles are independent: shard across both TensorCores on v7x
            # (harmless no-op on the single-TC v5e/v6e).
            dimension_semantics=("parallel",),
        ),
    )(w2d, b2d, x2d)

    return out2d.reshape(-1)[:total].reshape(N, 1)


def linear_forward(x, weight, bias, *, force_pallas=False):
    """Forward pass of nn.Linear(1, 1): y = x @ weight.T + bias.

    For tiny inputs (less than one tile of work) the kernel-launch + DMA setup
    cost dwarfs a handful of multiply-adds, so we let XLA fuse the elementwise
    op unless `force_pallas=True`.
    """
    N, F = x.shape
    assert F == 1 and weight.shape == (1, 1) and bias.shape == (1,)
    if not force_pallas and N * F < _TILE_R * _LANES:
        w = weight.reshape(()).astype(x.dtype)
        b = bias.reshape(()).astype(x.dtype)
        return x * w + b
    return _linear_forward_pallas(x, weight, bias)


if __name__ == "__main__":
    key = jax.random.PRNGKey(0)
    k_x, k_w, k_b = jax.random.split(key, 3)

    # Deterministic parameter init (shapes from nn.Linear(1, 1)).
    weight = jax.random.uniform(k_w, (1, 1), jnp.float32, minval=-1.0, maxval=1.0)
    bias = jax.random.uniform(k_b, (1,), jnp.float32, minval=-1.0, maxval=1.0)

    # Small batch of scalar inputs, shape (N, 1), matching the module's input.
    x = jax.random.normal(k_x, (8, 1), jnp.float32)

    # Force the Pallas path so the kernel actually executes at demo size.
    y = linear_forward(x, weight, bias, force_pallas=True)
    y = jax.block_until_ready(y)

    # Reference check against plain JAX.
    y_ref = x @ weight.T + bias
    assert y.shape == (8, 1)
    assert jnp.allclose(y, y_ref, atol=1e-6), "mismatch vs reference (pallas path)"

    # Also exercise the small-N fused-XLA dispatch path.
    y_small = jax.block_until_ready(linear_forward(x, weight, bias))
    assert jnp.allclose(y_small, y_ref, atol=1e-6), "mismatch vs reference (xla path)"

    print("KERNEL_OK")
</pallas_src>

<mosaic_0001>
module attributes {stable_mosaic.version = 11 : i64} {
  func.func @_linear_kernel(%arg0: i32, %arg1: memref<1x1xf32, #tpu.memory_space<smem>>, %arg2: memref<1x1xf32, #tpu.memory_space<smem>>, %arg3: memref<512x1024xf32, #tpu.memory_space<vmem>>, %arg4: memref<512x1024xf32, #tpu.memory_space<vmem>>) attributes {dimension_semantics = [#tpu.dimension_semantics<parallel>], iteration_bounds = array<i64: 1>, scalar_prefetch = 0 : i64, scratch_operands = 0 : i64, tpu.core_type = #tpu.core_type<tc>, window_params = [{transform_indices = @transform_0, window_bounds = array<i64: 1, 1>}, {transform_indices = @transform_1, window_bounds = array<i64: 1, 1>}, {transform_indices = @transform_2, window_bounds = array<i64: 512, 1024>}, {transform_indices = @transform_3, window_bounds = array<i64: 512, 1024>}]} {
    %c0 = arith.constant 0 : index
    %c0_0 = arith.constant 0 : index
    %0 = memref.load %arg1[%c0, %c0_0] : memref<1x1xf32, #tpu.memory_space<smem>>
    %c0_1 = arith.constant 0 : index
    %c0_2 = arith.constant 0 : index
    %1 = memref.load %arg2[%c0_1, %c0_2] : memref<1x1xf32, #tpu.memory_space<smem>>
    %c0_3 = arith.constant 0 : index
    %c0_4 = arith.constant 0 : index
    %2 = vector.load %arg3[%c0_3, %c0_4] : memref<512x1024xf32, #tpu.memory_space<vmem>>, vector<512x1024xf32>
    %3 = vector.broadcast %0 : f32 to vector<512x1024xf32>
    %4 = arith.mulf %2, %3 : vector<512x1024xf32>
    %5 = vector.broadcast %1 : f32 to vector<512x1024xf32>
    %6 = arith.addf %4, %5 : vector<512x1024xf32>
    %c0_5 = arith.constant 0 : index
    %c0_6 = arith.constant 0 : index
    %7 = vector.load %arg4[%c0_5, %c0_6] : memref<512x1024xf32, #tpu.memory_space<vmem>>, vector<512x1024xf32>
    tpu.vector_store %arg4[%c0_5, %c0_6], %6 {strides = array<i32>} : memref<512x1024xf32, #tpu.memory_space<vmem>>, vector<512x1024xf32>,
    return
  }
  func.func @transform_0(%arg0: i32) -> (i32, i32) {
    %c0_i32 = arith.constant 0 : i32
    %c0_i32_0 = arith.constant 0 : i32
    %c0_i32_1 = arith.constant 0 : i32
    return %c0_i32, %c0_i32_0 : i32, i32
  }
  func.func @transform_1(%arg0: i32) -> (i32, i32) {
    %c0_i32 = arith.constant 0 : i32
    %c0_i32_0 = arith.constant 0 : i32
    %c0_i32_1 = arith.constant 0 : i32
    return %c0_i32, %c0_i32_0 : i32, i32
  }
  func.func @transform_2(%arg0: i32) -> (i32, i32) {
    %c0_i32 = arith.constant 0 : i32
    %c0_i32_0 = arith.constant 0 : i32
    return %arg0, %c0_i32 : i32, i32
  }
  func.func @transform_3(%arg0: i32) -> (i32, i32) {
    %c0_i32 = arith.constant 0 : i32
    %c0_i32_0 = arith.constant 0 : i32
    return %arg0, %c0_i32 : i32, i32
  }
}

</mosaic_0001>

<bundles_post_ra>
// kernel: _linear_forward_pallas.1
= control target key start
LH: loop header
LB: loop body
LE: loop exit
PB: predicated region body
PF: predicated region fallthrough
CT: control target
= control target key end

     0   :  { %s6198_s0 = inlined_call_operand.<no memory space> [shape: f32[1,1], index: 0, kind: input, shape index: {}]   ;;  %s6199_s1 = inlined_call_operand.<no memory space> [shape: f32[1,1], index: 1, kind: input, shape index: {}]   ;;  %s6200_s2 = inlined_call_operand.vmem [shape: f32[512,1024], index: 2, kind: input, shape index: {}]   ;;  %s6201_s3 = inlined_call_operand.vmem [shape: f32[512,1024], index: 3, kind: output, shape index: {}]  }
   0x1   :  { %v18_v0 = vld [vmem:[%s6200_s2] sm:$0xff]  ;;  %v2098_v1 = vstv %s6198_s0  ;;  %v2103_v2 = vstv %s6199_s1  ;;  %v19_v3 = vld [vmem:[%s6200_s2 + $0x8] sm:$0xff] }
   0x2   :  { %v531_v4 = vmul.f32 %v2098_v1, %v18_v0  ;;  %v532_v5 = vmul.f32 %v2098_v1, %v19_v3  ;;  %v20_v6 = vld [vmem:[%s6200_s2 + $0x10] sm:$0xff]  ;;  %v21_v7 = vld [vmem:[%s6200_s2 + $0x18] sm:$0xff]  ;;  %v22_v8 = vld [vmem:[%s6200_s2 + $0x20] sm:$0xff] }
   0x3   :  { %v533_v9 = vmul.f32 %v2098_v1, %v20_v6  ;;  %v534_v10 = vmul.f32 %v2098_v1, %v21_v7  ;;  %v535_v11 = vmul.f32 %v2098_v1, %v22_v8  ;;  %v23_v12 = vld [vmem:[%s6200_s2 + $0x28] sm:$0xff]  ;;  %v24_v13 = vld [vmem:[%s6200_s2 + $0x30] sm:$0xff]  ;;  %v25_v14 = vld [vmem:[%s6200_s2 + $0x38] sm:$0xff] }
   0x4   :  { %v1044_v15 = vadd.f32 %v2103_v2, %v531_v4  ;;  %v1045_v16 = vadd.f32 %v2103_v2, %v532_v5  ;;  %v536_v17 = vmul.f32 %v2098_v1, %v23_v12  ;;  %v537_v18 = vmul.f32 %v2098_v1, %v24_v13  ;;  %v26_v19 = vld [vmem:[%s6200_s2 + $0x40] sm:$0xff]  ;;  %v27_v20 = vld [vmem:[%s6200_s2 + $0x48] sm:$0xff]  ;;  %v28_v24 = vld [vmem:[%s6200_s2 + $0x50] sm:$0xff] }
   0x5   :  { %v1046_v21 = vadd.f32 %v2103_v2, %v533_v9  ;;  %v1047_v22 = vadd.f32 %v2103_v2, %v534_v10  ;;  %v538_v23 = vmul.f32 %v2098_v1, %v25_v14  ;;  %v1048_v25 = vadd.f32 %v2103_v2, %v535_v11  ;;  %v29_v27 = vld [vmem:[%s6200_s2 + $0x58] sm:$0xff]  ;;  %v30_v30 = vld [vmem:[%s6200_s2 + $0x60] sm:$0xff]  ;;  %v31_v33 = vld [vmem:[%s6200_s2 + $0x68] sm:$0xff] }
   0x6   :  { %1556 = vst [vmem:[%s6201_s3] sm:$0xff] %v1044_v15  ;;  %v539_v26 = vmul.f32 %v2098_v1, %v26_v19  ;;  %v1049_v28 = vadd.f32 %v2103_v2, %v536_v17  ;;  %v540_v29 = vmul.f32 %v2098_v1, %v27_v20  ;;  %v1050_v31 = vadd.f32 %v2103_v2, %v537_v18  ;;  %v32_v36 = vld [vmem:[%s6200_s2 + $0x70] sm:$0xff]  ;;  %v33_v39 = vld [vmem:[%s6200_s2 + $0x78] sm:$0xff]  ;;  %v34_v42 = vld [vmem:[%s6200_s2 + $0x80] sm:$0xff] }
   0x7   :  { %1557 = vst [vmem:[%s6201_s3 + $0x8] sm:$0xff] %v1045_v16  ;;  %v541_v32 = vmul.f32 %v2098_v1, %v28_v24  ;;  %v1051_v34 = vadd.f32 %v2103_v2, %v538_v23  ;;  %v542_v35 = vmul.f32 %v2098_v1, %v29_v27  ;;  %v543_v38 = vmul.f32 %v2098_v1, %v30_v30  ;;  %v35_v45 = vld [vmem:[%s6200_s2 + $0x88] sm:$0xff]  ;;  %v36_v48 = vld [vmem:[%s6200_s2 + $0x90] sm:$0xff]  ;;  %v37_v51 = vld [vmem:[%s6200_s2 + $0x98] sm:$0xff] }
   0x8   :  { %1558 = vst [vmem:[%s6201_s3 + $0x10] sm:$0xff] %v1046_v21  ;;  %v1052_v37 = vadd.f32 %v2103_v2, %v539_v26  ;;  %v1053_v40 = vadd.f32 %v2103_v2, %v540_v29  ;;  %v544_v41 = vmul.f32 %v2098_v1, %v31_v33  ;;  %v545_v44 = vmul.f32 %v2098_v1, %v32_v36  ;;  %v38_v54 = vld [vmem:[%s6200_s2 + $0xa0] sm:$0xff]  ;;  %v39_v57 = vld [vmem:[%s6200_s2 + $0xa8] sm:$0xff]  ;;  %v40_v60 = vld [vmem:[%s6200_s2 + $0xb0] sm:$0xff] }
   0x9   :  { %1559 = vst [vmem:[%s6201_s3 + $0x18] sm:$0xff] %v1047_v22  ;;  %v1054_v43 = vadd.f32 %v2103_v2, %v541_v32  ;;  %v1055_v46 = vadd.f32 %v2103_v2, %v542_v35  ;;  %v546_v47 = vmul.f32 %v2098_v1, %v33_v39  ;;  %v1056_v49 = vadd.f32 %v2103_v2, %v543_v38  ;;  %v41_v63 = vld [vmem:[%s6200_s2 + $0xb8] sm:$0xff]  ;;  %v42_v4 = vld [vmem:[%s6200_s2 + $0xc0] sm:$0xff]  ;;  %v43_v7 = vld [vmem:[%s6200_s2 + $0xc8] sm:$0xff] }
   0xa   :  { %1560 = vst [vmem:[%s6201_s3 + $0x20] sm:$0xff] %v1048_v25  ;;  %v547_v50 = vmul.f32 %v2098_v1, %v34_v42  ;;  %v1057_v52 = vadd.f32 %v2103_v2, %v544_v41  ;;  %v548_v53 = vmul.f32 %v2098_v1, %v35_v45  ;;  %v1058_v55 = vadd.f32 %v2103_v2, %v545_v44  ;;  %v44_v10 = vld [vmem:[%s6200_s2 + $0xd0] sm:$0xff]  ;;  %v45_v13 = vld [vmem:[%s6200_s2 + $0xd8] sm:$0xff]  ;;  %v46_v16 = vld [vmem:[%s6200_s2 + $0xe0] sm:$0xff] }
   0xb   :  { %1561 = vst [vmem:[%s6201_s3 + $0x28] sm:$0xff] %v1049_v28  ;;  %v549_v56 = vmul.f32 %v2098_v1, %v36_v48  ;;  %v1059_v58 = vadd.f32 %v2103_v2, %v546_v47  ;;  %v550_v59 = vmul.f32 %v2098_v1, %v37_v51  ;;  %v551_v62 = vmul.f32 %v2098_v1, %v38_v54  ;;  %v47_v19 = vld [vmem:[%s6200_s2 + $0xe8] sm:$0xff]  ;;  %v48_v22 = vld [vmem:[%s6200_s2 + $0xf0] sm:$0xff]  ;;  %v49_v25 = vld [vmem:[%s6200_s2 + $0xf8] sm:$0xff] }
   0xc   :  { %1562 = vst [vmem:[%s6201_s3 + $0x30] sm:$0xff] %v1050_v31  ;;  %v1060_v61 = vadd.f32 %v2103_v2, %v547_v50  ;;  %v1061_v0 = vadd.f32 %v2103_v2, %v548_v53  ;;  %v552_v3 = vmul.f32 %v2098_v1, %v39_v57  ;;  %v553_v6 = vmul.f32 %v2098_v1, %v40_v60  ;;  %v50_v28 = vld [vmem:[%s6200_s2 + $0x100] sm:$0xff]  ;;  %v51_v31 = vld [vmem:[%s6200_s2 + $0x108] sm:$0xff] }
   0xd   :  { %1563 = vst [vmem:[%s6201_s3 + $0x38] sm:$0xff] %v1051_v34  ;;  %v1062_v5 = vadd.f32 %v2103_v2, %v549_v56  ;;  %v1063_v8 = vadd.f32 %v2103_v2, %v550_v59  ;;  %v554_v9 = vmul.f32 %v2098_v1, %v41_v63  ;;  %v1064_v11 = vadd.f32 %v2103_v2, %v551_v62  ;;  %v52_v34 = vld [vmem:[%s6200_s2 + $0x110] sm:$0xff] }
   0xe   :  { %1564 = vst [vmem:[%s6201_s3 + $0x40] sm:$0xff] %v1052_v37  ;;  %v555_v12 = vmul.f32 %v2098_v1, %v42_v4  ;;  %v1065_v14 = vadd.f32 %v2103_v2, %v552_v3  ;;  %v556_v15 = vmul.f32 %v2098_v1, %v43_v7  ;;  %v1066_v17 = vadd.f32 %v2103_v2, %v553_v6  ;;  %v53_v37 = vld [vmem:[%s6200_s2 + $0x118] sm:$0xff] }
   0xf   :  { %1565 = vst [vmem:[%s6201_s3 + $0x48] sm:$0xff] %v1053_v40  ;;  %v557_v18 = vmul.f32 %v2098_v1, %v44_v10  ;;  %v1067_v20 = vadd.f32 %v2103_v2, %v554_v9  ;;  %v558_v21 = vmul.f32 %v2098_v1, %v45_v13  ;;  %v559_v24 = vmul.f32 %v2098_v1, %v46_v16  ;;  %v54_v40 = vld [vmem:[%s6200_s2 + $0x120] sm:$0xff] }
  0x10   :  { %1566 = vst [vmem:[%s6201_s3 + $0x50] sm:$0xff] %v1054_v43  ;;  %v1068_v23 = vadd.f32 %v2103_v2, %v555_v12  ;;  %v1069_v26 = vadd.f32 %v2103_v2, %v556_v15  ;;  %v560_v27 = vmul.f32 %v2098_v1, %v47_v19  ;;  %v561_v30 = vmul.f32 %v2098_v1, %v48_v22  ;;  %v55_v43 = vld [vmem:[%s6200_s2 + $0x128] sm:$0xff] }
  0x11   :  { %1567 = vst [vmem:[%s6201_s3 + $0x58] sm:$0xff] %v1055_v46  ;;  %v1070_v29 = vadd.f32 %v2103_v2, %v557_v18  ;;  %v1071_v32 = vadd.f32 %v2103_v2, %v558_v21  ;;  %v562_v33 = vmul.f32 %v2098_v1, %v49_v25  ;;  %v1072_v35 = vadd.f32 %v2103_v2, %v559_v24  ;;  %v56_v46 = vld [vmem:[%s6200_s2 + $0x130] sm:$0xff] }
  0x12   :  { %1568 = vst [vmem:[%s6201_s3 + $0x60] sm:$0xff] %v1056_v49  ;;  %v563_v36 = vmul.f32 %v2098_v1, %v50_v28  ;;  %v1073_v38 = vadd.f32 %v2103_v2, %v560_v27  ;;  %v564_v39 = vmul.f32 %v2098_v1, %v51_v31  ;;  %v1074_v41 = vadd.f32 %v2103_v2, %v561_v30  ;;  %v57_v49 = vld [vmem:[%s6200_s2 + $0x138] sm:$0xff] }
  0x13   :  { %1569 = vst [vmem:[%s6201_s3 + $0x68] sm:$0xff] %v1057_v52  ;;  %v565_v42 = vmul.f32 %v2098_v1, %v52_v34  ;;  %v1075_v44 = vadd.f32 %v2103_v2, %v562_v33  ;;  %v566_v45 = vmul.f32 %v2098_v1, %v53_v37  ;;  %v567_v48 = vmul.f32 %v2098_v1, %v54_v40  ;;  %v58_v52 = vld [vmem:[%s6200_s2 + $0x140] sm:$0xff] }
  0x14   :  { %1570 = vst [vmem:[%s6201_s3 + $0x70] sm:$0xff] %v1058_v55  ;;  %v1076_v47 = vadd.f32 %v2103_v2, %v563_v36  ;;  %v1077_v50 = vadd.f32 %v2103_v2, %v564_v39  ;;  %v568_v51 = vmul.f32 %v2098_v1, %v55_v43  ;;  %v569_v54 = vmul.f32 %v2098_v1, %v56_v46  ;;  %v59_v55 = vld [vmem:[%s6200_s2 + $0x148] sm:$0xff] }
  0x15   :  { %1571 = vst [vmem:[%s6201_s3 + $0x78] sm:$0xff] %v1059_v58  ;;  %v1078_v53 = vadd.f32 %v2103_v2, %v565_v42  ;;  %v1079_v56 = vadd.f32 %v2103_v2, %v566_v45  ;;  %v570_v57 = vmul.f32 %v2098_v1, %v57_v49  ;;  %v60_v58 = vld [vmem:[%s6200_s2 + $0x150] sm:$0xff]  ;;  %v1080_v59 = vadd.f32 %v2103_v2, %v567_v48 }
  0x16   :  { %1572 = vst [vmem:[%s6201_s3 + $0x80] sm:$0xff] %v1060_v61  ;;  %v571_v60 = vmul.f32 %v2098_v1, %v58_v52  ;;  %v61_v61 = vld [vmem:[%s6200_s2 + $0x158] sm:$0xff]  ;;  %v1081_v62 = vadd.f32 %v2103_v2, %v568_v51  ;;  %v572_v63 = vmul.f32 %v2098_v1, %v59_v55  ;;  %v1082_v3 = vadd.f32 %v2103_v2, %v569_v54 }
  0x17   :  { %1573 = vst [vmem:[%s6201_s3 + $0x88] sm:$0xff] %v1061_v0  ;;  %v62_v0 = vld [vmem:[%s6200_s2 + $0x160] sm:$0xff]  ;;  %v573_v4 = vmul.f32 %v2098_v1, %v60_v58  ;;  %v1083_v6 = vadd.f32 %v2103_v2, %v570_v57  ;;  %v574_v7 = vmul.f32 %v2098_v1, %v61_v61 }
  0x18   :  { %1574 = vst [vmem:[%s6201_s3 + $0x90] sm:$0xff] %v1062_v5  ;;  %v63_v5 = vld [vmem:[%s6200_s2 + $0x168] sm:$0xff]  ;;  %v1084_v9 = vadd.f32 %v2103_v2, %v571_v60  ;;  %v575_v10 = vmul.f32 %v2098_v1, %v62_v0  ;;  %v1085_v12 = vadd.f32 %v2103_v2, %v572_v63 }
  0x19   :  { %1575 = vst [vmem:[%s6201_s3 + $0x98] sm:$0xff] %v1063_v8  ;;  %v64_v8 = vld [vmem:[%s6200_s2 + $0x170] sm:$0xff]  ;;  %v576_v13 = vmul.f32 %v2098_v1, %v63_v5  ;;  %v1086_v15 = vadd.f32 %v2103_v2, %v573_v4  ;;  %v1087_v18 = vadd.f32 %v2103_v2, %v574_v7 }
  0x1a   :  { %1576 = vst [vmem:[%s6201_s3 + $0xa0] sm:$0xff] %v1064_v11  ;;  %v65_v11 = vld [vmem:[%s6200_s2 + $0x178] sm:$0xff]  ;;  %v577_v16 = vmul.f32 %v2098_v1, %v64_v8  ;;  %v1088_v21 = vadd.f32 %v2103_v2, %v575_v10 }
  0x1b   :  { %1577 = vst [vmem:[%s6201_s3 + $0xa8] sm:$0xff] %v1065_v14  ;;  %v66_v14 = vld [vmem:[%s6200_s2 + $0x180] sm:$0xff]  ;;  %v578_v19 = vmul.f32 %v2098_v1, %v65_v11  ;;  %v1089_v24 = vadd.f32 %v2103_v2, %v576_v13 }
  0x1c   :  { %1578 = vst [vmem:[%s6201_s3 + $0xb0] sm:$0xff] %v1066_v17  ;;  %v67_v17 = vld [vmem:[%s6200_s2 + $0x188] sm:$0xff]  ;;  %v579_v22 = vmul.f32 %v2098_v1, %v66_v14  ;;  %v1090_v27 = vadd.f32 %v2103_v2, %v577_v16 }
  0x1d   :  { %1579 = vst [vmem:[%s6201_s3 + $0xb8] sm:$0xff] %v1067_v20  ;;  %v68_v20 = vld [vmem:[%s6200_s2 + $0x190] sm:$0xff]  ;;  %v580_v25 = vmul.f32 %v2098_v1, %v67_v17  ;;  %v1091_v30 = vadd.f32 %v2103_v2, %v578_v19 }
  0x1e   :  { %1580 = vst [vmem:[%s6201_s3 + $0xc0] sm:$0xff] %v1068_v23  ;;  %v69_v23 = vld [vmem:[%s6200_s2 + $0x198] sm:$0xff]  ;;  %v581_v28 = vmul.f32 %v2098_v1, %v68_v20  ;;  %v1092_v33 = vadd.f32 %v2103_v2, %v579_v22 }
  0x1f   :  { %1581 = vst [vmem:[%s6201_s3 + $0xc8] sm:$0xff] %v1069_v26  ;;  %v70_v26 = vld [vmem:[%s6200_s2 + $0x1a0] sm:$0xff]  ;;  %v582_v31 = vmul.f32 %v2098_v1, %v69_v23  ;;  %v1093_v36 = vadd.f32 %v2103_v2, %v580_v25 }
  0x20   :  { %1582 = vst [vmem:[%s6201_s3 + $0xd0] sm:$0xff] %v1070_v29  ;;  %v71_v29 = vld [vmem:[%s6200_s2 + $0x1a8] sm:$0xff]  ;;  %v583_v34 = vmul.f32 %v2098_v1, %v70_v26  ;;  %v1094_v39 = vadd.f32 %v2103_v2, %v581_v28 }
  0x21   :  { %1583 = vst [vmem:[%s6201_s3 + $0xd8] sm:$0xff] %v1071_v32  ;;  %v72_v32 = vld [vmem:[%s6200_s2 + $0x1b0] sm:$0xff]  ;;  %v584_v37 = vmul.f32 %v2098_v1, %v71_v29  ;;  %v1095_v42 = vadd.f32 %v2103_v2, %v582_v31 }
  0x22   :  { %1584 = vst [vmem:[%s6201_s3 + $0xe0] sm:$0xff] %v1072_v35  ;;  %v73_v35 = vld [vmem:[%s6200_s2 + $0x1b8] sm:$0xff]  ;;  %v585_v40 = vmul.f32 %v2098_v1, %v72_v32  ;;  %v1096_v45 = vadd.f32 %v2103_v2, %v583_v34 }
  0x23   :  { %1585 = vst [vmem:[%s6201_s3 + $0xe8] sm:$0xff] %v1073_v38  ;;  %v74_v38 = vld [vmem:[%s6200_s2 + $0x1c0] sm:$0xff]  ;;  %v586_v43 = vmul.f32 %v2098_v1, %v73_v35  ;;  %v1097_v48 = vadd.f32 %v2103_v2, %v584_v37 }
  0x24   :  { %1586 = vst [vmem:[%s6201_s3 + $0xf0] sm:$0xff] %v1074_v41  ;;  %v75_v41 = vld [vmem:[%s6200_s2 + $0x1c8] sm:$0xff]  ;;  %v587_v46 = vmul.f32 %v2098_v1, %v74_v38  ;;  %v1098_v51 = vadd.f32 %v2103_v2, %v585_v40 }
  0x25   :  { %1587 = vst [vmem:[%s6201_s3 + $0xf8] sm:$0xff] %v1075_v44  ;;  %v76_v44 = vld [vmem:[%s6200_s2 + $0x1d0] sm:$0xff]  ;;  %v588_v49 = vmul.f32 %v2098_v1, %v75_v41  ;;  %v1099_v54 = vadd.f32 %v2103_v2, %v586_v43 }
  0x26   :  { %1588 = vst [vmem:[%s6201_s3 + $0x100] sm:$0xff] %v1076_v47  ;;  %v77_v47 = vld [vmem:[%s6200_s2 + $0x1d8] sm:$0xff]  ;;  %v589_v52 = vmul.f32 %v2098_v1, %v76_v44  ;;  %v1100_v57 = vadd.f32 %v2103_v2, %v587_v46 }
  0x27   :  { %1589 = vst [vmem:[%s6201_s3 + $0x108] sm:$0xff] %v1077_v50  ;;  %v78_v50 = vld [vmem:[%s6200_s2 + $0x1e0] sm:$0xff]  ;;  %v590_v55 = vmul.f32 %v2098_v1, %v77_v47  ;;  %v1101_v60 = vadd.f32 %v2103_v2, %v588_v49 }
  0x28   :  { %1590 = vst [vmem:[%s6201_s3 + $0x110] sm:$0xff] %v1078_v53  ;;  %v79_v53 = vld [vmem:[%s6200_s2 + $0x1e8] sm:$0xff]  ;;  %v591_v58 = vmul.f32 %v2098_v1, %v78_v50  ;;  %v1102_v63 = vadd.f32 %v2103_v2, %v589_v52 }
  0x29   :  { %1591 = vst [vmem:[%s6201_s3 + $0x118] sm:$0xff] %v1079_v56  ;;  %v80_v56 = vld [vmem:[%s6200_s2 + $0x1f0] sm:$0xff]  ;;  %v592_v61 = vmul.f32 %v2098_v1, %v79_v53  ;;  %v1103_v4 = vadd.f32 %v2103_v2, %v590_v55 }
  0x2a   :  { %1592 = vst [vmem:[%s6201_s3 + $0x120] sm:$0xff] %v1080_v59  ;;  %v81_v59 = vld [vmem:[%s6200_s2 + $0x1f8] sm:$0xff]  ;;  %v593_v0 = vmul.f32 %v2098_v1, %v80_v56  ;;  %v1104_v7 = vadd.f32 %v2103_v2, %v591_v58 }
  0x2b   :  { %1593 = vst [vmem:[%s6201_s3 + $0x128] sm:$0xff] %v1081_v62  ;;  %v82_v62 = vld [vmem:[%s6200_s2 + $0x200] sm:$0xff]  ;;  %v594_v5 = vmul.f32 %v2098_v1, %v81_v59  ;;  %v1105_v10 = vadd.f32 %v2103_v2, %v592_v61 }
  0x2c   :  { %1594 = vst [vmem:[%s6201_s3 + $0x130] sm:$0xff] %v1082_v3  ;;  %v83_v3 = vld [vmem:[%s6200_s2 + $0x208] sm:$0xff]  ;;  %v595_v8 = vmul.f32 %v2098_v1, %v82_v62  ;;  %v1106_v13 = vadd.f32 %v2103_v2, %v593_v0 }
  0x2d   :  { %1595 = vst [vmem:[%s6201_s3 + $0x138] sm:$0xff] %v1083_v6  ;;  %v84_v6 = vld [vmem:[%s6200_s2 + $0x210] sm:$0xff]  ;;  %v596_v11 = vmul.f32 %v2098_v1, %v83_v3  ;;  %v1107_v16 = vadd.f32 %v2103_v2, %v594_v5 }
  0x2e   :  { %1596 = vst [vmem:[%s6201_s3 + $0x140] sm:$0xff] %v1084_v9  ;;  %v85_v9 = vld [vmem:[%s6200_s2 + $0x218] sm:$0xff]  ;;  %v597_v14 = vmul.f32 %v2098_v1, %v84_v6  ;;  %v1108_v19 = vadd.f32 %v2103_v2, %v595_v8 }
  0x2f   :  { %1597 = vst [vmem:[%s6201_s3 + $0x148] sm:$0xff] %v1085_v12  ;;  %v86_v12 = vld [vmem:[%s6200_s2 + $0x220] sm:$0xff]  ;;  %v598_v17 = vmul.f32 %v2098_v1, %v85_v9  ;;  %v1109_v22 = vadd.f32 %v2103_v2, %v596_v11 }
  0x30   :  { %1598 = vst [vmem:[%s6201_s3 + $0x150] sm:$0xff] %v1086_v15  ;;  %v87_v15 = vld [vmem:[%s6200_s2 + $0x228] sm:$0xff]  ;;  %v599_v20 = vmul.f32 %v2098_v1, %v86_v12  ;;  %v1110_v25 = vadd.f32 %v2103_v2, %v597_v14 }
  0x31   :  { %1599 = vst [vmem:[%s6201_s3 + $0x158] sm:$0xff] %v1087_v18  ;;  %v88_v18 = vld [vmem:[%s6200_s2 + $0x230] sm:$0xff]  ;;  %v600_v23 = vmul.f32 %v2098_v1, %v87_v15  ;;  %v1111_v28 = vadd.f32 %v2103_v2, %v598_v17 }
  0x32   :  { %1600 = vst [vmem:[%s6201_s3 + $0x160] sm:$0xff] %v1088_v21  ;;  %v89_v21 = vld [vmem:[%s6200_s2 + $0x238] sm:$0xff]  ;;  %v601_v26 = vmul.f32 %v2098_v1, %v88_v18  ;;  %v1112_v31 = vadd.f32 %v2103_v2, %v599_v20 }
  0x33   :  { %1601 = vst [vmem:[%s6201_s3 + $0x168] sm:$0xff] %v1089_v24  ;;  %v90_v24 = vld [vmem:[%s6200_s2 + $0x240] sm:$0xff]  ;;  %v602_v29 = vmul.f32 %v2098_v1, %v89_v21  ;;  %v1113_v34 = vadd.f32 %v2103_v2, %v600_v23 }
  0x34   :  { %1602 = vst [vmem:[%s6201_s3 + $0x170] sm:$0xff] %v1090_v27  ;;  %v91_v27 = vld [vmem:[%s6200_s2 + $0x248] sm:$0xff]  ;;  %v603_v32 = vmul.f32 %v2098_v1, %v90_v24  ;;  %v1114_v37 = vadd.f32 %v2103_v2, %v601_v26 }
  0x35   :  { %1603 = vst [vmem:[%s6201_s3 + $0x178] sm:$0xff] %v1091_v30  ;;  %v92_v30 = vld [vmem:[%s6200_s2 + $0x250] sm:$0xff]  ;;  %v604_v35 = vmul.f32 %v2098_v1, %v91_v27  ;;  %v1115_v40 = vadd.f32 %v2103_v2, %v602_v29 }
  0x36   :  { %1604 = vst [vmem:[%s6201_s3 + $0x180] sm:$0xff] %v1092_v33  ;;  %v93_v33 = vld [vmem:[%s6200_s2 + $0x258] sm:$0xff]  ;;  %v605_v38 = vmul.f32 %v2098_v1, %v92_v30  ;;  %v1116_v43 = vadd.f32 %v2103_v2, %v603_v32 }
  0x37   :  { %1605 = vst [vmem:[%s6201_s3 + $0x188] sm:$0xff] %v1093_v36  ;;  %v94_v36 = vld [vmem:[%s6200_s2 + $0x260] sm:$0xff]  ;;  %v606_v41 = vmul.f32 %v2098_v1, %v93_v33  ;;  %v1117_v46 = vadd.f32 %v2103_v2, %v604_v35 }
  0x38   :  { %1606 = vst [vmem:[%s6201_s3 + $0x190] sm:$0xff] %v1094_v39  ;;  %v95_v39 = vld [vmem:[%s6200_s2 + $0x268] sm:$0xff]  ;;  %v607_v44 = vmul.f32 %v2098_v1, %v94_v36  ;;  %v1118_v49 = vadd.f32 %v2103_v2, %v605_v38 }
  0x39   :  { %1607 = vst [vmem:[%s6201_s3 + $0x198] sm:$0xff] %v1095_v42  ;;  %v96_v42 = vld [vmem:[%s6200_s2 + $0x270] sm:$0xff]  ;;  %v608_v47 = vmul.f32 %v2098_v1, %v95_v39  ;;  %v1119_v52 = vadd.f32 %v2103_v2, %v606_v41 }
  0x3a   :  { %1608 = vst [vmem:[%s6201_s3 + $0x1a0] sm:$0xff] %v1096_v45  ;;  %v97_v45 = vld [vmem:[%s6200_s2 + $0x278] sm:$0xff]  ;;  %v609_v50 = vmul.f32 %v2098_v1, %v96_v42  ;;  %v1120_v55 = vadd.f32 %v2103_v2, %v607_v44 }
  0x3b   :  { %1609 = vst [vmem:[%s6201_s3 + $0x1a8] sm:$0xff] %v1097_v48  ;;  %v98_v48 = vld [vmem:[%s6200_s2 + $0x280] sm:$0xff]  ;;  %v610_v53 = vmul.f32 %v2098_v1, %v97_v45  ;;  %v1121_v58 = vadd.f32 %v2103_v2, %v608_v47 }
  0x3c   :  { %1610 = vst [vmem:[%s6201_s3 + $0x1b0] sm:$0xff] %v1098_v51  ;;  %v99_v51 = vld [vmem:[%s6200_s2 + $0x288] sm:$0xff]  ;;  %v611_v56 = vmul.f32 %v2098_v1, %v98_v48  ;;  %v1122_v61 = vadd.f32 %v2103_v2, %v609_v50 }
  0x3d   :  { %1611 = vst [vmem:[%s6201_s3 + $0x1b8] sm:$0xff] %v1099_v54  ;;  %v100_v54 = vld [vmem:[%s6200_s2 + $0x290] sm:$0xff]  ;;  %v612_v59 = vmul.f32 %v2098_v1, %v99_v51  ;;  %v1123_v0 = vadd.f32 %v2103_v2, %v610_v53 }
  0x3e   :  { %1612 = vst [vmem:[%s6201_s3 + $0x1c0] sm:$0xff] %v1100_v57  ;;  %v101_v57 = vld [vmem:[%s6200_s2 + $0x298] sm:$0xff]  ;;  %v613_v62 = vmul.f32 %v2098_v1, %v100_v54  ;;  %v1124_v5 = vadd.f32 %v2103_v2, %v611_v56 }
  0x3f   :  { %1613 = vst [vmem:[%s6201_s3 + $0x1c8] sm:$0xff] %v1101_v60  ;;  %v102_v60 = vld [vmem:[%s6200_s2 + $0x2a0] sm:$0xff]  ;;  %v614_v3 = vmul.f32 %v2098_v1, %v101_v57  ;;  %v1125_v8 = vadd.f32 %v2103_v2, %v612_v59 }
  0x40   :  { %1614 = vst [vmem:[%s6201_s3 + $0x1d0] sm:$0xff] %v1102_v63  ;;  %v103_v63 = vld [vmem:[%s6200_s2 + $0x2a8] sm:$0xff]  ;;  %v615_v6 = vmul.f32 %v2098_v1, %v102_v60  ;;  %v1126_v11 = vadd.f32 %v2103_v2, %v613_v62 }
  0x41   :  { %1615 = vst [vmem:[%s6201_s3 + $0x1d8] sm:$0xff] %v1103_v4  ;;  %v104_v4 = vld [vmem:[%s6200_s2 + $0x2b0] sm:$0xff]  ;;  %v616_v9 = vmul.f32 %v2098_v1, %v103_v63  ;;  %v1127_v14 = vadd.f32 %v2103_v2, %v614_v3 }
  0x42   :  { %1616 = vst [vmem:[%s6201_s3 + $0x1e0] sm:$0xff] %v1104_v7  ;;  %v105_v7 = vld [vmem:[%s6200_s2 + $0x2b8] sm:$0xff]  ;;  %v617_v12 = vmul.f32 %v2098_v1, %v104_v4  ;;  %v1128_v17 = vadd.f32 %v2103_v2, %v615_v6 }
  0x43   :  { %1617 = vst [vmem:[%s6201_s3 + $0x1e8] sm:$0xff] %v1105_v10  ;;  %v106_v10 = vld [vmem:[%s6200_s2 + $0x2c0] sm:$0xff]  ;;  %v618_v15 = vmul.f32 %v2098_v1, %v105_v7  ;;  %v1129_v20 = vadd.f32 %v2103_v2, %v616_v9 }
  0x44   :  { %1618 = vst [vmem:[%s6201_s3 + $0x1f0] sm:$0xff] %v1106_v13  ;;  %v107_v13 = vld [vmem:[%s6200_s2 + $0x2c8] sm:$0xff]  ;;  %v619_v18 = vmul.f32 %v2098_v1, %v106_v10  ;;  %v1130_v23 = vadd.f32 %v2103_v2, %v617_v12 }
  0x45   :  { %1619 = vst [vmem:[%s6201_s3 + $0x1f8] sm:$0xff] %v1107_v16  ;;  %v108_v16 = vld [vmem:[%s6200_s2 + $0x2d0] sm:$0xff]  ;;  %v620_v21 = vmul.f32 %v2098_v1, %v107_v13  ;;  %v1131_v26 = vadd.f32 %v2103_v2, %v618_v15 }
  0x46   :  { %1620 = vst [vmem:[%s6201_s3 + $0x200] sm:$0xff] %v1108_v19  ;;  %v109_v19 = vld [vmem:[%s6200_s2 + $0x2d8] sm:$0xff]  ;;  %v621_v24 = vmul.f32 %v2098_v1, %v108_v16  ;;  %v1132_v29 = vadd.f32 %v2103_v2, %v619_v18 }
  0x47   :  { %1621 = vst [vmem:[%s6201_s3 + $0x208] sm:$0xff] %v1109_v22  ;;  %v110_v22 = vld [vmem:[%s6200_s2 + $0x2e0] sm:$0xff]  ;;  %v622_v27 = vmul.f32 %v2098_v1, %v109_v19  ;;  %v1133_v32 = vadd.f32 %v2103_v2, %v620_v21 }
  0x48   :  { %1622 = vst [vmem:[%s6201_s3 + $0x210] sm:$0xff] %v1110_v25  ;;  %v111_v25 = vld [vmem:[%s6200_s2 + $0x2e8] sm:$0xff]  ;;  %v623_v30 = vmul.f32 %v2098_v1, %v110_v22  ;;  %v1134_v35 = vadd.f32 %v2103_v2, %v621_v24 }
  0x49   :  { %1623 = vst [vmem:[%s6201_s3 + $0x218] sm:$0xff] %v1111_v28  ;;  %v112_v28 = vld [vmem:[%s6200_s2 + $0x2f0] sm:$0xff]  ;;  %v624_v33 = vmul.f32 %v2098_v1, %v111_v25  ;;  %v1135_v38 = vadd.f32 %v2103_v2, %v622_v27 }
  0x4a   :  { %1624 = vst [vmem:[%s6201_s3 + $0x220] sm:$0xff] %v1112_v31  ;;  %v113_v31 = vld [vmem:[%s6200_s2 + $0x2f8] sm:$0xff]  ;;  %v625_v36 = vmul.f32 %v2098_v1, %v112_v28  ;;  %v1136_v41 = vadd.f32 %v2103_v2, %v623_v30 }
  0x4b   :  { %1625 = vst [vmem:[%s6201_s3 + $0x228] sm:$0xff] %v1113_v34  ;;  %v114_v34 = vld [vmem:[%s6200_s2 + $0x300] sm:$0xff]  ;;  %v626_v39 = vmul.f32 %v2098_v1, %v113_v31  ;;  %v1137_v44 = vadd.f32 %v2103_v2, %v624_v33 }
  0x4c   :  { %1626 = vst [vmem:[%s6201_s3 + $0x230] sm:$0xff] %v1114_v37  ;;  %v115_v37 = vld [vmem:[%s6200_s2 + $0x308] sm:$0xff]  ;;  %v627_v42 = vmul.f32 %v2098_v1, %v114_v34  ;;  %v1138_v47 = vadd.f32 %v2103_v2, %v625_v36 }
  0x4d   :  { %1627 = vst [vmem:[%s6201_s3 + $0x238] sm:$0xff] %v1115_v40  ;;  %v116_v40 = vld [vmem:[%s6200_s2 + $0x310] sm:$0xff]  ;;  %v628_v45 = vmul.f32 %v2098_v1, %v115_v37  ;;  %v1139_v50 = vadd.f32 %v2103_v2, %v626_v39 }
  0x4e   :  { %1628 = vst [vmem:[%s6201_s3 + $0x240] sm:$0xff] %v1116_v43  ;;  %v117_v43 = vld [vmem:[%s6200_s2 + $0x318] sm:$0xff]  ;;  %v629_v48 = vmul.f32 %v2098_v1, %v116_v40  ;;  %v1140_v53 = vadd.f32 %v2103_v2, %v627_v42 }
  0x4f   :  { %1629 = vst [vmem:[%s6201_s3 + $0x248] sm:$0xff] %v1117_v46  ;;  %v118_v46 = vld [vmem:[%s6200_s2 + $0x320] sm:$0xff]  ;;  %v630_v51 = vmul.f32 %v2098_v1, %v117_v43  ;;  %v1141_v56 = vadd.f32 %v2103_v2, %v628_v45 }
  0x50   :  { %1630 = vst [vmem:[%s6201_s3 + $0x250] sm:$0xff] %v1118_v49  ;;  %v119_v49 = vld [vmem:[%s6200_s2 + $0x328] sm:$0xff]  ;;  %v631_v54 = vmul.f32 %v2098_v1, %v118_v46  ;;  %v1142_v59 = vadd.f32 %v2103_v2, %v629_v48 }
  0x51   :  { %1631 = vst [vmem:[%s6201_s3 + $0x258] sm:$0xff] %v1119_v52  ;;  %v120_v52 = vld [vmem:[%s6200_s2 + $0x330] sm:$0xff]  ;;  %v632_v57 = vmul.f32 %v2098_v1, %v119_v49  ;;  %v1143_v62 = vadd.f32 %v2103_v2, %v630_v51 }
  0x52   :  { %1632 = vst [vmem:[%s6201_s3 + $0x260] sm:$0xff] %v1120_v55  ;;  %v121_v55 = vld [vmem:[%s6200_s2 + $0x338] sm:$0xff]  ;;  %v633_v60 = vmul.f32 %v2098_v1, %v120_v52  ;;  %v1144_v3 = vadd.f32 %v2103_v2, %v631_v54 }
  0x53   :  { %1633 = vst [vmem:[%s6201_s3 + $0x268] sm:$0xff] %v1121_v58  ;;  %v122_v58 = vld [vmem:[%s6200_s2 + $0x340] sm:$0xff]  ;;  %v634_v63 = vmul.f32 %v2098_v1, %v121_v55  ;;  %v1145_v6 = vadd.f32 %v2103_v2, %v632_v57 }
  0x54   :  { %1634 = vst [vmem:[%s6201_s3 + $0x270] sm:$0xff] %v1122_v61  ;;  %v123_v61 = vld [vmem:[%s6200_s2 + $0x348] sm:$0xff]  ;;  %v635_v4 = vmul.f32 %v2098_v1, %v122_v58  ;;  %v1146_v9 = vadd.f32 %v2103_v2, %v633_v60 }
  0x55   :  { %1635 = vst [vmem:[%s6201_s3 + $0x278] sm:$0xff] %v1123_v0  ;;  %v124_v0 = vld [vmem:[%s6200_s2 + $0x350] sm:$0xff]  ;;  %v636_v7 = vmul.f32 %v2098_v1, %v123_v61  ;;  %v1147_v12 = vadd.f32 %v2103_v2, %v634_v63 }
  0x56   :  { %1636 = vst [vmem:[%s6201_s3 + $0x280] sm:$0xff] %v1124_v5  ;;  %v125_v5 = vld [vmem:[%s6200_s2 + $0x358] sm:$0xff]  ;;  %v637_v10 = vmul.f32 %v2098_v1, %v124_v0  ;;  %v1148_v15 = vadd.f32 %v2103_v2, %v635_v4 }
  0x57   :  { %1637 = vst [vmem:[%s6201_s3 + $0x288] sm:$0xff] %v1125_v8  ;;  %v126_v8 = vld [vmem:[%s6200_s2 + $0x360] sm:$0xff]  ;;  %v638_v13 = vmul.f32 %v2098_v1, %v125_v5  ;;  %v1149_v18 = vadd.f32 %v2103_v2, %v636_v7 }
  0x58   :  { %1638 = vst [vmem:[%s6201_s3 + $0x290] sm:$0xff] %v1126_v11  ;;  %v127_v11 = vld [vmem:[%s6200_s2 + $0x368] sm:$0xff]  ;;  %v639_v16 = vmul.f32 %v2098_v1, %v126_v8  ;;  %v1150_v21 = vadd.f32 %v2103_v2, %v637_v10 }
  0x59   :  { %1639 = vst [vmem:[%s6201_s3 + $0x298] sm:$0xff] %v1127_v14  ;;  %v128_v14 = vld [vmem:[%s6200_s2 + $0x370] sm:$0xff]  ;;  %v640_v19 = vmul.f32 %v2098_v1, %v127_v11  ;;  %v1151_v24 = vadd.f32 %v2103_v2, %v638_v13 }
  0x5a   :  { %1640 = vst [vmem:[%s6201_s3 + $0x2a0] sm:$0xff] %v1128_v17  ;;  %v129_v17 = vld [vmem:[%s6200_s2 + $0x378] sm:$0xff]  ;;  %v641_v22 = vmul.f32 %v2098_v1, %v128_v14  ;;  %v1152_v27 = vadd.f32 %v2103_v2, %v639_v16 }
  0x5b   :  { %1641 = vst [vmem:[%s6201_s3 + $0x2a8] sm:$0xff] %v1129_v20  ;;  %v130_v20 = vld [vmem:[%s6200_s2 + $0x380] sm:$0xff]  ;;  %v642_v25 = vmul.f32 %v2098_v1, %v129_v17  ;;  %v1153_v30 = vadd.f32 %v2103_v2, %v640_v19 }
  0x5c   :  { %1642 = vst [vmem:[%s6201_s3 + $0x2b0] sm:$0xff] %v1130_v23  ;;  %v131_v23 = vld [vmem:[%s6200_s2 + $0x388] sm:$0xff]  ;;  %v643_v28 = vmul.f32 %v2098_v1, %v130_v20  ;;  %v1154_v33 = vadd.f32 %v2103_v2, %v641_v22 }
  0x5d   :  { %1643 = vst [vmem:[%s6201_s3 + $0x2b8] sm:$0xff] %v1131_v26  ;;  %v132_v26 = vld [vmem:[%s6200_s2 + $0x390] sm:$0xff]  ;;  %v644_v31 = vmul.f32 %v2098_v1, %v131_v23  ;;  %v1155_v36 = vadd.f32 %v2103_v2, %v642_v25 }
  0x5e   :  { %1644 = vst [vmem:[%s6201_s3 + $0x2c0] sm:$0xff] %v1132_v29  ;;  %v133_v29 = vld [vmem:[%s6200_s2 + $0x398] sm:$0xff]  ;;  %v645_v34 = vmul.f32 %v2098_v1, %v132_v26  ;;  %v1156_v39 = vadd.f32 %v2103_v2, %v643_v28 }
  0x5f   :  { %1645 = vst [vmem:[%s6201_s3 + $0x2c8] sm:$0xff] %v1133_v32  ;;  %v134_v32 = vld [vmem:[%s6200_s2 + $0x3a0] sm:$0xff]  ;;  %v646_v37 = vmul.f32 %v2098_v1, %v133_v29  ;;  %v1157_v42 = vadd.f32 %v2103_v2, %v644_v31 }
  0x60   :  { %1646 = vst [vmem:[%s6201_s3 + $0x2d0] sm:$0xff] %v1134_v35  ;;  %v135_v35 = vld [vmem:[%s6200_s2 + $0x3a8] sm:$0xff]  ;;  %v647_v40 = vmul.f32 %v2098_v1, %v134_v32  ;;  %v1158_v45 = vadd.f32 %v2103_v2, %v645_v34 }
  0x61   :  { %1647 = vst [vmem:[%s6201_s3 + $0x2d8] sm:$0xff] %v1135_v38  ;;  %v136_v38 = vld [vmem:[%s6200_s2 + $0x3b0] sm:$0xff]  ;;  %v648_v43 = vmul.f32 %v2098_v1, %v135_v35  ;;  %v1159_v48 = vadd.f32 %v2103_v2, %v646_v37 }
  0x62   :  { %1648 = vst [vmem:[%s6201_s3 + $0x2e0] sm:$0xff] %v1136_v41  ;;  %v137_v41 = vld [vmem:[%s6200_s2 + $0x3b8] sm:$0xff]  ;;  %v649_v46 = vmul.f32 %v2098_v1, %v136_v38  ;;  %v1160_v51 = vadd.f32 %v2103_v2, %v647_v40 }
  0x63   :  { %1649 = vst [vmem:[%s6201_s3 + $0x2e8] sm:$0xff] %v1137_v44  ;;  %v138_v44 = vld [vmem:[%s6200_s2 + $0x3c0] sm:$0xff]  ;;  %v650_v49 = vmul.f32 %v2098_v1, %v137_v41  ;;  %v1161_v54 = vadd.f32 %v2103_v2, %v648_v43 }
  0x64   :  { %1650 = vst [vmem:[%s6201_s3 + $0x2f0] sm:$0xff] %v1138_v47  ;;  %v139_v47 = vld [vmem:[%s6200_s2 + $0x3c8] sm:$0xff]  ;;  %v651_v52 = vmul.f32 %v2098_v1, %v138_v44  ;;  %v1162_v57 = vadd.f32 %v2103_v2, %v649_v46 }
  0x65   :  { %1651 = vst [vmem:[%s6201_s3 + $0x2f8] sm:$0xff] %v1139_v50  ;;  %v140_v50 = vld [vmem:[%s6200_s2 + $0x3d0] sm:$0xff]  ;;  %v652_v55 = vmul.f32 %v2098_v1, %v139_v47  ;;  %v1163_v60 = vadd.f32 %v2103_v2, %v650_v49 }
  0x66   :  { %1652 = vst [vmem:[%s6201_s3 + $0x300] sm:$0xff] %v1140_v53  ;;  %v141_v53 = vld [vmem:[%s6200_s2 + $0x3d8] sm:$0xff]  ;;  %v653_v58 = vmul.f32 %v2098_v1, %v140_v50  ;;  %v1164_v63 = vadd.f32 %v2103_v2, %v651_v52 }
  0x67   :  { %1653 = vst [vmem:[%s6201_s3 + $0x308] sm:$0xff] %v1141_v56  ;;  %v142_v56 = vld [vmem:[%s6200_s2 + $0x3e0] sm:$0xff]  ;;  %v654_v61 = vmul.f32 %v2098_v1, %v141_v53  ;;  %v1165_v4 = vadd.f32 %v2103_v2, %v652_v55 }
  0x68   :  { %1654 = vst [vmem:[%s6201_s3 + $0x310] sm:$0xff] %v1142_v59  ;;  %v143_v59 = vld [vmem:[%s6200_s2 + $0x3e8] sm:$0xff]  ;;  %v655_v0 = vmul.f32 %v2098_v1, %v142_v56  ;;  %v1166_v7 = vadd.f32 %v2103_v2, %v653_v58 }
  0x69   :  { %1655 = vst [vmem:[%s6201_s3 + $0x318] sm:$0xff] %v1143_v62  ;;  %v144_v62 = vld [vmem:[%s6200_s2 + $0x3f0] sm:$0xff]  ;;  %v656_v5 = vmul.f32 %v2098_v1, %v143_v59  ;;  %v1167_v10 = vadd.f32 %v2103_v2, %v654_v61 }
  0x6a   :  { %1656 = vst [vmem:[%s6201_s3 + $0x320] sm:$0xff] %v1144_v3  ;;  %v145_v3 = vld [vmem:[%s6200_s2 + $0x3f8] sm:$0xff]  ;;  %v657_v8 = vmul.f32 %v2098_v1, %v144_v62  ;;  %v1168_v13 = vadd.f32 %v2103_v2, %v655_v0 }
  0x6b   :  { %1657 = vst [vmem:[%s6201_s3 + $0x328] sm:$0xff] %v1145_v6  ;;  %v146_v6 = vld [vmem:[%s6200_s2 + $0x400] sm:$0xff]  ;;  %v658_v11 = vmul.f32 %v2098_v1, %v145_v3  ;;  %v1169_v16 = vadd.f32 %v2103_v2, %v656_v5 }
  0x6c   :  { %1658 = vst [vmem:[%s6201_s3 + $0x330] sm:$0xff] %v1146_v9  ;;  %v147_v9 = vld [vmem:[%s6200_s2 + $0x408] sm:$0xff]  ;;  %v659_v14 = vmul.f32 %v2098_v1, %v146_v6  ;;  %v1170_v19 = vadd.f32 %v2103_v2, %v657_v8 }
  0x6d   :  { %1659 = vst [vmem:[%s6201_s3 + $0x338] sm:$0xff] %v1147_v12  ;;  %v148_v12 = vld [vmem:[%s6200_s2 + $0x410] sm:$0xff]  ;;  %v660_v17 = vmul.f32 %v2098_v1, %v147_v9  ;;  %v1171_v22 = vadd.f32 %v2103_v2, %v658_v11 }
  0x6e   :  { %1660 = vst [vmem:[%s6201_s3 + $0x340] sm:$0xff] %v1148_v15  ;;  %v149_v15 = vld [vmem:[%s6200_s2 + $0x418] sm:$0xff]  ;;  %v661_v20 = vmul.f32 %v2098_v1, %v148_v12  ;;  %v1172_v25 = vadd.f32 %v2103_v2, %v659_v14 }
  0x6f   :  { %1661 = vst [vmem:[%s6201_s3 + $0x348] sm:$0xff] %v1149_v18  ;;  %v150_v18 = vld [vmem:[%s6200_s2 + $0x420] sm:$0xff]  ;;  %v662_v23 = vmul.f32 %v2098_v1, %v149_v15  ;;  %v1173_v28 = vadd.f32 %v2103_v2, %v660_v17 }
  0x70   :  { %1662 = vst [vmem:[%s6201_s3 + $0x350] sm:$0xff] %v1150_v21  ;;  %v151_v21 = vld [vmem:[%s6200_s2 + $0x428] sm:$0xff]  ;;  %v663_v26 = vmul.f32 %v2098_v1, %v150_v18  ;;  %v1174_v31 = vadd.f32 %v2103_v2, %v661_v20 }
  0x71   :  { %1663 = vst [vmem:[%s6201_s3 + $0x358] sm:$0xff] %v1151_v24  ;;  %v152_v24 = vld [vmem:[%s6200_s2 + $0x430] sm:$0xff]  ;;  %v664_v29 = vmul.f32 %v2098_v1, %v151_v21  ;;  %v1175_v34 = vadd.f32 %v2103_v2, %v662_v23 }
  0x72   :  { %1664 = vst [vmem:[%s6201_s3 + $0x360] sm:$0xff] %v1152_v27  ;;  %v153_v27 = vld [vmem:[%s6200_s2 + $0x438] sm:$0xff]  ;;  %v665_v32 = vmul.f32 %v2098_v1, %v152_v24  ;;  %v1176_v37 = vadd.f32 %v2103_v2, %v663_v26 }
  0x73   :  { %1665 = vst [vmem:[%s6201_s3 + $0x368] sm:$0xff] %v1153_v30  ;;  %v154_v30 = vld [vmem:[%s6200_s2 + $0x440] sm:$0xff]  ;;  %v666_v35 = vmul.f32 %v2098_v1, %v153_v27  ;;  %v1177_v40 = vadd.f32 %v2103_v2, %v664_v29 }
  0x74   :  { %1666 = vst [vmem:[%s6201_s3 + $0x370] sm:$0xff] %v1154_v33  ;;  %v155_v33 = vld [vmem:[%s6200_s2 + $0x448] sm:$0xff]  ;;  %v667_v38 = vmul.f32 %v2098_v1, %v154_v30  ;;  %v1178_v43 = vadd.f32 %v2103_v2, %v665_v32 }
  0x75   :  { %1667 = vst [vmem:[%s6201_s3 + $0x378] sm:$0xff] %v1155_v36  ;;  %v156_v36 = vld [vmem:[%s6200_s2 + $0x450] sm:$0xff]  ;;  %v668_v41 = vmul.f32 %v2098_v1, %v155_v33  ;;  %v1179_v46 = vadd.f32 %v2103_v2, %v666_v35 }
  0x76   :  { %1668 = vst [vmem:[%s6201_s3 + $0x380] sm:$0xff] %v1156_v39  ;;  %v157_v39 = vld [vmem:[%s6200_s2 + $0x458] sm:$0xff]  ;;  %v669_v44 = vmul.f32 %v2098_v1, %v156_v36  ;;  %v1180_v49 = vadd.f32 %v2103_v2, %v667_v38 }
  0x77   :  { %1669 = vst [vmem:[%s6201_s3 + $0x388] sm:$0xff] %v1157_v42  ;;  %v158_v42 = vld [vmem:[%s6200_s2 + $0x460] sm:$0xff]  ;;  %v670_v47 = vmul.f32 %v2098_v1, %v157_v39  ;;  %v1181_v52 = vadd.f32 %v2103_v2, %v668_v41 }
  0x78   :  { %1670 = vst [vmem:[%s6201_s3 + $0x390] sm:$0xff] %v1158_v45  ;;  %v159_v45 = vld [vmem:[%s6200_s2 + $0x468] sm:$0xff]  ;;  %v671_v50 = vmul.f32 %v2098_v1, %v158_v42  ;;  %v1182_v55 = vadd.f32 %v2103_v2, %v669_v44 }
  0x79   :  { %1671 = vst [vmem:[%s6201_s3 + $0x398] sm:$0xff] %v1159_v48  ;;  %v160_v48 = vld [vmem:[%s6200_s2 + $0x470] sm:$0xff]  ;;  %v672_v53 = vmul.f32 %v2098_v1, %v159_v45  ;;  %v1183_v58 = vadd.f32 %v2103_v2, %v670_v47 }
  0x7a   :  { %1672 = vst [vmem:[%s6201_s3 + $0x3a0] sm:$0xff] %v1160_v51  ;;  %v161_v51 = vld [vmem:[%s6200_s2 + $0x478] sm:$0xff]  ;;  %v673_v56 = vmul.f32 %v2098_v1, %v160_v48  ;;  %v1184_v61 = vadd.f32 %v2103_v2, %v671_v50 }
  0x7b   :  { %1673 = vst [vmem:[%s6201_s3 + $0x3a8] sm:$0xff] %v1161_v54  ;;  %v162_v54 = vld [vmem:[%s6200_s2 + $0x480] sm:$0xff]  ;;  %v674_v59 = vmul.f32 %v2098_v1, %v161_v51  ;;  %v1185_v0 = vadd.f32 %v2103_v2, %v672_v53 }
  0x7c   :  { %1674 = vst [vmem:[%s6201_s3 + $0x3b0] sm:$0xff] %v1162_v57  ;;  %v163_v57 = vld [vmem:[%s6200_s2 + $0x488] sm:$0xff]  ;;  %v675_v62 = vmul.f32 %v2098_v1, %v162_v54  ;;  %v1186_v5 = vadd.f32 %v2103_v2, %v673_v56 }
  0x7d   :  { %1675 = vst [vmem:[%s6201_s3 + $0x3b8] sm:$0xff] %v1163_v60  ;;  %v164_v60 = vld [vmem:[%s6200_s2 + $0x490] sm:$0xff]  ;;  %v676_v3 = vmul.f32 %v2098_v1, %v163_v57  ;;  %v1187_v8 = vadd.f32 %v2103_v2, %v674_v59 }
  0x7e   :  { %1676 = vst [vmem:[%s6201_s3 + $0x3c0] sm:$0xff] %v1164_v63  ;;  %v165_v63 = vld [vmem:[%s6200_s2 + $0x498] sm:$0xff]  ;;  %v677_v6 = vmul.f32 %v2098_v1, %v164_v60  ;;  %v1188_v11 = vadd.f32 %v2103_v2, %v675_v62 }
  0x7f   :  { %1677 = vst [vmem:[%s6201_s3 + $0x3c8] sm:$0xff] %v1165_v4  ;;  %v166_v4 = vld [vmem:[%s6200_s2 + $0x4a0] sm:$0xff]  ;;  %v678_v9 = vmul.f32 %v2098_v1, %v165_v63  ;;  %v1189_v14 = vadd.f32 %v2103_v2, %v676_v3 }
  0x80   :  { %1678 = vst [vmem:[%s6201_s3 + $0x3d0] sm:$0xff] %v1166_v7  ;;  %v167_v7 = vld [vmem:[%s6200_s2 + $0x4a8] sm:$0xff]  ;;  %v679_v12 = vmul.f32 %v2098_v1, %v166_v4  ;;  %v1190_v17 = vadd.f32 %v2103_v2, %v677_v6 }
  0x81   :  { %1679 = vst [vmem:[%s6201_s3 + $0x3d8] sm:$0xff] %v1167_v10  ;;  %v168_v10 = vld [vmem:[%s6200_s2 + $0x4b0] sm:$0xff]  ;;  %v680_v15 = vmul.f32 %v2098_v1, %v167_v7  ;;  %v1191_v20 = vadd.f32 %v2103_v2, %v678_v9 }
  0x82   :  { %1680 = vst [vmem:[%s6201_s3 + $0x3e0] sm:$0xff] %v1168_v13  ;;  %v169_v13 = vld [vmem:[%s6200_s2 + $0x4b8] sm:$0xff]  ;;  %v681_v18 = vmul.f32 %v2098_v1, %v168_v10  ;;  %v1192_v23 = vadd.f32 %v2103_v2, %v679_v12 }
  0x83   :  { %1681 = vst [vmem:[%s6201_s3 + $0x3e8] sm:$0xff] %v1169_v16  ;;  %v170_v16 = vld [vmem:[%s6200_s2 + $0x4c0] sm:$0xff]  ;;  %v682_v21 = vmul.f32 %v2098_v1, %v169_v13  ;;  %v1193_v26 = vadd.f32 %v2103_v2, %v680_v15 }
  0x84   :  { %1682 = vst [vmem:[%s6201_s3 + $0x3f0] sm:$0xff] %v1170_v19  ;;  %v171_v19 = vld [vmem:[%s6200_s2 + $0x4c8] sm:$0xff]  ;;  %v683_v24 = vmul.f32 %v2098_v1, %v170_v16  ;;  %v1194_v29 = vadd.f32 %v2103_v2, %v681_v18 }
  0x85   :  { %1683 = vst [vmem:[%s6201_s3 + $0x3f8] sm:$0xff] %v1171_v22  ;;  %v172_v22 = vld [vmem:[%s6200_s2 + $0x4d0] sm:$0xff]  ;;  %v684_v27 = vmul.f32 %v2098_v1, %v171_v19  ;;  %v1195_v32 = vadd.f32 %v2103_v2, %v682_v21 }
  0x86   :  { %1684 = vst [vmem:[%s6201_s3 + $0x400] sm:$0xff] %v1172_v25  ;;  %v173_v25 = vld [vmem:[%s6200_s2 + $0x4d8] sm:$0xff]  ;;  %v685_v30 = vmul.f32 %v2098_v1, %v172_v22  ;;  %v1196_v35 = vadd.f32 %v2103_v2, %v683_v24 }
  0x87   :  { %1685 = vst [vmem:[%s6201_s3 + $0x408] sm:$0xff] %v1173_v28  ;;  %v174_v28 = vld [vmem:[%s6200_s2 + $0x4e0] sm:$0xff]  ;;  %v686_v33 = vmul.f32 %v2098_v1, %v173_v25  ;;  %v1197_v38 = vadd.f32 %v2103_v2, %v684_v27 }
  0x88   :  { %1686 = vst [vmem:[%s6201_s3 + $0x410] sm:$0xff] %v1174_v31  ;;  %v175_v31 = vld [vmem:[%s6200_s2 + $0x4e8] sm:$0xff]  ;;  %v687_v36 = vmul.f32 %v2098_v1, %v174_v28  ;;  %v1198_v41 = vadd.f32 %v2103_v2, %v685_v30 }
  0x89   :  { %1687 = vst [vmem:[%s6201_s3 + $0x418] sm:$0xff] %v1175_v34  ;;  %v176_v34 = vld [vmem:[%s6200_s2 + $0x4f0] sm:$0xff]  ;;  %v688_v39 = vmul.f32 %v2098_v1, %v175_v31  ;;  %v1199_v44 = vadd.f32 %v2103_v2, %v686_v33 }
  0x8a   :  { %1688 = vst [vmem:[%s6201_s3 + $0x420] sm:$0xff] %v1176_v37  ;;  %v177_v37 = vld [vmem:[%s6200_s2 + $0x4f8] sm:$0xff]  ;;  %v689_v42 = vmul.f32 %v2098_v1, %v176_v34  ;;  %v1200_v47 = vadd.f32 %v2103_v2, %v687_v36 }
  0x8b   :  { %1689 = vst [vmem:[%s6201_s3 + $0x428] sm:$0xff] %v1177_v40  ;;  %v178_v40 = vld [vmem:[%s6200_s2 + $0x500] sm:$0xff]  ;;  %v690_v45 = vmul.f32 %v2098_v1, %v177_v37  ;;  %v1201_v50 = vadd.f32 %v2103_v2, %v688_v39 }
  0x8c   :  { %1690 = vst [vmem:[%s6201_s3 + $0x430] sm:$0xff] %v1178_v43  ;;  %v179_v43 = vld [vmem:[%s6200_s2 + $0x508] sm:$0xff]  ;;  %v691_v48 = vmul.f32 %v2098_v1, %v178_v40  ;;  %v1202_v53 = vadd.f32 %v2103_v2, %v689_v42 }
  0x8d   :  { %1691 = vst [vmem:[%s6201_s3 + $0x438] sm:$0xff] %v1179_v46  ;;  %v180_v46 = vld [vmem:[%s6200_s2 + $0x510] sm:$0xff]  ;;  %v692_v51 = vmul.f32 %v2098_v1, %v179_v43  ;;  %v1203_v56 = vadd.f32 %v2103_v2, %v690_v45 }
  0x8e   :  { %1692 = vst [vmem:[%s6201_s3 + $0x440] sm:$0xff] %v1180_v49  ;;  %v181_v49 = vld [vmem:[%s6200_s2 + $0x518] sm:$0xff]  ;;  %v693_v54 = vmul.f32 %v2098_v1, %v180_v46  ;;  %v1204_v59 = vadd.f32 %v2103_v2, %v691_v48 }
  0x8f   :  { %1693 = vst [vmem:[%s6201_s3 + $0x448] sm:$0xff] %v1181_v52  ;;  %v182_v52 = vld [vmem:[%s6200_s2 + $0x520] sm:$0xff]  ;;  %v694_v57 = vmul.f32 %v2098_v1, %v181_v49  ;;  %v1205_v62 = vadd.f32 %v2103_v2, %v692_v51 }
  0x90   :  { %1694 = vst [vmem:[%s6201_s3 + $0x450] sm:$0xff] %v1182_v55  ;;  %v183_v55 = vld [vmem:[%s6200_s2 + $0x528] sm:$0xff]  ;;  %v695_v60 = vmul.f32 %v2098_v1, %v182_v52  ;;  %v1206_v3 = vadd.f32 %v2103_v2, %v693_v54 }
  0x91   :  { %1695 = vst [vmem:[%s6201_s3 + $0x458] sm:$0xff] %v1183_v58  ;;  %v184_v58 = vld [vmem:[%s6200_s2 + $0x530] sm:$0xff]  ;;  %v696_v63 = vmul.f32 %v2098_v1, %v183_v55  ;;  %v1207_v6 = vadd.f32 %v2103_v2, %v694_v57 }
  0x92   :  { %1696 = vst [vmem:[%s6201_s3 + $0x460] sm:$0xff] %v1184_v61  ;;  %v185_v61 = vld [vmem:[%s6200_s2 + $0x538] sm:$0xff]  ;;  %v697_v4 = vmul.f32 %v2098_v1, %v184_v58  ;;  %v1208_v9 = vadd.f32 %v2103_v2, %v695_v60 }
  0x93   :  { %1697 = vst [vmem:[%s6201_s3 + $0x468] sm:$0xff] %v1185_v0  ;;  %v186_v0 = vld [vmem:[%s6200_s2 + $0x540] sm:$0xff]  ;;  %v698_v7 = vmul.f32 %v2098_v1, %v185_v61  ;;  %v1209_v12 = vadd.f32 %v2103_v2, %v696_v63 }
  0x94   :  { %1698 = vst [vmem:[%s6201_s3 + $0x470] sm:$0xff] %v1186_v5  ;;  %v187_v5 = vld [vmem:[%s6200_s2 + $0x548] sm:$0xff]  ;;  %v699_v10 = vmul.f32 %v2098_v1, %v186_v0  ;;  %v1210_v15 = vadd.f32 %v2103_v2, %v697_v4 }
  0x95   :  { %1699 = vst [vmem:[%s6201_s3 + $0x478] sm:$0xff] %v1187_v8  ;;  %v188_v8 = vld [vmem:[%s6200_s2 + $0x550] sm:$0xff]  ;;  %v700_v13 = vmul.f32 %v2098_v1, %v187_v5  ;;  %v1211_v18 = vadd.f32 %v2103_v2, %v698_v7 }
  0x96   :  { %1700 = vst [vmem:[%s6201_s3 + $0x480] sm:$0xff] %v1188_v11  ;;  %v189_v11 = vld [vmem:[%s6200_s2 + $0x558] sm:$0xff]  ;;  %v701_v16 = vmul.f32 %v2098_v1, %v188_v8  ;;  %v1212_v21 = vadd.f32 %v2103_v2, %v699_v10 }
  0x97   :  { %1701 = vst [vmem:[%s6201_s3 + $0x488] sm:$0xff] %v1189_v14  ;;  %v190_v14 = vld [vmem:[%s6200_s2 + $0x560] sm:$0xff]  ;;  %v702_v19 = vmul.f32 %v2098_v1, %v189_v11  ;;  %v1213_v24 = vadd.f32 %v2103_v2, %v700_v13 }
  0x98   :  { %1702 = vst [vmem:[%s6201_s3 + $0x490] sm:$0xff] %v1190_v17  ;;  %v191_v17 = vld [vmem:[%s6200_s2 + $0x568] sm:$0xff]  ;;  %v703_v22 = vmul.f32 %v2098_v1, %v190_v14  ;;  %v1214_v27 = vadd.f32 %v2103_v2, %v701_v16 }
  0x99   :  { %1703 = vst [vmem:[%s6201_s3 + $0x498] sm:$0xff] %v1191_v20  ;;  %v192_v20 = vld [vmem:[%s6200_s2 + $0x570] sm:$0xff]  ;;  %v704_v25 = vmul.f32 %v2098_v1, %v191_v17  ;;  %v1215_v30 = vadd.f32 %v2103_v2, %v702_v19 }
  0x9a   :  { %1704 = vst [vmem:[%s6201_s3 + $0x4a0] sm:$0xff] %v1192_v23  ;;  %v193_v23 = vld [vmem:[%s6200_s2 + $0x578] sm:$0xff]  ;;  %v705_v28 = vmul.f32 %v2098_v1, %v192_v20  ;;  %v1216_v33 = vadd.f32 %v2103_v2, %v703_v22 }
  0x9b   :  { %1705 = vst [vmem:[%s6201_s3 + $0x4a8] sm:$0xff] %v1193_v26  ;;  %v194_v26 = vld [vmem:[%s6200_s2 + $0x580] sm:$0xff]  ;;  %v706_v31 = vmul.f32 %v2098_v1, %v193_v23  ;;  %v1217_v36 = vadd.f32 %v2103_v2, %v704_v25 }
  0x9c   :  { %1706 = vst [vmem:[%s6201_s3 + $0x4b0] sm:$0xff] %v1194_v29  ;;  %v195_v29 = vld [vmem:[%s6200_s2 + $0x588] sm:$0xff]  ;;  %v707_v34 = vmul.f32 %v2098_v1, %v194_v26  ;;  %v1218_v39 = vadd.f32 %v2103_v2, %v705_v28 }
  0x9d   :  { %1707 = vst [vmem:[%s6201_s3 + $0x4b8] sm:$0xff] %v1195_v32  ;;  %v196_v32 = vld [vmem:[%s6200_s2 + $0x590] sm:$0xff]  ;;  %v708_v37 = vmul.f32 %v2098_v1, %v195_v29  ;;  %v1219_v42 = vadd.f32 %v2103_v2, %v706_v31 }
  0x9e   :  { %1708 = vst [vmem:[%s6201_s3 + $0x4c0] sm:$0xff] %v1196_v35  ;;  %v197_v35 = vld [vmem:[%s6200_s2 + $0x598] sm:$0xff]  ;;  %v709_v40 = vmul.f32 %v2098_v1, %v196_v32  ;;  %v1220_v45 = vadd.f32 %v2103_v2, %v707_v34 }
  0x9f   :  { %1709 = vst [vmem:[%s6201_s3 + $0x4c8] sm:$0xff] %v1197_v38  ;;  %v198_v38 = vld [vmem:[%s6200_s2 + $0x5a0] sm:$0xff]  ;;  %v710_v43 = vmul.f32 %v2098_v1, %v197_v35  ;;  %v1221_v48 = vadd.f32 %v2103_v2, %v708_v37 }
  0xa0   :  { %1710 = vst [vmem:[%s6201_s3 + $0x4d0] sm:$0xff] %v1198_v41  ;;  %v199_v41 = vld [vmem:[%s6200_s2 + $0x5a8] sm:$0xff]  ;;  %v711_v46 = vmul.f32 %v2098_v1, %v198_v38  ;;  %v1222_v51 = vadd.f32 %v2103_v2, %v709_v40 }
  0xa1   :  { %1711 = vst [vmem:[%s6201_s3 + $0x4d8] sm:$0xff] %v1199_v44  ;;  %v200_v44 = vld [vmem:[%s6200_s2 + $0x5b0] sm:$0xff]  ;;  %v712_v49 = vmul.f32 %v2098_v1, %v199_v41  ;;  %v1223_v54 = vadd.f32 %v2103_v2, %v710_v43 }
  0xa2   :  { %1712 = vst [vmem:[%s6201_s3 + $0x4e0] sm:$0xff] %v1200_v47  ;;  %v201_v47 = vld [vmem:[%s6200_s2 + $0x5b8] sm:$0xff]  ;;  %v713_v52 = vmul.f32 %v2098_v1, %v200_v44  ;;  %v1224_v57 = vadd.f32 %v2103_v2, %v711_v46 }
  0xa3   :  { %1713 = vst [vmem:[%s6201_s3 + $0x4e8] sm:$0xff] %v1201_v50  ;;  %v202_v50 = vld [vmem:[%s6200_s2 + $0x5c0] sm:$0xff]  ;;  %v714_v55 = vmul.f32 %v2098_v1, %v201_v47  ;;  %v1225_v60 = vadd.f32 %v2103_v2, %v712_v49 }
  0xa4   :  { %1714 = vst [vmem:[%s6201_s3 + $0x4f0] sm:$0xff] %v1202_v53  ;;  %v203_v53 = vld [vmem:[%s6200_s2 + $0x5c8] sm:$0xff]  ;;  %v715_v58 = vmul.f32 %v2098_v1, %v202_v50  ;;  %v1226_v63 = vadd.f32 %v2103_v2, %v713_v52 }
  0xa5   :  { %1715 = vst [vmem:[%s6201_s3 + $0x4f8] sm:$0xff] %v1203_v56  ;;  %v204_v56 = vld [vmem:[%s6200_s2 + $0x5d0] sm:$0xff]  ;;  %v716_v61 = vmul.f32 %v2098_v1, %v203_v53  ;;  %v1227_v4 = vadd.f32 %v2103_v2, %v714_v55 }
  0xa6   :  { %1716 = vst [vmem:[%s6201_s3 + $0x500] sm:$0xff] %v1204_v59  ;;  %v205_v59 = vld [vmem:[%s6200_s2 + $0x5d8] sm:$0xff]  ;;  %v717_v0 = vmul.f32 %v2098_v1, %v204_v56  ;;  %v1228_v7 = vadd.f32 %v2103_v2, %v715_v58 }
  0xa7   :  { %1717 = vst [vmem:[%s6201_s3 + $0x508] sm:$0xff] %v1205_v62  ;;  %v206_v62 = vld [vmem:[%s6200_s2 + $0x5e0] sm:$0xff]  ;;  %v718_v5 = vmul.f32 %v2098_v1, %v205_v59  ;;  %v1229_v10 = vadd.f32 %v2103_v2, %v716_v61 }
  0xa8   :  { %1718 = vst [vmem:[%s6201_s3 + $0x510] sm:$0xff] %v1206_v3  ;;  %v207_v3 = vld [vmem:[%s6200_s2 + $0x5e8] sm:$0xff]  ;;  %v719_v8 = vmul.f32 %v2098_v1, %v206_v62  ;;  %v1230_v13 = vadd.f32 %v2103_v2, %v717_v0 }
  0xa9   :  { %1719 = vst [vmem:[%s6201_s3 + $0x518] sm:$0xff] %v1207_v6  ;;  %v208_v6 = vld [vmem:[%s6200_s2 + $0x5f0] sm:$0xff]  ;;  %v720_v11 = vmul.f32 %v2098_v1, %v207_v3  ;;  %v1231_v16 = vadd.f32 %v2103_v2, %v718_v5 }
  0xaa   :  { %1720 = vst [vmem:[%s6201_s3 + $0x520] sm:$0xff] %v1208_v9  ;;  %v209_v9 = vld [vmem:[%s6200_s2 + $0x5f8] sm:$0xff]  ;;  %v721_v14 = vmul.f32 %v2098_v1, %v208_v6  ;;  %v1232_v19 = vadd.f32 %v2103_v2, %v719_v8 }
  0xab   :  { %1721 = vst [vmem:[%s6201_s3 + $0x528] sm:$0xff] %v1209_v12  ;;  %v210_v12 = vld [vmem:[%s6200_s2 + $0x600] sm:$0xff]  ;;  %v722_v17 = vmul.f32 %v2098_v1, %v209_v9  ;;  %v1233_v22 = vadd.f32 %v2103_v2, %v720_v11 }
  0xac   :  { %1722 = vst [vmem:[%s6201_s3 + $0x530] sm:$0xff] %v1210_v15  ;;  %v211_v15 = vld [vmem:[%s6200_s2 + $0x608] sm:$0xff]  ;;  %v723_v20 = vmul.f32 %v2098_v1, %v210_v12  ;;  %v1234_v25 = vadd.f32 %v2103_v2, %v721_v14 }
  0xad   :  { %1723 = vst [vmem:[%s6201_s3 + $0x538] sm:$0xff] %v1211_v18  ;;  %v212_v18 = vld [vmem:[%s6200_s2 + $0x610] sm:$0xff]  ;;  %v724_v23 = vmul.f32 %v2098_v1, %v211_v15  ;;  %v1235_v28 = vadd.f32 %v2103_v2, %v722_v17 }
  0xae   :  { %1724 = vst [vmem:[%s6201_s3 + $0x540] sm:$0xff] %v1212_v21  ;;  %v213_v21 = vld [vmem:[%s6200_s2 + $0x618] sm:$0xff]  ;;  %v725_v26 = vmul.f32 %v2098_v1, %v212_v18  ;;  %v1236_v31 = vadd.f32 %v2103_v2, %v723_v20 }
  0xaf   :  { %1725 = vst [vmem:[%s6201_s3 + $0x548] sm:$0xff] %v1213_v24  ;;  %v214_v24 = vld [vmem:[%s6200_s2 + $0x620] sm:$0xff]  ;;  %v726_v29 = vmul.f32 %v2098_v1, %v213_v21  ;;  %v1237_v34 = vadd.f32 %v2103_v2, %v724_v23 }
  0xb0   :  { %1726 = vst [vmem:[%s6201_s3 + $0x550] sm:$0xff] %v1214_v27  ;;  %v215_v27 = vld [vmem:[%s6200_s2 + $0x628] sm:$0xff]  ;;  %v727_v32 = vmul.f32 %v2098_v1, %v214_v24  ;;  %v1238_v37 = vadd.f32 %v2103_v2, %v725_v26 }
  0xb1   :  { %1727 = vst [vmem:[%s6201_s3 + $0x558] sm:$0xff] %v1215_v30  ;;  %v216_v30 = vld [vmem:[%s6200_s2 + $0x630] sm:$0xff]  ;;  %v728_v35 = vmul.f32 %v2098_v1, %v215_v27  ;;  %v1239_v40 = vadd.f32 %v2103_v2, %v726_v29 }
  0xb2   :  { %1728 = vst [vmem:[%s6201_s3 + $0x560] sm:$0xff] %v1216_v33  ;;  %v217_v33 = vld [vmem:[%s6200_s2 + $0x638] sm:$0xff]  ;;  %v729_v38 = vmul.f32 %v2098_v1, %v216_v30  ;;  %v1240_v43 = vadd.f32 %v2103_v2, %v727_v32 }
  0xb3   :  { %1729 = vst [vmem:[%s6201_s3 + $0x568] sm:$0xff] %v1217_v36  ;;  %v218_v36 = vld [vmem:[%s6200_s2 + $0x640] sm:$0xff]  ;;  %v730_v41 = vmul.f32 %v2098_v1, %v217_v33  ;;  %v1241_v46 = vadd.f32 %v2103_v2, %v728_v35 }
  0xb4   :  { %1730 = vst [vmem:[%s6201_s3 + $0x570] sm:$0xff] %v1218_v39  ;;  %v219_v39 = vld [vmem:[%s6200_s2 + $0x648] sm:$0xff]  ;;  %v731_v44 = vmul.f32 %v2098_v1, %v218_v36  ;;  %v1242_v49 = vadd.f32 %v2103_v2, %v729_v38 }
  0xb5   :  { %1731 = vst [vmem:[%s6201_s3 + $0x578] sm:$0xff] %v1219_v42  ;;  %v220_v42 = vld [vmem:[%s6200_s2 + $0x650] sm:$0xff]  ;;  %v732_v47 = vmul.f32 %v2098_v1, %v219_v39  ;;  %v1243_v52 = vadd.f32 %v2103_v2, %v730_v41 }
  0xb6   :  { %1732 = vst [vmem:[%s6201_s3 + $0x580] sm:$0xff] %v1220_v45  ;;  %v221_v45 = vld [vmem:[%s6200_s2 + $0x658] sm:$0xff]  ;;  %v733_v50 = vmul.f32 %v2098_v1, %v220_v42  ;;  %v1244_v55 = vadd.f32 %v2103_v2, %v731_v44 }
  0xb7   :  { %1733 = vst [vmem:[%s6201_s3 + $0x588] sm:$0xff] %v1221_v48  ;;  %v222_v48 = vld [vmem:[%s6200_s2 + $0x660] sm:$0xff]  ;;  %v734_v53 = vmul.f32 %v2098_v1, %v221_v45  ;;  %v1245_v58 = vadd.f32 %v2103_v2, %v732_v47 }
  0xb8   :  { %1734 = vst [vmem:[%s6201_s3 + $0x590] sm:$0xff] %v1222_v51  ;;  %v223_v51 = vld [vmem:[%s6200_s2 + $0x668] sm:$0xff]  ;;  %v735_v56 = vmul.f32 %v2098_v1, %v222_v48  ;;  %v1246_v61 = vadd.f32 %v2103_v2, %v733_v50 }
  0xb9   :  { %1735 = vst [vmem:[%s6201_s3 + $0x598] sm:$0xff] %v1223_v54  ;;  %v224_v54 = vld [vmem:[%s6200_s2 + $0x670] sm:$0xff]  ;;  %v736_v59 = vmul.f32 %v2098_v1, %v223_v51  ;;  %v1247_v0 = vadd.f32 %v2103_v2, %v734_v53 }
  0xba   :  { %1736 = vst [vmem:[%s6201_s3 + $0x5a0] sm:$0xff] %v1224_v57  ;;  %v225_v57 = vld [vmem:[%s6200_s2 + $0x678] sm:$0xff]  ;;  %v737_v62 = vmul.f32 %v2098_v1, %v224_v54  ;;  %v1248_v5 = vadd.f32 %v2103_v2, %v735_v56 }
  0xbb   :  { %1737 = vst [vmem:[%s6201_s3 + $0x5a8] sm:$0xff] %v1225_v60  ;;  %v226_v60 = vld [vmem:[%s6200_s2 + $0x680] sm:$0xff]  ;;  %v738_v3 = vmul.f32 %v2098_v1, %v225_v57  ;;  %v1249_v8 = vadd.f32 %v2103_v2, %v736_v59 }
  0xbc   :  { %1738 = vst [vmem:[%s6201_s3 + $0x5b0] sm:$0xff] %v1226_v63  ;;  %v227_v63 = vld [vmem:[%s6200_s2 + $0x688] sm:$0xff]  ;;  %v739_v6 = vmul.f32 %v2098_v1, %v226_v60  ;;  %v1250_v11 = vadd.f32 %v2103_v2, %v737_v62 }
  0xbd   :  { %1739 = vst [vmem:[%s6201_s3 + $0x5b8] sm:$0xff] %v1227_v4  ;;  %v228_v4 = vld [vmem:[%s6200_s2 + $0x690] sm:$0xff]  ;;  %v740_v9 = vmul.f32 %v2098_v1, %v227_v63  ;;  %v1251_v14 = vadd.f32 %v2103_v2, %v738_v3 }
  0xbe   :  { %1740 = vst [vmem:[%s6201_s3 + $0x5c0] sm:$0xff] %v1228_v7  ;;  %v229_v7 = vld [vmem:[%s6200_s2 + $0x698] sm:$0xff]  ;;  %v741_v12 = vmul.f32 %v2098_v1, %v228_v4  ;;  %v1252_v17 = vadd.f32 %v2103_v2, %v739_v6 }
  0xbf   :  { %1741 = vst [vmem:[%s6201_s3 + $0x5c8] sm:$0xff] %v1229_v10  ;;  %v230_v10 = vld [vmem:[%s6200_s2 + $0x6a0] sm:$0xff]  ;;  %v742_v15 = vmul.f32 %v2098_v1, %v229_v7  ;;  %v1253_v20 = vadd.f32 %v2103_v2, %v740_v9 }
  0xc0   :  { %1742 = vst [vmem:[%s6201_s3 + $0x5d0] sm:$0xff] %v1230_v13  ;;  %v231_v13 = vld [vmem:[%s6200_s2 + $0x6a8] sm:$0xff]  ;;  %v743_v18 = vmul.f32 %v2098_v1, %v230_v10  ;;  %v1254_v23 = vadd.f32 %v2103_v2, %v741_v12 }
  0xc1   :  { %1743 = vst [vmem:[%s6201_s3 + $0x5d8] sm:$0xff] %v1231_v16  ;;  %v232_v16 = vld [vmem:[%s6200_s2 + $0x6b0] sm:$0xff]  ;;  %v744_v21 = vmul.f32 %v2098_v1, %v231_v13  ;;  %v1255_v26 = vadd.f32 %v2103_v2, %v742_v15 }
  0xc2   :  { %1744 = vst [vmem:[%s6201_s3 + $0x5e0] sm:$0xff] %v1232_v19  ;;  %v233_v19 = vld [vmem:[%s6200_s2 + $0x6b8] sm:$0xff]  ;;  %v745_v24 = vmul.f32 %v2098_v1, %v232_v16  ;;  %v1256_v29 = vadd.f32 %v2103_v2, %v743_v18 }
  0xc3   :  { %1745 = vst [vmem:[%s6201_s3 + $0x5e8] sm:$0xff] %v1233_v22  ;;  %v234_v22 = vld [vmem:[%s6200_s2 + $0x6c0] sm:$0xff]  ;;  %v746_v27 = vmul.f32 %v2098_v1, %v233_v19  ;;  %v1257_v32 = vadd.f32 %v2103_v2, %v744_v21 }
  0xc4   :  { %1746 = vst [vmem:[%s6201_s3 + $0x5f0] sm:$0xff] %v1234_v25  ;;  %v235_v25 = vld [vmem:[%s6200_s2 + $0x6c8] sm:$0xff]  ;;  %v747_v30 = vmul.f32 %v2098_v1, %v234_v22  ;;  %v1258_v35 = vadd.f32 %v2103_v2, %v745_v24 }
  0xc5   :  { %1747 = vst [vmem:[%s6201_s3 + $0x5f8] sm:$0xff] %v1235_v28  ;;  %v236_v28 = vld [vmem:[%s6200_s2 + $0x6d0] sm:$0xff]  ;;  %v748_v33 = vmul.f32 %v2098_v1, %v235_v25  ;;  %v1259_v38 = vadd.f32 %v2103_v2, %v746_v27 }
  0xc6   :  { %1748 = vst [vmem:[%s6201_s3 + $0x600] sm:$0xff] %v1236_v31  ;;  %v237_v31 = vld [vmem:[%s6200_s2 + $0x6d8] sm:$0xff]  ;;  %v749_v36 = vmul.f32 %v2098_v1, %v236_v28  ;;  %v1260_v41 = vadd.f32 %v2103_v2, %v747_v30 }
  0xc7   :  { %1749 = vst [vmem:[%s6201_s3 + $0x608] sm:$0xff] %v1237_v34  ;;  %v238_v34 = vld [vmem:[%s6200_s2 + $0x6e0] sm:$0xff]  ;;  %v750_v39 = vmul.f32 %v2098_v1, %v237_v31  ;;  %v1261_v44 = vadd.f32 %v2103_v2, %v748_v33 }
  0xc8   :  { %1750 = vst [vmem:[%s6201_s3 + $0x610] sm:$0xff] %v1238_v37  ;;  %v239_v37 = vld [vmem:[%s6200_s2 + $0x6e8] sm:$0xff]  ;;  %v751_v42 = vmul.f32 %v2098_v1, %v238_v34  ;;  %v1262_v47 = vadd.f32 %v2103_v2, %v749_v36 }
  0xc9   :  { %1751 = vst [vmem:[%s6201_s3 + $0x618] sm:$0xff] %v1239_v40  ;;  %v240_v40 = vld [vmem:[%s6200_s2 + $0x6f0] sm:$0xff]  ;;  %v752_v45 = vmul.f32 %v2098_v1, %v239_v37  ;;  %v1263_v50 = vadd.f32 %v2103_v2, %v750_v39 }
  0xca   :  { %1752 = vst [vmem:[%s6201_s3 + $0x620] sm:$0xff] %v1240_v43  ;;  %v241_v43 = vld [vmem:[%s6200_s2 + $0x6f8] sm:$0xff]  ;;  %v753_v48 = vmul.f32 %v2098_v1, %v240_v40  ;;  %v1264_v53 = vadd.f32 %v2103_v2, %v751_v42 }
  0xcb   :  { %1753 = vst [vmem:[%s6201_s3 + $0x628] sm:$0xff] %v1241_v46  ;;  %v242_v46 = vld [vmem:[%s6200_s2 + $0x700] sm:$0xff]  ;;  %v754_v51 = vmul.f32 %v2098_v1, %v241_v43  ;;  %v1265_v56 = vadd.f32 %v2103_v2, %v752_v45 }
  0xcc   :  { %1754 = vst [vmem:[%s6201_s3 + $0x630] sm:$0xff] %v1242_v49  ;;  %v243_v49 = vld [vmem:[%s6200_s2 + $0x708] sm:$0xff]  ;;  %v755_v54 = vmul.f32 %v2098_v1, %v242_v46  ;;  %v1266_v59 = vadd.f32 %v2103_v2, %v753_v48 }
  0xcd   :  { %1755 = vst [vmem:[%s6201_s3 + $0x638] sm:$0xff] %v1243_v52  ;;  %v244_v52 = vld [vmem:[%s6200_s2 + $0x710] sm:$0xff]  ;;  %v756_v57 = vmul.f32 %v2098_v1, %v243_v49  ;;  %v1267_v62 = vadd.f32 %v2103_v2, %v754_v51 }
  0xce   :  { %1756 = vst [vmem:[%s6201_s3 + $0x640] sm:$0xff] %v1244_v55  ;;  %v245_v55 = vld [vmem:[%s6200_s2 + $0x718] sm:$0xff]  ;;  %v757_v60 = vmul.f32 %v2098_v1, %v244_v52  ;;  %v1268_v3 = vadd.f32 %v2103_v2, %v755_v54 }
  0xcf   :  { %1757 = vst [vmem:[%s6201_s3 + $0x648] sm:$0xff] %v1245_v58  ;;  %v246_v58 = vld [vmem:[%s6200_s2 + $0x720] sm:$0xff]  ;;  %v758_v63 = vmul.f32 %v2098_v1, %v245_v55  ;;  %v1269_v6 = vadd.f32 %v2103_v2, %v756_v57 }
  0xd0   :  { %1758 = vst [vmem:[%s6201_s3 + $0x650] sm:$0xff] %v1246_v61  ;;  %v247_v61 = vld [vmem:[%s6200_s2 + $0x728] sm:$0xff]  ;;  %v759_v4 = vmul.f32 %v2098_v1, %v246_v58  ;;  %v1270_v9 = vadd.f32 %v2103_v2, %v757_v60 }
  0xd1   :  { %1759 = vst [vmem:[%s6201_s3 + $0x658] sm:$0xff] %v1247_v0  ;;  %v248_v0 = vld [vmem:[%s6200_s2 + $0x730] sm:$0xff]  ;;  %v760_v7 = vmul.f32 %v2098_v1, %v247_v61  ;;  %v1271_v12 = vadd.f32 %v2103_v2, %v758_v63 }
  0xd2   :  { %1760 = vst [vmem:[%s6201_s3 + $0x660] sm:$0xff] %v1248_v5  ;;  %v249_v5 = vld [vmem:[%s6200_s2 + $0x738] sm:$0xff]  ;;  %v761_v10 = vmul.f32 %v2098_v1, %v248_v0  ;;  %v1272_v15 = vadd.f32 %v2103_v2, %v759_v4 }
  0xd3   :  { %1761 = vst [vmem:[%s6201_s3 + $0x668] sm:$0xff] %v1249_v8  ;;  %v250_v8 = vld [vmem:[%s6200_s2 + $0x740] sm:$0xff]  ;;  %v762_v13 = vmul.f32 %v2098_v1, %v249_v5  ;;  %v1273_v18 = vadd.f32 %v2103_v2, %v760_v7 }
  0xd4   :  { %1762 = vst [vmem:[%s6201_s3 + $0x670] sm:$0xff] %v1250_v11  ;;  %v251_v11 = vld [vmem:[%s6200_s2 + $0x748] sm:$0xff]  ;;  %v763_v16 = vmul.f32 %v2098_v1, %v250_v8  ;;  %v1274_v21 = vadd.f32 %v2103_v2, %v761_v10 }
  0xd5   :  { %1763 = vst [vmem:[%s6201_s3 + $0x678] sm:$0xff] %v1251_v14  ;;  %v252_v14 = vld [vmem:[%s6200_s2 + $0x750] sm:$0xff]  ;;  %v764_v19 = vmul.f32 %v2098_v1, %v251_v11  ;;  %v1275_v24 = vadd.f32 %v2103_v2, %v762_v13 }
  0xd6   :  { %1764 = vst [vmem:[%s6201_s3 + $0x680] sm:$0xff] %v1252_v17  ;;  %v253_v17 = vld [vmem:[%s6200_s2 + $0x758] sm:$0xff]  ;;  %v765_v22 = vmul.f32 %v2098_v1, %v252_v14  ;;  %v1276_v27 = vadd.f32 %v2103_v2, %v763_v16 }
  0xd7   :  { %1765 = vst [vmem:[%s6201_s3 + $0x688] sm:$0xff] %v1253_v20  ;;  %v254_v20 = vld [vmem:[%s6200_s2 + $0x760] sm:$0xff]  ;;  %v766_v25 = vmul.f32 %v2098_v1, %v253_v17  ;;  %v1277_v30 = vadd.f32 %v2103_v2, %v764_v19 }
  0xd8   :  { %1766 = vst [vmem:[%s6201_s3 + $0x690] sm:$0xff] %v1254_v23  ;;  %v255_v23 = vld [vmem:[%s6200_s2 + $0x768] sm:$0xff]  ;;  %v767_v28 = vmul.f32 %v2098_v1, %v254_v20  ;;  %v1278_v33 = vadd.f32 %v2103_v2, %v765_v22 }
  0xd9   :  { %1767 = vst [vmem:[%s6201_s3 + $0x698] sm:$0xff] %v1255_v26  ;;  %v256_v26 = vld [vmem:[%s6200_s2 + $0x770] sm:$0xff]  ;;  %v768_v31 = vmul.f32 %v2098_v1, %v255_v23  ;;  %v1279_v36 = vadd.f32 %v2103_v2, %v766_v25 }
  0xda   :  { %1768 = vst [vmem:[%s6201_s3 + $0x6a0] sm:$0xff] %v1256_v29  ;;  %v257_v29 = vld [vmem:[%s6200_s2 + $0x778] sm:$0xff]  ;;  %v769_v34 = vmul.f32 %v2098_v1, %v256_v26  ;;  %v1280_v39 = vadd.f32 %v2103_v2, %v767_v28 }
  0xdb   :  { %1769 = vst [vmem:[%s6201_s3 + $0x6a8] sm:$0xff] %v1257_v32  ;;  %v258_v32 = vld [vmem:[%s6200_s2 + $0x780] sm:$0xff]  ;;  %v770_v37 = vmul.f32 %v2098_v1, %v257_v29  ;;  %v1281_v42 = vadd.f32 %v2103_v2, %v768_v31 }
  0xdc   :  { %1770 = vst [vmem:[%s6201_s3 + $0x6b0] sm:$0xff] %v1258_v35  ;;  %v259_v35 = vld [vmem:[%s6200_s2 + $0x788] sm:$0xff]  ;;  %v771_v40 = vmul.f32 %v2098_v1, %v258_v32  ;;  %v1282_v45 = vadd.f32 %v2103_v2, %v769_v34 }
  0xdd   :  { %1771 = vst [vmem:[%s6201_s3 + $0x6b8] sm:$0xff] %v1259_v38  ;;  %v260_v38 = vld [vmem:[%s6200_s2 + $0x790] sm:$0xff]  ;;  %v772_v43 = vmul.f32 %v2098_v1, %v259_v35  ;;  %v1283_v48 = vadd.f32 %v2103_v2, %v770_v37 }
  0xde   :  { %1772 = vst [vmem:[%s6201_s3 + $0x6c0] sm:$0xff] %v1260_v41  ;;  %v261_v41 = vld [vmem:[%s6200_s2 + $0x798] sm:$0xff]  ;;  %v773_v46 = vmul.f32 %v2098_v1, %v260_v38  ;;  %v1284_v51 = vadd.f32 %v2103_v2, %v771_v40 }
  0xdf   :  { %1773 = vst [vmem:[%s6201_s3 + $0x6c8] sm:$0xff] %v1261_v44  ;;  %v262_v44 = vld [vmem:[%s6200_s2 + $0x7a0] sm:$0xff]  ;;  %v774_v49 = vmul.f32 %v2098_v1, %v261_v41  ;;  %v1285_v54 = vadd.f32 %v2103_v2, %v772_v43 }
  0xe0   :  { %1774 = vst [vmem:[%s6201_s3 + $0x6d0] sm:$0xff] %v1262_v47  ;;  %v263_v47 = vld [vmem:[%s6200_s2 + $0x7a8] sm:$0xff]  ;;  %v775_v52 = vmul.f32 %v2098_v1, %v262_v44  ;;  %v1286_v57 = vadd.f32 %v2103_v2, %v773_v46 }
  0xe1   :  { %1775 = vst [vmem:[%s6201_s3 + $0x6d8] sm:$0xff] %v1263_v50  ;;  %v264_v50 = vld [vmem:[%s6200_s2 + $0x7b0] sm:$0xff]  ;;  %v776_v55 = vmul.f32 %v2098_v1, %v263_v47  ;;  %v1287_v60 = vadd.f32 %v2103_v2, %v774_v49 }
  0xe2   :  { %1776 = vst [vmem:[%s6201_s3 + $0x6e0] sm:$0xff] %v1264_v53  ;;  %v265_v53 = vld [vmem:[%s6200_s2 + $0x7b8] sm:$0xff]  ;;  %v777_v58 = vmul.f32 %v2098_v1, %v264_v50  ;;  %v1288_v63 = vadd.f32 %v2103_v2, %v775_v52 }
  0xe3   :  { %1777 = vst [vmem:[%s6201_s3 + $0x6e8] sm:$0xff] %v1265_v56  ;;  %v266_v56 = vld [vmem:[%s6200_s2 + $0x7c0] sm:$0xff]  ;;  %v778_v61 = vmul.f32 %v2098_v1, %v265_v53  ;;  %v1289_v4 = vadd.f32 %v2103_v2, %v776_v55 }
  0xe4   :  { %1778 = vst [vmem:[%s6201_s3 + $0x6f0] sm:$0xff] %v1266_v59  ;;  %v267_v59 = vld [vmem:[%s6200_s2 + $0x7c8] sm:$0xff]  ;;  %v779_v0 = vmul.f32 %v2098_v1, %v266_v56  ;;  %v1290_v7 = vadd.f32 %v2103_v2, %v777_v58 }
  0xe5   :  { %1779 = vst [vmem:[%s6201_s3 + $0x6f8] sm:$0xff] %v1267_v62  ;;  %v268_v62 = vld [vmem:[%s6200_s2 + $0x7d0] sm:$0xff]  ;;  %v780_v5 = vmul.f32 %v2098_v1, %v267_v59  ;;  %v1291_v10 = vadd.f32 %v2103_v2, %v778_v61 }
  0xe6   :  { %1780 = vst [vmem:[%s6201_s3 + $0x700] sm:$0xff] %v1268_v3  ;;  %v269_v3 = vld [vmem:[%s6200_s2 + $0x7d8] sm:$0xff]  ;;  %v781_v8 = vmul.f32 %v2098_v1, %v268_v62  ;;  %v1292_v13 = vadd.f32 %v2103_v2, %v779_v0 }
  0xe7   :  { %1781 = vst [vmem:[%s6201_s3 + $0x708] sm:$0xff] %v1269_v6  ;;  %v270_v6 = vld [vmem:[%s6200_s2 + $0x7e0] sm:$0xff]  ;;  %v782_v11 = vmul.f32 %v2098_v1, %v269_v3  ;;  %v1293_v16 = vadd.f32 %v2103_v2, %v780_v5 }
  0xe8   :  { %1782 = vst [vmem:[%s6201_s3 + $0x710] sm:$0xff] %v1270_v9  ;;  %v271_v9 = vld [vmem:[%s6200_s2 + $0x7e8] sm:$0xff]  ;;  %v783_v14 = vmul.f32 %v2098_v1, %v270_v6  ;;  %v1294_v19 = vadd.f32 %v2103_v2, %v781_v8 }
  0xe9   :  { %1783 = vst [vmem:[%s6201_s3 + $0x718] sm:$0xff] %v1271_v12  ;;  %v272_v12 = vld [vmem:[%s6200_s2 + $0x7f0] sm:$0xff]  ;;  %v784_v17 = vmul.f32 %v2098_v1, %v271_v9  ;;  %v1295_v22 = vadd.f32 %v2103_v2, %v782_v11 }
  0xea   :  { %1784 = vst [vmem:[%s6201_s3 + $0x720] sm:$0xff] %v1272_v15  ;;  %v273_v15 = vld [vmem:[%s6200_s2 + $0x7f8] sm:$0xff]  ;;  %v785_v20 = vmul.f32 %v2098_v1, %v272_v12  ;;  %v1296_v25 = vadd.f32 %v2103_v2, %v783_v14 }
  0xeb   :  { %1785 = vst [vmem:[%s6201_s3 + $0x728] sm:$0xff] %v1273_v18  ;;  %v274_v18 = vld [vmem:[%s6200_s2 + $0x800] sm:$0xff]  ;;  %v786_v23 = vmul.f32 %v2098_v1, %v273_v15  ;;  %v1297_v28 = vadd.f32 %v2103_v2, %v784_v17 }
  0xec   :  { %1786 = vst [vmem:[%s6201_s3 + $0x730] sm:$0xff] %v1274_v21  ;;  %v275_v21 = vld [vmem:[%s6200_s2 + $0x808] sm:$0xff]  ;;  %v787_v26 = vmul.f32 %v2098_v1, %v274_v18  ;;  %v1298_v31 = vadd.f32 %v2103_v2, %v785_v20 }
  0xed   :  { %1787 = vst [vmem:[%s6201_s3 + $0x738] sm:$0xff] %v1275_v24  ;;  %v276_v24 = vld [vmem:[%s6200_s2 + $0x810] sm:$0xff]  ;;  %v788_v29 = vmul.f32 %v2098_v1, %v275_v21  ;;  %v1299_v34 = vadd.f32 %v2103_v2, %v786_v23 }
  0xee   :  { %1788 = vst [vmem:[%s6201_s3 + $0x740] sm:$0xff] %v1276_v27  ;;  %v277_v27 = vld [vmem:[%s6200_s2 + $0x818] sm:$0xff]  ;;  %v789_v32 = vmul.f32 %v2098_v1, %v276_v24  ;;  %v1300_v37 = vadd.f32 %v2103_v2, %v787_v26 }
  0xef   :  { %1789 = vst [vmem:[%s6201_s3 + $0x748] sm:$0xff] %v1277_v30  ;;  %v278_v30 = vld [vmem:[%s6200_s2 + $0x820] sm:$0xff]  ;;  %v790_v35 = vmul.f32 %v2098_v1, %v277_v27  ;;  %v1301_v40 = vadd.f32 %v2103_v2, %v788_v29 }
  0xf0   :  { %1790 = vst [vmem:[%s6201_s3 + $0x750] sm:$0xff] %v1278_v33  ;;  %v279_v33 = vld [vmem:[%s6200_s2 + $0x828] sm:$0xff]  ;;  %v791_v38 = vmul.f32 %v2098_v1, %v278_v30  ;;  %v1302_v43 = vadd.f32 %v2103_v2, %v789_v32 }
  0xf1   :  { %1791 = vst [vmem:[%s6201_s3 + $0x758] sm:$0xff] %v1279_v36  ;;  %v280_v36 = vld [vmem:[%s6200_s2 + $0x830] sm:$0xff]  ;;  %v792_v41 = vmul.f32 %v2098_v1, %v279_v33  ;;  %v1303_v46 = vadd.f32 %v2103_v2, %v790_v35 }
  0xf2   :  { %1792 = vst [vmem:[%s6201_s3 + $0x760] sm:$0xff] %v1280_v39  ;;  %v281_v39 = vld [vmem:[%s6200_s2 + $0x838] sm:$0xff]  ;;  %v793_v44 = vmul.f32 %v2098_v1, %v280_v36  ;;  %v1304_v49 = vadd.f32 %v2103_v2, %v791_v38 }
  0xf3   :  { %1793 = vst [vmem:[%s6201_s3 + $0x768] sm:$0xff] %v1281_v42  ;;  %v282_v42 = vld [vmem:[%s6200_s2 + $0x840] sm:$0xff]  ;;  %v794_v47 = vmul.f32 %v2098_v1, %v281_v39  ;;  %v1305_v52 = vadd.f32 %v2103_v2, %v792_v41 }
  0xf4   :  { %1794 = vst [vmem:[%s6201_s3 + $0x770] sm:$0xff] %v1282_v45  ;;  %v283_v45 = vld [vmem:[%s6200_s2 + $0x848] sm:$0xff]  ;;  %v795_v50 = vmul.f32 %v2098_v1, %v282_v42  ;;  %v1306_v55 = vadd.f32 %v2103_v2, %v793_v44 }
  0xf5   :  { %1795 = vst [vmem:[%s6201_s3 + $0x778] sm:$0xff] %v1283_v48  ;;  %v284_v48 = vld [vmem:[%s6200_s2 + $0x850] sm:$0xff]  ;;  %v796_v53 = vmul.f32 %v2098_v1, %v283_v45  ;;  %v1307_v58 = vadd.f32 %v2103_v2, %v794_v47 }
  0xf6   :  { %1796 = vst [vmem:[%s6201_s3 + $0x780] sm:$0xff] %v1284_v51  ;;  %v285_v51 = vld [vmem:[%s6200_s2 + $0x858] sm:$0xff]  ;;  %v797_v56 = vmul.f32 %v2098_v1, %v284_v48  ;;  %v1308_v61 = vadd.f32 %v2103_v2, %v795_v50 }
  0xf7   :  { %1797 = vst [vmem:[%s6201_s3 + $0x788] sm:$0xff] %v1285_v54  ;;  %v286_v54 = vld [vmem:[%s6200_s2 + $0x860] sm:$0xff]  ;;  %v798_v59 = vmul.f32 %v2098_v1, %v285_v51  ;;  %v1309_v0 = vadd.f32 %v2103_v2, %v796_v53 }
  0xf8   :  { %1798 = vst [vmem:[%s6201_s3 + $0x790] sm:$0xff] %v1286_v57  ;;  %v287_v57 = vld [vmem:[%s6200_s2 + $0x868] sm:$0xff]  ;;  %v799_v62 = vmul.f32 %v2098_v1, %v286_v54  ;;  %v1310_v5 = vadd.f32 %v2103_v2, %v797_v56 }
  0xf9   :  { %1799 = vst [vmem:[%s6201_s3 + $0x798] sm:$0xff] %v1287_v60  ;;  %v288_v60 = vld [vmem:[%s6200_s2 + $0x870] sm:$0xff]  ;;  %v800_v3 = vmul.f32 %v2098_v1, %v287_v57  ;;  %v1311_v8 = vadd.f32 %v2103_v2, %v798_v59 }
  0xfa   :  { %1800 = vst [vmem:[%s6201_s3 + $0x7a0] sm:$0xff] %v1288_v63  ;;  %v289_v63 = vld [vmem:[%s6200_s2 + $0x878] sm:$0xff]  ;;  %v801_v6 = vmul.f32 %v2098_v1, %v288_v60  ;;  %v1312_v11 = vadd.f32 %v2103_v2, %v799_v62 }
  0xfb   :  { %1801 = vst [vmem:[%s6201_s3 + $0x7a8] sm:$0xff] %v1289_v4  ;;  %v290_v4 = vld [vmem:[%s6200_s2 + $0x880] sm:$0xff]  ;;  %v802_v9 = vmul.f32 %v2098_v1, %v289_v63  ;;  %v1313_v14 = vadd.f32 %v2103_v2, %v800_v3 }
  0xfc   :  { %1802 = vst [vmem:[%s6201_s3 + $0x7b0] sm:$0xff] %v1290_v7  ;;  %v291_v7 = vld [vmem:[%s6200_s2 + $0x888] sm:$0xff]  ;;  %v803_v12 = vmul.f32 %v2098_v1, %v290_v4  ;;  %v1314_v17 = vadd.f32 %v2103_v2, %v801_v6 }
  0xfd   :  { %1803 = vst [vmem:[%s6201_s3 + $0x7b8] sm:$0xff] %v1291_v10  ;;  %v292_v10 = vld [vmem:[%s6200_s2 + $0x890] sm:$0xff]  ;;  %v804_v15 = vmul.f32 %v2098_v1, %v291_v7  ;;  %v1315_v20 = vadd.f32 %v2103_v2, %v802_v9 }
  0xfe   :  { %1804 = vst [vmem:[%s6201_s3 + $0x7c0] sm:$0xff] %v1292_v13  ;;  %v293_v13 = vld [vmem:[%s6200_s2 + $0x898] sm:$0xff]  ;;  %v805_v18 = vmul.f32 %v2098_v1, %v292_v10  ;;  %v1316_v23 = vadd.f32 %v2103_v2, %v803_v12 }
  0xff   :  { %1805 = vst [vmem:[%s6201_s3 + $0x7c8] sm:$0xff] %v1293_v16  ;;  %v294_v16 = vld [vmem:[%s6200_s2 + $0x8a0] sm:$0xff]  ;;  %v806_v21 = vmul.f32 %v2098_v1, %v293_v13  ;;  %v1317_v26 = vadd.f32 %v2103_v2, %v804_v15 }
 0x100   :  { %1806 = vst [vmem:[%s6201_s3 + $0x7d0] sm:$0xff] %v1294_v19  ;;  %v295_v19 = vld [vmem:[%s6200_s2 + $0x8a8] sm:$0xff]  ;;  %v807_v24 = vmul.f32 %v2098_v1, %v294_v16  ;;  %v1318_v29 = vadd.f32 %v2103_v2, %v805_v18 }
 0x101   :  { %1807 = vst [vmem:[%s6201_s3 + $0x7d8] sm:$0xff] %v1295_v22  ;;  %v296_v22 = vld [vmem:[%s6200_s2 + $0x8b0] sm:$0xff]  ;;  %v808_v27 = vmul.f32 %v2098_v1, %v295_v19  ;;  %v1319_v32 = vadd.f32 %v2103_v2, %v806_v21 }
 0x102   :  { %1808 = vst [vmem:[%s6201_s3 + $0x7e0] sm:$0xff] %v1296_v25  ;;  %v297_v25 = vld [vmem:[%s6200_s2 + $0x8b8] sm:$0xff]  ;;  %v809_v30 = vmul.f32 %v2098_v1, %v296_v22  ;;  %v1320_v35 = vadd.f32 %v2103_v2, %v807_v24 }
 0x103   :  { %1809 = vst [vmem:[%s6201_s3 + $0x7e8] sm:$0xff] %v1297_v28  ;;  %v298_v28 = vld [vmem:[%s6200_s2 + $0x8c0] sm:$0xff]  ;;  %v810_v33 = vmul.f32 %v2098_v1, %v297_v25  ;;  %v1321_v38 = vadd.f32 %v2103_v2, %v808_v27 }
 0x104   :  { %1810 = vst [vmem:[%s6201_s3 + $0x7f0] sm:$0xff] %v1298_v31  ;;  %v299_v31 = vld [vmem:[%s6200_s2 + $0x8c8] sm:$0xff]  ;;  %v811_v36 = vmul.f32 %v2098_v1, %v298_v28  ;;  %v1322_v41 = vadd.f32 %v2103_v2, %v809_v30 }
 0x105   :  { %1811 = vst [vmem:[%s6201_s3 + $0x7f8] sm:$0xff] %v1299_v34  ;;  %v300_v34 = vld [vmem:[%s6200_s2 + $0x8d0] sm:$0xff]  ;;  %v812_v39 = vmul.f32 %v2098_v1, %v299_v31  ;;  %v1323_v44 = vadd.f32 %v2103_v2, %v810_v33 }
 0x106   :  { %1812 = vst [vmem:[%s6201_s3 + $0x800] sm:$0xff] %v1300_v37  ;;  %v301_v37 = vld [vmem:[%s6200_s2 + $0x8d8] sm:$0xff]  ;;  %v813_v42 = vmul.f32 %v2098_v1, %v300_v34  ;;  %v1324_v47 = vadd.f32 %v2103_v2, %v811_v36 }
 0x107   :  { %1813 = vst [vmem:[%s6201_s3 + $0x808] sm:$0xff] %v1301_v40  ;;  %v302_v40 = vld [vmem:[%s6200_s2 + $0x8e0] sm:$0xff]  ;;  %v814_v45 = vmul.f32 %v2098_v1, %v301_v37  ;;  %v1325_v50 = vadd.f32 %v2103_v2, %v812_v39 }
 0x108   :  { %1814 = vst [vmem:[%s6201_s3 + $0x810] sm:$0xff] %v1302_v43  ;;  %v303_v43 = vld [vmem:[%s6200_s2 + $0x8e8] sm:$0xff]  ;;  %v815_v48 = vmul.f32 %v2098_v1, %v302_v40  ;;  %v1326_v53 = vadd.f32 %v2103_v2, %v813_v42 }
 0x109   :  { %1815 = vst [vmem:[%s6201_s3 + $0x818] sm:$0xff] %v1303_v46  ;;  %v304_v46 = vld [vmem:[%s6200_s2 + $0x8f0] sm:$0xff]  ;;  %v816_v51 = vmul.f32 %v2098_v1, %v303_v43  ;;  %v1327_v56 = vadd.f32 %v2103_v2, %v814_v45 }
 0x10a   :  { %1816 = vst [vmem:[%s6201_s3 + $0x820] sm:$0xff] %v1304_v49  ;;  %v305_v49 = vld [vmem:[%s6200_s2 + $0x8f8] sm:$0xff]  ;;  %v817_v54 = vmul.f32 %v2098_v1, %v304_v46  ;;  %v1328_v59 = vadd.f32 %v2103_v2, %v815_v48 }
 0x10b   :  { %1817 = vst [vmem:[%s6201_s3 + $0x828] sm:$0xff] %v1305_v52  ;;  %v306_v52 = vld [vmem:[%s6200_s2 + $0x900] sm:$0xff]  ;;  %v818_v57 = vmul.f32 %v2098_v1, %v305_v49  ;;  %v1329_v62 = vadd.f32 %v2103_v2, %v816_v51 }
 0x10c   :  { %1818 = vst [vmem:[%s6201_s3 + $0x830] sm:$0xff] %v1306_v55  ;;  %v307_v55 = vld [vmem:[%s6200_s2 + $0x908] sm:$0xff]  ;;  %v819_v60 = vmul.f32 %v2098_v1, %v306_v52  ;;  %v1330_v3 = vadd.f32 %v2103_v2, %v817_v54 }
 0x10d   :  { %1819 = vst [vmem:[%s6201_s3 + $0x838] sm:$0xff] %v1307_v58  ;;  %v308_v58 = vld [vmem:[%s6200_s2 + $0x910] sm:$0xff]  ;;  %v820_v63 = vmul.f32 %v2098_v1, %v307_v55  ;;  %v1331_v6 = vadd.f32 %v2103_v2, %v818_v57 }
 0x10e   :  { %1820 = vst [vmem:[%s6201_s3 + $0x840] sm:$0xff] %v1308_v61  ;;  %v309_v61 = vld [vmem:[%s6200_s2 + $0x918] sm:$0xff]  ;;  %v821_v4 = vmul.f32 %v2098_v1, %v308_v58  ;;  %v1332_v9 = vadd.f32 %v2103_v2, %v819_v60 }
 0x10f   :  { %1821 = vst [vmem:[%s6201_s3 + $0x848] sm:$0xff] %v1309_v0  ;;  %v310_v0 = vld [vmem:[%s6200_s2 + $0x920] sm:$0xff]  ;;  %v822_v7 = vmul.f32 %v2098_v1, %v309_v61  ;;  %v1333_v12 = vadd.f32 %v2103_v2, %v820_v63 }
 0x110   :  { %1822 = vst [vmem:[%s6201_s3 + $0x850] sm:$0xff] %v1310_v5  ;;  %v311_v5 = vld [vmem:[%s6200_s2 + $0x928] sm:$0xff]  ;;  %v823_v10 = vmul.f32 %v2098_v1, %v310_v0  ;;  %v1334_v15 = vadd.f32 %v2103_v2, %v821_v4 }
 0x111   :  { %1823 = vst [vmem:[%s6201_s3 + $0x858] sm:$0xff] %v1311_v8  ;;  %v312_v8 = vld [vmem:[%s6200_s2 + $0x930] sm:$0xff]  ;;  %v824_v13 = vmul.f32 %v2098_v1, %v311_v5  ;;  %v1335_v18 = vadd.f32 %v2103_v2, %v822_v7 }
 0x112   :  { %1824 = vst [vmem:[%s6201_s3 + $0x860] sm:$0xff] %v1312_v11  ;;  %v313_v11 = vld [vmem:[%s6200_s2 + $0x938] sm:$0xff]  ;;  %v825_v16 = vmul.f32 %v2098_v1, %v312_v8  ;;  %v1336_v21 = vadd.f32 %v2103_v2, %v823_v10 }
 0x113   :  { %1825 = vst [vmem:[%s6201_s3 + $0x868] sm:$0xff] %v1313_v14  ;;  %v314_v14 = vld [vmem:[%s6200_s2 + $0x940] sm:$0xff]  ;;  %v826_v19 = vmul.f32 %v2098_v1, %v313_v11  ;;  %v1337_v24 = vadd.f32 %v2103_v2, %v824_v13 }
 0x114   :  { %1826 = vst [vmem:[%s6201_s3 + $0x870] sm:$0xff] %v1314_v17  ;;  %v315_v17 = vld [vmem:[%s6200_s2 + $0x948] sm:$0xff]  ;;  %v827_v22 = vmul.f32 %v2098_v1, %v314_v14  ;;  %v1338_v27 = vadd.f32 %v2103_v2, %v825_v16 }
 0x115   :  { %1827 = vst [vmem:[%s6201_s3 + $0x878] sm:$0xff] %v1315_v20  ;;  %v316_v20 = vld [vmem:[%s6200_s2 + $0x950] sm:$0xff]  ;;  %v828_v25 = vmul.f32 %v2098_v1, %v315_v17  ;;  %v1339_v30 = vadd.f32 %v2103_v2, %v826_v19 }
 0x116   :  { %1828 = vst [vmem:[%s6201_s3 + $0x880] sm:$0xff] %v1316_v23  ;;  %v317_v23 = vld [vmem:[%s6200_s2 + $0x958] sm:$0xff]  ;;  %v829_v28 = vmul.f32 %v2098_v1, %v316_v20  ;;  %v1340_v33 = vadd.f32 %v2103_v2, %v827_v22 }
 0x117   :  { %1829 = vst [vmem:[%s6201_s3 + $0x888] sm:$0xff] %v1317_v26  ;;  %v318_v26 = vld [vmem:[%s6200_s2 + $0x960] sm:$0xff]  ;;  %v830_v31 = vmul.f32 %v2098_v1, %v317_v23  ;;  %v1341_v36 = vadd.f32 %v2103_v2, %v828_v25 }
 0x118   :  { %1830 = vst [vmem:[%s6201_s3 + $0x890] sm:$0xff] %v1318_v29  ;;  %v319_v29 = vld [vmem:[%s6200_s2 + $0x968] sm:$0xff]  ;;  %v831_v34 = vmul.f32 %v2098_v1, %v318_v26  ;;  %v1342_v39 = vadd.f32 %v2103_v2, %v829_v28 }
 0x119   :  { %1831 = vst [vmem:[%s6201_s3 + $0x898] sm:$0xff] %v1319_v32  ;;  %v320_v32 = vld [vmem:[%s6200_s2 + $0x970] sm:$0xff]  ;;  %v832_v37 = vmul.f32 %v2098_v1, %v319_v29  ;;  %v1343_v42 = vadd.f32 %v2103_v2, %v830_v31 }
 0x11a   :  { %1832 = vst [vmem:[%s6201_s3 + $0x8a0] sm:$0xff] %v1320_v35  ;;  %v321_v35 = vld [vmem:[%s6200_s2 + $0x978] sm:$0xff]  ;;  %v833_v40 = vmul.f32 %v2098_v1, %v320_v32  ;;  %v1344_v45 = vadd.f32 %v2103_v2, %v831_v34 }
 0x11b   :  { %1833 = vst [vmem:[%s6201_s3 + $0x8a8] sm:$0xff] %v1321_v38  ;;  %v322_v38 = vld [vmem:[%s6200_s2 + $0x980] sm:$0xff]  ;;  %v834_v43 = vmul.f32 %v2098_v1, %v321_v35  ;;  %v1345_v48 = vadd.f32 %v2103_v2, %v832_v37 }
 0x11c   :  { %1834 = vst [vmem:[%s6201_s3 + $0x8b0] sm:$0xff] %v1322_v41  ;;  %v323_v41 = vld [vmem:[%s6200_s2 + $0x988] sm:$0xff]  ;;  %v835_v46 = vmul.f32 %v2098_v1, %v322_v38  ;;  %v1346_v51 = vadd.f32 %v2103_v2, %v833_v40 }
 0x11d   :  { %1835 = vst [vmem:[%s6201_s3 + $0x8b8] sm:$0xff] %v1323_v44  ;;  %v324_v44 = vld [vmem:[%s6200_s2 + $0x990] sm:$0xff]  ;;  %v836_v49 = vmul.f32 %v2098_v1, %v323_v41  ;;  %v1347_v54 = vadd.f32 %v2103_v2, %v834_v43 }
 0x11e   :  { %1836 = vst [vmem:[%s6201_s3 + $0x8c0] sm:$0xff] %v1324_v47  ;;  %v325_v47 = vld [vmem:[%s6200_s2 + $0x998] sm:$0xff]  ;;  %v837_v52 = vmul.f32 %v2098_v1, %v324_v44  ;;  %v1348_v57 = vadd.f32 %v2103_v2, %v835_v46 }
 0x11f   :  { %1837 = vst [vmem:[%s6201_s3 + $0x8c8] sm:$0xff] %v1325_v50  ;;  %v326_v50 = vld [vmem:[%s6200_s2 + $0x9a0] sm:$0xff]  ;;  %v838_v55 = vmul.f32 %v2098_v1, %v325_v47  ;;  %v1349_v60 = vadd.f32 %v2103_v2, %v836_v49 }
 0x120   :  { %1838 = vst [vmem:[%s6201_s3 + $0x8d0] sm:$0xff] %v1326_v53  ;;  %v327_v53 = vld [vmem:[%s6200_s2 + $0x9a8] sm:$0xff]  ;;  %v839_v58 = vmul.f32 %v2098_v1, %v326_v50  ;;  %v1350_v63 = vadd.f32 %v2103_v2, %v837_v52 }
 0x121   :  { %1839 = vst [vmem:[%s6201_s3 + $0x8d8] sm:$0xff] %v1327_v56  ;;  %v328_v56 = vld [vmem:[%s6200_s2 + $0x9b0] sm:$0xff]  ;;  %v840_v61 = vmul.f32 %v2098_v1, %v327_v53  ;;  %v1351_v4 = vadd.f32 %v2103_v2, %v838_v55 }
 0x122   :  { %1840 = vst [vmem:[%s6201_s3 + $0x8e0] sm:$0xff] %v1328_v59  ;;  %v329_v59 = vld [vmem:[%s6200_s2 + $0x9b8] sm:$0xff]  ;;  %v841_v0 = vmul.f32 %v2098_v1, %v328_v56  ;;  %v1352_v7 = vadd.f32 %v2103_v2, %v839_v58 }
 0x123   :  { %1841 = vst [vmem:[%s6201_s3 + $0x8e8] sm:$0xff] %v1329_v62  ;;  %v330_v62 = vld [vmem:[%s6200_s2 + $0x9c0] sm:$0xff]  ;;  %v842_v5 = vmul.f32 %v2098_v1, %v329_v59  ;;  %v1353_v10 = vadd.f32 %v2103_v2, %v840_v61 }
 0x124   :  { %1842 = vst [vmem:[%s6201_s3 + $0x8f0] sm:$0xff] %v1330_v3  ;;  %v331_v3 = vld [vmem:[%s6200_s2 + $0x9c8] sm:$0xff]  ;;  %v843_v8 = vmul.f32 %v2098_v1, %v330_v62  ;;  %v1354_v13 = vadd.f32 %v2103_v2, %v841_v0 }
 0x125   :  { %1843 = vst [vmem:[%s6201_s3 + $0x8f8] sm:$0xff] %v1331_v6  ;;  %v332_v6 = vld [vmem:[%s6200_s2 + $0x9d0] sm:$0xff]  ;;  %v844_v11 = vmul.f32 %v2098_v1, %v331_v3  ;;  %v1355_v16 = vadd.f32 %v2103_v2, %v842_v5 }
 0x126   :  { %1844 = vst [vmem:[%s6201_s3 + $0x900] sm:$0xff] %v1332_v9  ;;  %v333_v9 = vld [vmem:[%s6200_s2 + $0x9d8] sm:$0xff]  ;;  %v845_v14 = vmul.f32 %v2098_v1, %v332_v6  ;;  %v1356_v19 = vadd.f32 %v2103_v2, %v843_v8 }
 0x127   :  { %1845 = vst [vmem:[%s6201_s3 + $0x908] sm:$0xff] %v1333_v12  ;;  %v334_v12 = vld [vmem:[%s6200_s2 + $0x9e0] sm:$0xff]  ;;  %v846_v17 = vmul.f32 %v2098_v1, %v333_v9  ;;  %v1357_v22 = vadd.f32 %v2103_v2, %v844_v11 }
 0x128   :  { %1846 = vst [vmem:[%s6201_s3 + $0x910] sm:$0xff] %v1334_v15  ;;  %v335_v15 = vld [vmem:[%s6200_s2 + $0x9e8] sm:$0xff]  ;;  %v847_v20 = vmul.f32 %v2098_v1, %v334_v12  ;;  %v1358_v25 = vadd.f32 %v2103_v2, %v845_v14 }
 0x129   :  { %1847 = vst [vmem:[%s6201_s3 + $0x918] sm:$0xff] %v1335_v18  ;;  %v336_v18 = vld [vmem:[%s6200_s2 + $0x9f0] sm:$0xff]  ;;  %v848_v23 = vmul.f32 %v2098_v1, %v335_v15  ;;  %v1359_v28 = vadd.f32 %v2103_v2, %v846_v17 }
 0x12a   :  { %1848 = vst [vmem:[%s6201_s3 + $0x920] sm:$0xff] %v1336_v21  ;;  %v337_v21 = vld [vmem:[%s6200_s2 + $0x9f8] sm:$0xff]  ;;  %v849_v26 = vmul.f32 %v2098_v1, %v336_v18  ;;  %v1360_v31 = vadd.f32 %v2103_v2, %v847_v20 }
 0x12b   :  { %1849 = vst [vmem:[%s6201_s3 + $0x928] sm:$0xff] %v1337_v24  ;;  %v338_v24 = vld [vmem:[%s6200_s2 + $0xa00] sm:$0xff]  ;;  %v850_v29 = vmul.f32 %v2098_v1, %v337_v21  ;;  %v1361_v34 = vadd.f32 %v2103_v2, %v848_v23 }
 0x12c   :  { %1850 = vst [vmem:[%s6201_s3 + $0x930] sm:$0xff] %v1338_v27  ;;  %v339_v27 = vld [vmem:[%s6200_s2 + $0xa08] sm:$0xff]  ;;  %v851_v32 = vmul.f32 %v2098_v1, %v338_v24  ;;  %v1362_v37 = vadd.f32 %v2103_v2, %v849_v26 }
 0x12d   :  { %1851 = vst [vmem:[%s6201_s3 + $0x938] sm:$0xff] %v1339_v30  ;;  %v340_v30 = vld [vmem:[%s6200_s2 + $0xa10] sm:$0xff]  ;;  %v852_v35 = vmul.f32 %v2098_v1, %v339_v27  ;;  %v1363_v40 = vadd.f32 %v2103_v2, %v850_v29 }
 0x12e   :  { %1852 = vst [vmem:[%s6201_s3 + $0x940] sm:$0xff] %v1340_v33  ;;  %v341_v33 = vld [vmem:[%s6200_s2 + $0xa18] sm:$0xff]  ;;  %v853_v38 = vmul.f32 %v2098_v1, %v340_v30  ;;  %v1364_v43 = vadd.f32 %v2103_v2, %v851_v32 }
 0x12f   :  { %1853 = vst [vmem:[%s6201_s3 + $0x948] sm:$0xff] %v1341_v36  ;;  %v342_v36 = vld [vmem:[%s6200_s2 + $0xa20] sm:$0xff]  ;;  %v854_v41 = vmul.f32 %v2098_v1, %v341_v33  ;;  %v1365_v46 = vadd.f32 %v2103_v2, %v852_v35 }
 0x130   :  { %1854 = vst [vmem:[%s6201_s3 + $0x950] sm:$0xff] %v1342_v39  ;;  %v343_v39 = vld [vmem:[%s6200_s2 + $0xa28] sm:$0xff]  ;;  %v855_v44 = vmul.f32 %v2098_v1, %v342_v36  ;;  %v1366_v49 = vadd.f32 %v2103_v2, %v853_v38 }
 0x131   :  { %1855 = vst [vmem:[%s6201_s3 + $0x958] sm:$0xff] %v1343_v42  ;;  %v344_v42 = vld [vmem:[%s6200_s2 + $0xa30] sm:$0xff]  ;;  %v856_v47 = vmul.f32 %v2098_v1, %v343_v39  ;;  %v1367_v52 = vadd.f32 %v2103_v2, %v854_v41 }
 0x132   :  { %1856 = vst [vmem:[%s6201_s3 + $0x960] sm:$0xff] %v1344_v45  ;;  %v345_v45 = vld [vmem:[%s6200_s2 + $0xa38] sm:$0xff]  ;;  %v857_v50 = vmul.f32 %v2098_v1, %v344_v42  ;;  %v1368_v55 = vadd.f32 %v2103_v2, %v855_v44 }
 0x133   :  { %1857 = vst [vmem:[%s6201_s3 + $0x968] sm:$0xff] %v1345_v48  ;;  %v346_v48 = vld [vmem:[%s6200_s2 + $0xa40] sm:$0xff]  ;;  %v858_v53 = vmul.f32 %v2098_v1, %v345_v45  ;;  %v1369_v58 = vadd.f32 %v2103_v2, %v856_v47 }
 0x134   :  { %1858 = vst [vmem:[%s6201_s3 + $0x970] sm:$0xff] %v1346_v51  ;;  %v347_v51 = vld [vmem:[%s6200_s2 + $0xa48] sm:$0xff]  ;;  %v859_v56 = vmul.f32 %v2098_v1, %v346_v48  ;;  %v1370_v61 = vadd.f32 %v2103_v2, %v857_v50 }
 0x135   :  { %1859 = vst [vmem:[%s6201_s3 + $0x978] sm:$0xff] %v1347_v54  ;;  %v348_v54 = vld [vmem:[%s6200_s2 + $0xa50] sm:$0xff]  ;;  %v860_v59 = vmul.f32 %v2098_v1, %v347_v51  ;;  %v1371_v0 = vadd.f32 %v2103_v2, %v858_v53 }
 0x136   :  { %1860 = vst [vmem:[%s6201_s3 + $0x980] sm:$0xff] %v1348_v57  ;;  %v349_v57 = vld [vmem:[%s6200_s2 + $0xa58] sm:$0xff]  ;;  %v861_v62 = vmul.f32 %v2098_v1, %v348_v54  ;;  %v1372_v5 = vadd.f32 %v2103_v2, %v859_v56 }
 0x137   :  { %1861 = vst [vmem:[%s6201_s3 + $0x988] sm:$0xff] %v1349_v60  ;;  %v350_v60 = vld [vmem:[%s6200_s2 + $0xa60] sm:$0xff]  ;;  %v862_v3 = vmul.f32 %v2098_v1, %v349_v57  ;;  %v1373_v8 = vadd.f32 %v2103_v2, %v860_v59 }
 0x138   :  { %1862 = vst [vmem:[%s6201_s3 + $0x990] sm:$0xff] %v1350_v63  ;;  %v351_v63 = vld [vmem:[%s6200_s2 + $0xa68] sm:$0xff]  ;;  %v863_v6 = vmul.f32 %v2098_v1, %v350_v60  ;;  %v1374_v11 = vadd.f32 %v2103_v2, %v861_v62 }
 0x139   :  { %1863 = vst [vmem:[%s6201_s3 + $0x998] sm:$0xff] %v1351_v4  ;;  %v352_v4 = vld [vmem:[%s6200_s2 + $0xa70] sm:$0xff]  ;;  %v864_v9 = vmul.f32 %v2098_v1, %v351_v63  ;;  %v1375_v14 = vadd.f32 %v2103_v2, %v862_v3 }
 0x13a   :  { %1864 = vst [vmem:[%s6201_s3 + $0x9a0] sm:$0xff] %v1352_v7  ;;  %v353_v7 = vld [vmem:[%s6200_s2 + $0xa78] sm:$0xff]  ;;  %v865_v12 = vmul.f32 %v2098_v1, %v352_v4  ;;  %v1376_v17 = vadd.f32 %v2103_v2, %v863_v6 }
 0x13b   :  { %1865 = vst [vmem:[%s6201_s3 + $0x9a8] sm:$0xff] %v1353_v10  ;;  %v354_v10 = vld [vmem:[%s6200_s2 + $0xa80] sm:$0xff]  ;;  %v866_v15 = vmul.f32 %v2098_v1, %v353_v7  ;;  %v1377_v20 = vadd.f32 %v2103_v2, %v864_v9 }
 0x13c   :  { %1866 = vst [vmem:[%s6201_s3 + $0x9b0] sm:$0xff] %v1354_v13  ;;  %v355_v13 = vld [vmem:[%s6200_s2 + $0xa88] sm:$0xff]  ;;  %v867_v18 = vmul.f32 %v2098_v1, %v354_v10  ;;  %v1378_v23 = vadd.f32 %v2103_v2, %v865_v12 }
 0x13d   :  { %1867 = vst [vmem:[%s6201_s3 + $0x9b8] sm:$0xff] %v1355_v16  ;;  %v356_v16 = vld [vmem:[%s6200_s2 + $0xa90] sm:$0xff]  ;;  %v868_v21 = vmul.f32 %v2098_v1, %v355_v13  ;;  %v1379_v26 = vadd.f32 %v2103_v2, %v866_v15 }
 0x13e   :  { %1868 = vst [vmem:[%s6201_s3 + $0x9c0] sm:$0xff] %v1356_v19  ;;  %v357_v19 = vld [vmem:[%s6200_s2 + $0xa98] sm:$0xff]  ;;  %v869_v24 = vmul.f32 %v2098_v1, %v356_v16  ;;  %v1380_v29 = vadd.f32 %v2103_v2, %v867_v18 }
 0x13f   :  { %1869 = vst [vmem:[%s6201_s3 + $0x9c8] sm:$0xff] %v1357_v22  ;;  %v358_v22 = vld [vmem:[%s6200_s2 + $0xaa0] sm:$0xff]  ;;  %v870_v27 = vmul.f32 %v2098_v1, %v357_v19  ;;  %v1381_v32 = vadd.f32 %v2103_v2, %v868_v21 }
 0x140   :  { %1870 = vst [vmem:[%s6201_s3 + $0x9d0] sm:$0xff] %v1358_v25  ;;  %v359_v25 = vld [vmem:[%s6200_s2 + $0xaa8] sm:$0xff]  ;;  %v871_v30 = vmul.f32 %v2098_v1, %v358_v22  ;;  %v1382_v35 = vadd.f32 %v2103_v2, %v869_v24 }
 0x141   :  { %1871 = vst [vmem:[%s6201_s3 + $0x9d8] sm:$0xff] %v1359_v28  ;;  %v360_v28 = vld [vmem:[%s6200_s2 + $0xab0] sm:$0xff]  ;;  %v872_v33 = vmul.f32 %v2098_v1, %v359_v25  ;;  %v1383_v38 = vadd.f32 %v2103_v2, %v870_v27 }
 0x142   :  { %1872 = vst [vmem:[%s6201_s3 + $0x9e0] sm:$0xff] %v1360_v31  ;;  %v361_v31 = vld [vmem:[%s6200_s2 + $0xab8] sm:$0xff]  ;;  %v873_v36 = vmul.f32 %v2098_v1, %v360_v28  ;;  %v1384_v41 = vadd.f32 %v2103_v2, %v871_v30 }
 0x143   :  { %1873 = vst [vmem:[%s6201_s3 + $0x9e8] sm:$0xff] %v1361_v34  ;;  %v362_v34 = vld [vmem:[%s6200_s2 + $0xac0] sm:$0xff]  ;;  %v874_v39 = vmul.f32 %v2098_v1, %v361_v31  ;;  %v1385_v44 = vadd.f32 %v2103_v2, %v872_v33 }
 0x144   :  { %1874 = vst [vmem:[%s6201_s3 + $0x9f0] sm:$0xff] %v1362_v37  ;;  %v363_v37 = vld [vmem:[%s6200_s2 + $0xac8] sm:$0xff]  ;;  %v875_v42 = vmul.f32 %v2098_v1, %v362_v34  ;;  %v1386_v47 = vadd.f32 %v2103_v2, %v873_v36 }
 0x145   :  { %1875 = vst [vmem:[%s6201_s3 + $0x9f8] sm:$0xff] %v1363_v40  ;;  %v364_v40 = vld [vmem:[%s6200_s2 + $0xad0] sm:$0xff]  ;;  %v876_v45 = vmul.f32 %v2098_v1, %v363_v37  ;;  %v1387_v50 = vadd.f32 %v2103_v2, %v874_v39 }
 0x146   :  { %1876 = vst [vmem:[%s6201_s3 + $0xa00] sm:$0xff] %v1364_v43  ;;  %v365_v43 = vld [vmem:[%s6200_s2 + $0xad8] sm:$0xff]  ;;  %v877_v48 = vmul.f32 %v2098_v1, %v364_v40  ;;  %v1388_v53 = vadd.f32 %v2103_v2, %v875_v42 }
 0x147   :  { %1877 = vst [vmem:[%s6201_s3 + $0xa08] sm:$0xff] %v1365_v46  ;;  %v366_v46 = vld [vmem:[%s6200_s2 + $0xae0] sm:$0xff]  ;;  %v878_v51 = vmul.f32 %v2098_v1, %v365_v43  ;;  %v1389_v56 = vadd.f32 %v2103_v2, %v876_v45 }
 0x148   :  { %1878 = vst [vmem:[%s6201_s3 + $0xa10] sm:$0xff] %v1366_v49  ;;  %v367_v49 = vld [vmem:[%s6200_s2 + $0xae8] sm:$0xff]  ;;  %v879_v54 = vmul.f32 %v2098_v1, %v366_v46  ;;  %v1390_v59 = vadd.f32 %v2103_v2, %v877_v48 }
 0x149   :  { %1879 = vst [vmem:[%s6201_s3 + $0xa18] sm:$0xff] %v1367_v52  ;;  %v368_v52 = vld [vmem:[%s6200_s2 + $0xaf0] sm:$0xff]  ;;  %v880_v57 = vmul.f32 %v2098_v1, %v367_v49  ;;  %v1391_v62 = vadd.f32 %v2103_v2, %v878_v51 }
 0x14a   :  { %1880 = vst [vmem:[%s6201_s3 + $0xa20] sm:$0xff] %v1368_v55  ;;  %v369_v55 = vld [vmem:[%s6200_s2 + $0xaf8] sm:$0xff]  ;;  %v881_v60 = vmul.f32 %v2098_v1, %v368_v52  ;;  %v1392_v3 = vadd.f32 %v2103_v2, %v879_v54 }
 0x14b   :  { %1881 = vst [vmem:[%s6201_s3 + $0xa28] sm:$0xff] %v1369_v58  ;;  %v370_v58 = vld [vmem:[%s6200_s2 + $0xb00] sm:$0xff]  ;;  %v882_v63 = vmul.f32 %v2098_v1, %v369_v55  ;;  %v1393_v6 = vadd.f32 %v2103_v2, %v880_v57 }
 0x14c   :  { %1882 = vst [vmem:[%s6201_s3 + $0xa30] sm:$0xff] %v1370_v61  ;;  %v371_v61 = vld [vmem:[%s6200_s2 + $0xb08] sm:$0xff]  ;;  %v883_v4 = vmul.f32 %v2098_v1, %v370_v58  ;;  %v1394_v9 = vadd.f32 %v2103_v2, %v881_v60 }
 0x14d   :  { %1883 = vst [vmem:[%s6201_s3 + $0xa38] sm:$0xff] %v1371_v0  ;;  %v372_v0 = vld [vmem:[%s6200_s2 + $0xb10] sm:$0xff]  ;;  %v884_v7 = vmul.f32 %v2098_v1, %v371_v61  ;;  %v1395_v12 = vadd.f32 %v2103_v2, %v882_v63 }
 0x14e   :  { %1884 = vst [vmem:[%s6201_s3 + $0xa40] sm:$0xff] %v1372_v5  ;;  %v373_v5 = vld [vmem:[%s6200_s2 + $0xb18] sm:$0xff]  ;;  %v885_v10 = vmul.f32 %v2098_v1, %v372_v0  ;;  %v1396_v15 = vadd.f32 %v2103_v2, %v883_v4 }
 0x14f   :  { %1885 = vst [vmem:[%s6201_s3 + $0xa48] sm:$0xff] %v1373_v8  ;;  %v374_v8 = vld [vmem:[%s6200_s2 + $0xb20] sm:$0xff]  ;;  %v886_v13 = vmul.f32 %v2098_v1, %v373_v5  ;;  %v1397_v18 = vadd.f32 %v2103_v2, %v884_v7 }
 0x150   :  { %1886 = vst [vmem:[%s6201_s3 + $0xa50] sm:$0xff] %v1374_v11  ;;  %v375_v11 = vld [vmem:[%s6200_s2 + $0xb28] sm:$0xff]  ;;  %v887_v16 = vmul.f32 %v2098_v1, %v374_v8  ;;  %v1398_v21 = vadd.f32 %v2103_v2, %v885_v10 }
 0x151   :  { %1887 = vst [vmem:[%s6201_s3 + $0xa58] sm:$0xff] %v1375_v14  ;;  %v376_v14 = vld [vmem:[%s6200_s2 + $0xb30] sm:$0xff]  ;;  %v888_v19 = vmul.f32 %v2098_v1, %v375_v11  ;;  %v1399_v24 = vadd.f32 %v2103_v2, %v886_v13 }
 0x152   :  { %1888 = vst [vmem:[%s6201_s3 + $0xa60] sm:$0xff] %v1376_v17  ;;  %v377_v17 = vld [vmem:[%s6200_s2 + $0xb38] sm:$0xff]  ;;  %v889_v22 = vmul.f32 %v2098_v1, %v376_v14  ;;  %v1400_v27 = vadd.f32 %v2103_v2, %v887_v16 }
 0x153   :  { %1889 = vst [vmem:[%s6201_s3 + $0xa68] sm:$0xff] %v1377_v20  ;;  %v378_v20 = vld [vmem:[%s6200_s2 + $0xb40] sm:$0xff]  ;;  %v890_v25 = vmul.f32 %v2098_v1, %v377_v17  ;;  %v1401_v30 = vadd.f32 %v2103_v2, %v888_v19 }
 0x154   :  { %1890 = vst [vmem:[%s6201_s3 + $0xa70] sm:$0xff] %v1378_v23  ;;  %v379_v23 = vld [vmem:[%s6200_s2 + $0xb48] sm:$0xff]  ;;  %v891_v28 = vmul.f32 %v2098_v1, %v378_v20  ;;  %v1402_v33 = vadd.f32 %v2103_v2, %v889_v22 }
 0x155   :  { %1891 = vst [vmem:[%s6201_s3 + $0xa78] sm:$0xff] %v1379_v26  ;;  %v380_v26 = vld [vmem:[%s6200_s2 + $0xb50] sm:$0xff]  ;;  %v892_v31 = vmul.f32 %v2098_v1, %v379_v23  ;;  %v1403_v36 = vadd.f32 %v2103_v2, %v890_v25 }
 0x156   :  { %1892 = vst [vmem:[%s6201_s3 + $0xa80] sm:$0xff] %v1380_v29  ;;  %v381_v29 = vld [vmem:[%s6200_s2 + $0xb58] sm:$0xff]  ;;  %v893_v34 = vmul.f32 %v2098_v1, %v380_v26  ;;  %v1404_v39 = vadd.f32 %v2103_v2, %v891_v28 }
 0x157   :  { %1893 = vst [vmem:[%s6201_s3 + $0xa88] sm:$0xff] %v1381_v32  ;;  %v382_v32 = vld [vmem:[%s6200_s2 + $0xb60] sm:$0xff]  ;;  %v894_v37 = vmul.f32 %v2098_v1, %v381_v29  ;;  %v1405_v42 = vadd.f32 %v2103_v2, %v892_v31 }
 0x158   :  { %1894 = vst [vmem:[%s6201_s3 + $0xa90] sm:$0xff] %v1382_v35  ;;  %v383_v35 = vld [vmem:[%s6200_s2 + $0xb68] sm:$0xff]  ;;  %v895_v40 = vmul.f32 %v2098_v1, %v382_v32  ;;  %v1406_v45 = vadd.f32 %v2103_v2, %v893_v34 }
 0x159   :  { %1895 = vst [vmem:[%s6201_s3 + $0xa98] sm:$0xff] %v1383_v38  ;;  %v384_v38 = vld [vmem:[%s6200_s2 + $0xb70] sm:$0xff]  ;;  %v896_v43 = vmul.f32 %v2098_v1, %v383_v35  ;;  %v1407_v48 = vadd.f32 %v2103_v2, %v894_v37 }
 0x15a   :  { %1896 = vst [vmem:[%s6201_s3 + $0xaa0] sm:$0xff] %v1384_v41  ;;  %v385_v41 = vld [vmem:[%s6200_s2 + $0xb78] sm:$0xff]  ;;  %v897_v46 = vmul.f32 %v2098_v1, %v384_v38  ;;  %v1408_v51 = vadd.f32 %v2103_v2, %v895_v40 }
 0x15b   :  { %1897 = vst [vmem:[%s6201_s3 + $0xaa8] sm:$0xff] %v1385_v44  ;;  %v386_v44 = vld [vmem:[%s6200_s2 + $0xb80] sm:$0xff]  ;;  %v898_v49 = vmul.f32 %v2098_v1, %v385_v41  ;;  %v1409_v54 = vadd.f32 %v2103_v2, %v896_v43 }
 0x15c   :  { %1898 = vst [vmem:[%s6201_s3 + $0xab0] sm:$0xff] %v1386_v47  ;;  %v387_v47 = vld [vmem:[%s6200_s2 + $0xb88] sm:$0xff]  ;;  %v899_v52 = vmul.f32 %v2098_v1, %v386_v44  ;;  %v1410_v57 = vadd.f32 %v2103_v2, %v897_v46 }
 0x15d   :  { %1899 = vst [vmem:[%s6201_s3 + $0xab8] sm:$0xff] %v1387_v50  ;;  %v388_v50 = vld [vmem:[%s6200_s2 + $0xb90] sm:$0xff]  ;;  %v900_v55 = vmul.f32 %v2098_v1, %v387_v47  ;;  %v1411_v60 = vadd.f32 %v2103_v2, %v898_v49 }
 0x15e   :  { %1900 = vst [vmem:[%s6201_s3 + $0xac0] sm:$0xff] %v1388_v53  ;;  %v389_v53 = vld [vmem:[%s6200_s2 + $0xb98] sm:$0xff]  ;;  %v901_v58 = vmul.f32 %v2098_v1, %v388_v50  ;;  %v1412_v63 = vadd.f32 %v2103_v2, %v899_v52 }
 0x15f   :  { %1901 = vst [vmem:[%s6201_s3 + $0xac8] sm:$0xff] %v1389_v56  ;;  %v390_v56 = vld [vmem:[%s6200_s2 + $0xba0] sm:$0xff]  ;;  %v902_v61 = vmul.f32 %v2098_v1, %v389_v53  ;;  %v1413_v4 = vadd.f32 %v2103_v2, %v900_v55 }
 0x160   :  { %1902 = vst [vmem:[%s6201_s3 + $0xad0] sm:$0xff] %v1390_v59  ;;  %v391_v59 = vld [vmem:[%s6200_s2 + $0xba8] sm:$0xff]  ;;  %v903_v0 = vmul.f32 %v2098_v1, %v390_v56  ;;  %v1414_v7 = vadd.f32 %v2103_v2, %v901_v58 }
 0x161   :  { %1903 = vst [vmem:[%s6201_s3 + $0xad8] sm:$0xff] %v1391_v62  ;;  %v392_v62 = vld [vmem:[%s6200_s2 + $0xbb0] sm:$0xff]  ;;  %v904_v5 = vmul.f32 %v2098_v1, %v391_v59  ;;  %v1415_v10 = vadd.f32 %v2103_v2, %v902_v61 }
 0x162   :  { %1904 = vst [vmem:[%s6201_s3 + $0xae0] sm:$0xff] %v1392_v3  ;;  %v393_v3 = vld [vmem:[%s6200_s2 + $0xbb8] sm:$0xff]  ;;  %v905_v8 = vmul.f32 %v2098_v1, %v392_v62  ;;  %v1416_v13 = vadd.f32 %v2103_v2, %v903_v0 }
 0x163   :  { %1905 = vst [vmem:[%s6201_s3 + $0xae8] sm:$0xff] %v1393_v6  ;;  %v394_v6 = vld [vmem:[%s6200_s2 + $0xbc0] sm:$0xff]  ;;  %v906_v11 = vmul.f32 %v2098_v1, %v393_v3  ;;  %v1417_v16 = vadd.f32 %v2103_v2, %v904_v5 }
 0x164   :  { %1906 = vst [vmem:[%s6201_s3 + $0xaf0] sm:$0xff] %v1394_v9  ;;  %v395_v9 = vld [vmem:[%s6200_s2 + $0xbc8] sm:$0xff]  ;;  %v907_v14 = vmul.f32 %v2098_v1, %v394_v6  ;;  %v1418_v19 = vadd.f32 %v2103_v2, %v905_v8 }
 0x165   :  { %1907 = vst [vmem:[%s6201_s3 + $0xaf8] sm:$0xff] %v1395_v12  ;;  %v396_v12 = vld [vmem:[%s6200_s2 + $0xbd0] sm:$0xff]  ;;  %v908_v17 = vmul.f32 %v2098_v1, %v395_v9  ;;  %v1419_v22 = vadd.f32 %v2103_v2, %v906_v11 }
 0x166   :  { %1908 = vst [vmem:[%s6201_s3 + $0xb00] sm:$0xff] %v1396_v15  ;;  %v397_v15 = vld [vmem:[%s6200_s2 + $0xbd8] sm:$0xff]  ;;  %v909_v20 = vmul.f32 %v2098_v1, %v396_v12  ;;  %v1420_v25 = vadd.f32 %v2103_v2, %v907_v14 }
 0x167   :  { %1909 = vst [vmem:[%s6201_s3 + $0xb08] sm:$0xff] %v1397_v18  ;;  %v398_v18 = vld [vmem:[%s6200_s2 + $0xbe0] sm:$0xff]  ;;  %v910_v23 = vmul.f32 %v2098_v1, %v397_v15  ;;  %v1421_v28 = vadd.f32 %v2103_v2, %v908_v17 }
 0x168   :  { %1910 = vst [vmem:[%s6201_s3 + $0xb10] sm:$0xff] %v1398_v21  ;;  %v399_v21 = vld [vmem:[%s6200_s2 + $0xbe8] sm:$0xff]  ;;  %v911_v26 = vmul.f32 %v2098_v1, %v398_v18  ;;  %v1422_v31 = vadd.f32 %v2103_v2, %v909_v20 }
 0x169   :  { %1911 = vst [vmem:[%s6201_s3 + $0xb18] sm:$0xff] %v1399_v24  ;;  %v400_v24 = vld [vmem:[%s6200_s2 + $0xbf0] sm:$0xff]  ;;  %v912_v29 = vmul.f32 %v2098_v1, %v399_v21  ;;  %v1423_v34 = vadd.f32 %v2103_v2, %v910_v23 }
 0x16a   :  { %1912 = vst [vmem:[%s6201_s3 + $0xb20] sm:$0xff] %v1400_v27  ;;  %v401_v27 = vld [vmem:[%s6200_s2 + $0xbf8] sm:$0xff]  ;;  %v913_v32 = vmul.f32 %v2098_v1, %v400_v24  ;;  %v1424_v37 = vadd.f32 %v2103_v2, %v911_v26 }
 0x16b   :  { %1913 = vst [vmem:[%s6201_s3 + $0xb28] sm:$0xff] %v1401_v30  ;;  %v402_v30 = vld [vmem:[%s6200_s2 + $0xc00] sm:$0xff]  ;;  %v914_v35 = vmul.f32 %v2098_v1, %v401_v27  ;;  %v1425_v40 = vadd.f32 %v2103_v2, %v912_v29 }
 0x16c   :  { %1914 = vst [vmem:[%s6201_s3 + $0xb30] sm:$0xff] %v1402_v33  ;;  %v403_v33 = vld [vmem:[%s6200_s2 + $0xc08] sm:$0xff]  ;;  %v915_v38 = vmul.f32 %v2098_v1, %v402_v30  ;;  %v1426_v43 = vadd.f32 %v2103_v2, %v913_v32 }
 0x16d   :  { %1915 = vst [vmem:[%s6201_s3 + $0xb38] sm:$0xff] %v1403_v36  ;;  %v404_v36 = vld [vmem:[%s6200_s2 + $0xc10] sm:$0xff]  ;;  %v916_v41 = vmul.f32 %v2098_v1, %v403_v33  ;;  %v1427_v46 = vadd.f32 %v2103_v2, %v914_v35 }
 0x16e   :  { %1916 = vst [vmem:[%s6201_s3 + $0xb40] sm:$0xff] %v1404_v39  ;;  %v405_v39 = vld [vmem:[%s6200_s2 + $0xc18] sm:$0xff]  ;;  %v917_v44 = vmul.f32 %v2098_v1, %v404_v36  ;;  %v1428_v49 = vadd.f32 %v2103_v2, %v915_v38 }
 0x16f   :  { %1917 = vst [vmem:[%s6201_s3 + $0xb48] sm:$0xff] %v1405_v42  ;;  %v406_v42 = vld [vmem:[%s6200_s2 + $0xc20] sm:$0xff]  ;;  %v918_v47 = vmul.f32 %v2098_v1, %v405_v39  ;;  %v1429_v52 = vadd.f32 %v2103_v2, %v916_v41 }
 0x170   :  { %1918 = vst [vmem:[%s6201_s3 + $0xb50] sm:$0xff] %v1406_v45  ;;  %v407_v45 = vld [vmem:[%s6200_s2 + $0xc28] sm:$0xff]  ;;  %v919_v50 = vmul.f32 %v2098_v1, %v406_v42  ;;  %v1430_v55 = vadd.f32 %v2103_v2, %v917_v44 }
 0x171   :  { %1919 = vst [vmem:[%s6201_s3 + $0xb58] sm:$0xff] %v1407_v48  ;;  %v408_v48 = vld [vmem:[%s6200_s2 + $0xc30] sm:$0xff]  ;;  %v920_v53 = vmul.f32 %v2098_v1, %v407_v45  ;;  %v1431_v58 = vadd.f32 %v2103_v2, %v918_v47 }
 0x172   :  { %1920 = vst [vmem:[%s6201_s3 + $0xb60] sm:$0xff] %v1408_v51  ;;  %v409_v51 = vld [vmem:[%s6200_s2 + $0xc38] sm:$0xff]  ;;  %v921_v56 = vmul.f32 %v2098_v1, %v408_v48  ;;  %v1432_v61 = vadd.f32 %v2103_v2, %v919_v50 }
 0x173   :  { %1921 = vst [vmem:[%s6201_s3 + $0xb68] sm:$0xff] %v1409_v54  ;;  %v410_v54 = vld [vmem:[%s6200_s2 + $0xc40] sm:$0xff]  ;;  %v922_v59 = vmul.f32 %v2098_v1, %v409_v51  ;;  %v1433_v0 = vadd.f32 %v2103_v2, %v920_v53 }
 0x174   :  { %1922 = vst [vmem:[%s6201_s3 + $0xb70] sm:$0xff] %v1410_v57  ;;  %v411_v57 = vld [vmem:[%s6200_s2 + $0xc48] sm:$0xff]  ;;  %v923_v62 = vmul.f32 %v2098_v1, %v410_v54  ;;  %v1434_v5 = vadd.f32 %v2103_v2, %v921_v56 }
 0x175   :  { %1923 = vst [vmem:[%s6201_s3 + $0xb78] sm:$0xff] %v1411_v60  ;;  %v412_v60 = vld [vmem:[%s6200_s2 + $0xc50] sm:$0xff]  ;;  %v924_v3 = vmul.f32 %v2098_v1, %v411_v57  ;;  %v1435_v8 = vadd.f32 %v2103_v2, %v922_v59 }
 0x176   :  { %1924 = vst [vmem:[%s6201_s3 + $0xb80] sm:$0xff] %v1412_v63  ;;  %v413_v63 = vld [vmem:[%s6200_s2 + $0xc58] sm:$0xff]  ;;  %v925_v6 = vmul.f32 %v2098_v1, %v412_v60  ;;  %v1436_v11 = vadd.f32 %v2103_v2, %v923_v62 }
 0x177   :  { %1925 = vst [vmem:[%s6201_s3 + $0xb88] sm:$0xff] %v1413_v4  ;;  %v414_v4 = vld [vmem:[%s6200_s2 + $0xc60] sm:$0xff]  ;;  %v926_v9 = vmul.f32 %v2098_v1, %v413_v63  ;;  %v1437_v14 = vadd.f32 %v2103_v2, %v924_v3 }
 0x178   :  { %1926 = vst [vmem:[%s6201_s3 + $0xb90] sm:$0xff] %v1414_v7  ;;  %v415_v7 = vld [vmem:[%s6200_s2 + $0xc68] sm:$0xff]  ;;  %v927_v12 = vmul.f32 %v2098_v1, %v414_v4  ;;  %v1438_v17 = vadd.f32 %v2103_v2, %v925_v6 }
 0x179   :  { %1927 = vst [vmem:[%s6201_s3 + $0xb98] sm:$0xff] %v1415_v10  ;;  %v416_v10 = vld [vmem:[%s6200_s2 + $0xc70] sm:$0xff]  ;;  %v928_v15 = vmul.f32 %v2098_v1, %v415_v7  ;;  %v1439_v20 = vadd.f32 %v2103_v2, %v926_v9 }
 0x17a   :  { %1928 = vst [vmem:[%s6201_s3 + $0xba0] sm:$0xff] %v1416_v13  ;;  %v417_v13 = vld [vmem:[%s6200_s2 + $0xc78] sm:$0xff]  ;;  %v929_v18 = vmul.f32 %v2098_v1, %v416_v10  ;;  %v1440_v23 = vadd.f32 %v2103_v2, %v927_v12 }
 0x17b   :  { %1929 = vst [vmem:[%s6201_s3 + $0xba8] sm:$0xff] %v1417_v16  ;;  %v418_v16 = vld [vmem:[%s6200_s2 + $0xc80] sm:$0xff]  ;;  %v930_v21 = vmul.f32 %v2098_v1, %v417_v13  ;;  %v1441_v26 = vadd.f32 %v2103_v2, %v928_v15 }
 0x17c   :  { %1930 = vst [vmem:[%s6201_s3 + $0xbb0] sm:$0xff] %v1418_v19  ;;  %v419_v19 = vld [vmem:[%s6200_s2 + $0xc88] sm:$0xff]  ;;  %v931_v24 = vmul.f32 %v2098_v1, %v418_v16  ;;  %v1442_v29 = vadd.f32 %v2103_v2, %v929_v18 }
 0x17d   :  { %1931 = vst [vmem:[%s6201_s3 + $0xbb8] sm:$0xff] %v1419_v22  ;;  %v420_v22 = vld [vmem:[%s6200_s2 + $0xc90] sm:$0xff]  ;;  %v932_v27 = vmul.f32 %v2098_v1, %v419_v19  ;;  %v1443_v32 = vadd.f32 %v2103_v2, %v930_v21 }
 0x17e   :  { %1932 = vst [vmem:[%s6201_s3 + $0xbc0] sm:$0xff] %v1420_v25  ;;  %v421_v25 = vld [vmem:[%s6200_s2 + $0xc98] sm:$0xff]  ;;  %v933_v30 = vmul.f32 %v2098_v1, %v420_v22  ;;  %v1444_v35 = vadd.f32 %v2103_v2, %v931_v24 }
 0x17f   :  { %1933 = vst [vmem:[%s6201_s3 + $0xbc8] sm:$0xff] %v1421_v28  ;;  %v422_v28 = vld [vmem:[%s6200_s2 + $0xca0] sm:$0xff]  ;;  %v934_v33 = vmul.f32 %v2098_v1, %v421_v25  ;;  %v1445_v38 = vadd.f32 %v2103_v2, %v932_v27 }
 0x180   :  { %1934 = vst [vmem:[%s6201_s3 + $0xbd0] sm:$0xff] %v1422_v31  ;;  %v423_v31 = vld [vmem:[%s6200_s2 + $0xca8] sm:$0xff]  ;;  %v935_v36 = vmul.f32 %v2098_v1, %v422_v28  ;;  %v1446_v41 = vadd.f32 %v2103_v2, %v933_v30 }
 0x181   :  { %1935 = vst [vmem:[%s6201_s3 + $0xbd8] sm:$0xff] %v1423_v34  ;;  %v424_v34 = vld [vmem:[%s6200_s2 + $0xcb0] sm:$0xff]  ;;  %v936_v39 = vmul.f32 %v2098_v1, %v423_v31  ;;  %v1447_v44 = vadd.f32 %v2103_v2, %v934_v33 }
 0x182   :  { %1936 = vst [vmem:[%s6201_s3 + $0xbe0] sm:$0xff] %v1424_v37  ;;  %v425_v37 = vld [vmem:[%s6200_s2 + $0xcb8] sm:$0xff]  ;;  %v937_v42 = vmul.f32 %v2098_v1, %v424_v34  ;;  %v1448_v47 = vadd.f32 %v2103_v2, %v935_v36 }
 0x183   :  { %1937 = vst [vmem:[%s6201_s3 + $0xbe8] sm:$0xff] %v1425_v40  ;;  %v426_v40 = vld [vmem:[%s6200_s2 + $0xcc0] sm:$0xff]  ;;  %v938_v45 = vmul.f32 %v2098_v1, %v425_v37  ;;  %v1449_v50 = vadd.f32 %v2103_v2, %v936_v39 }
 0x184   :  { %1938 = vst [vmem:[%s6201_s3 + $0xbf0] sm:$0xff] %v1426_v43  ;;  %v427_v43 = vld [vmem:[%s6200_s2 + $0xcc8] sm:$0xff]  ;;  %v939_v48 = vmul.f32 %v2098_v1, %v426_v40  ;;  %v1450_v53 = vadd.f32 %v2103_v2, %v937_v42 }
 0x185   :  { %1939 = vst [vmem:[%s6201_s3 + $0xbf8] sm:$0xff] %v1427_v46  ;;  %v428_v46 = vld [vmem:[%s6200_s2 + $0xcd0] sm:$0xff]  ;;  %v940_v51 = vmul.f32 %v2098_v1, %v427_v43  ;;  %v1451_v56 = vadd.f32 %v2103_v2, %v938_v45 }
 0x186   :  { %1940 = vst [vmem:[%s6201_s3 + $0xc00] sm:$0xff] %v1428_v49  ;;  %v429_v49 = vld [vmem:[%s6200_s2 + $0xcd8] sm:$0xff]  ;;  %v941_v54 = vmul.f32 %v2098_v1, %v428_v46  ;;  %v1452_v59 = vadd.f32 %v2103_v2, %v939_v48 }
 0x187   :  { %1941 = vst [vmem:[%s6201_s3 + $0xc08] sm:$0xff] %v1429_v52  ;;  %v430_v52 = vld [vmem:[%s6200_s2 + $0xce0] sm:$0xff]  ;;  %v942_v57 = vmul.f32 %v2098_v1, %v429_v49  ;;  %v1453_v62 = vadd.f32 %v2103_v2, %v940_v51 }
 0x188   :  { %1942 = vst [vmem:[%s6201_s3 + $0xc10] sm:$0xff] %v1430_v55  ;;  %v431_v55 = vld [vmem:[%s6200_s2 + $0xce8] sm:$0xff]  ;;  %v943_v60 = vmul.f32 %v2098_v1, %v430_v52  ;;  %v1454_v3 = vadd.f32 %v2103_v2, %v941_v54 }
 0x189   :  { %1943 = vst [vmem:[%s6201_s3 + $0xc18] sm:$0xff] %v1431_v58  ;;  %v432_v58 = vld [vmem:[%s6200_s2 + $0xcf0] sm:$0xff]  ;;  %v944_v63 = vmul.f32 %v2098_v1, %v431_v55  ;;  %v1455_v6 = vadd.f32 %v2103_v2, %v942_v57 }
 0x18a   :  { %1944 = vst [vmem:[%s6201_s3 + $0xc20] sm:$0xff] %v1432_v61  ;;  %v433_v61 = vld [vmem:[%s6200_s2 + $0xcf8] sm:$0xff]  ;;  %v945_v4 = vmul.f32 %v2098_v1, %v432_v58  ;;  %v1456_v9 = vadd.f32 %v2103_v2, %v943_v60 }
 0x18b   :  { %1945 = vst [vmem:[%s6201_s3 + $0xc28] sm:$0xff] %v1433_v0  ;;  %v434_v0 = vld [vmem:[%s6200_s2 + $0xd00] sm:$0xff]  ;;  %v946_v7 = vmul.f32 %v2098_v1, %v433_v61  ;;  %v1457_v12 = vadd.f32 %v2103_v2, %v944_v63 }
 0x18c   :  { %1946 = vst [vmem:[%s6201_s3 + $0xc30] sm:$0xff] %v1434_v5  ;;  %v435_v5 = vld [vmem:[%s6200_s2 + $0xd08] sm:$0xff]  ;;  %v947_v10 = vmul.f32 %v2098_v1, %v434_v0  ;;  %v1458_v15 = vadd.f32 %v2103_v2, %v945_v4 }
 0x18d   :  { %1947 = vst [vmem:[%s6201_s3 + $0xc38] sm:$0xff] %v1435_v8  ;;  %v436_v8 = vld [vmem:[%s6200_s2 + $0xd10] sm:$0xff]  ;;  %v948_v13 = vmul.f32 %v2098_v1, %v435_v5  ;;  %v1459_v18 = vadd.f32 %v2103_v2, %v946_v7 }
 0x18e   :  { %1948 = vst [vmem:[%s6201_s3 + $0xc40] sm:$0xff] %v1436_v11  ;;  %v437_v11 = vld [vmem:[%s6200_s2 + $0xd18] sm:$0xff]  ;;  %v949_v16 = vmul.f32 %v2098_v1, %v436_v8  ;;  %v1460_v21 = vadd.f32 %v2103_v2, %v947_v10 }
 0x18f   :  { %1949 = vst [vmem:[%s6201_s3 + $0xc48] sm:$0xff] %v1437_v14  ;;  %v438_v14 = vld [vmem:[%s6200_s2 + $0xd20] sm:$0xff]  ;;  %v950_v19 = vmul.f32 %v2098_v1, %v437_v11  ;;  %v1461_v24 = vadd.f32 %v2103_v2, %v948_v13 }
 0x190   :  { %1950 = vst [vmem:[%s6201_s3 + $0xc50] sm:$0xff] %v1438_v17  ;;  %v439_v17 = vld [vmem:[%s6200_s2 + $0xd28] sm:$0xff]  ;;  %v951_v22 = vmul.f32 %v2098_v1, %v438_v14  ;;  %v1462_v27 = vadd.f32 %v2103_v2, %v949_v16 }
 0x191   :  { %1951 = vst [vmem:[%s6201_s3 + $0xc58] sm:$0xff] %v1439_v20  ;;  %v440_v20 = vld [vmem:[%s6200_s2 + $0xd30] sm:$0xff]  ;;  %v952_v25 = vmul.f32 %v2098_v1, %v439_v17  ;;  %v1463_v30 = vadd.f32 %v2103_v2, %v950_v19 }
 0x192   :  { %1952 = vst [vmem:[%s6201_s3 + $0xc60] sm:$0xff] %v1440_v23  ;;  %v441_v23 = vld [vmem:[%s6200_s2 + $0xd38] sm:$0xff]  ;;  %v953_v28 = vmul.f32 %v2098_v1, %v440_v20  ;;  %v1464_v33 = vadd.f32 %v2103_v2, %v951_v22 }
 0x193   :  { %1953 = vst [vmem:[%s6201_s3 + $0xc68] sm:$0xff] %v1441_v26  ;;  %v442_v26 = vld [vmem:[%s6200_s2 + $0xd40] sm:$0xff]  ;;  %v954_v31 = vmul.f32 %v2098_v1, %v441_v23  ;;  %v1465_v36 = vadd.f32 %v2103_v2, %v952_v25 }
 0x194   :  { %1954 = vst [vmem:[%s6201_s3 + $0xc70] sm:$0xff] %v1442_v29  ;;  %v443_v29 = vld [vmem:[%s6200_s2 + $0xd48] sm:$0xff]  ;;  %v955_v34 = vmul.f32 %v2098_v1, %v442_v26  ;;  %v1466_v39 = vadd.f32 %v2103_v2, %v953_v28 }
 0x195   :  { %1955 = vst [vmem:[%s6201_s3 + $0xc78] sm:$0xff] %v1443_v32  ;;  %v444_v32 = vld [vmem:[%s6200_s2 + $0xd50] sm:$0xff]  ;;  %v956_v37 = vmul.f32 %v2098_v1, %v443_v29  ;;  %v1467_v42 = vadd.f32 %v2103_v2, %v954_v31 }
 0x196   :  { %1956 = vst [vmem:[%s6201_s3 + $0xc80] sm:$0xff] %v1444_v35  ;;  %v445_v35 = vld [vmem:[%s6200_s2 + $0xd58] sm:$0xff]  ;;  %v957_v40 = vmul.f32 %v2098_v1, %v444_v32  ;;  %v1468_v45 = vadd.f32 %v2103_v2, %v955_v34 }
 0x197   :  { %1957 = vst [vmem:[%s6201_s3 + $0xc88] sm:$0xff] %v1445_v38  ;;  %v446_v38 = vld [vmem:[%s6200_s2 + $0xd60] sm:$0xff]  ;;  %v958_v43 = vmul.f32 %v2098_v1, %v445_v35  ;;  %v1469_v48 = vadd.f32 %v2103_v2, %v956_v37 }
 0x198   :  { %1958 = vst [vmem:[%s6201_s3 + $0xc90] sm:$0xff] %v1446_v41  ;;  %v447_v41 = vld [vmem:[%s6200_s2 + $0xd68] sm:$0xff]  ;;  %v959_v46 = vmul.f32 %v2098_v1, %v446_v38  ;;  %v1470_v51 = vadd.f32 %v2103_v2, %v957_v40 }
 0x199   :  { %1959 = vst [vmem:[%s6201_s3 + $0xc98] sm:$0xff] %v1447_v44  ;;  %v448_v44 = vld [vmem:[%s6200_s2 + $0xd70] sm:$0xff]  ;;  %v960_v49 = vmul.f32 %v2098_v1, %v447_v41  ;;  %v1471_v54 = vadd.f32 %v2103_v2, %v958_v43 }
 0x19a   :  { %1960 = vst [vmem:[%s6201_s3 + $0xca0] sm:$0xff] %v1448_v47  ;;  %v449_v47 = vld [vmem:[%s6200_s2 + $0xd78] sm:$0xff]  ;;  %v961_v52 = vmul.f32 %v2098_v1, %v448_v44  ;;  %v1472_v57 = vadd.f32 %v2103_v2, %v959_v46 }
 0x19b   :  { %1961 = vst [vmem:[%s6201_s3 + $0xca8] sm:$0xff] %v1449_v50  ;;  %v450_v50 = vld [vmem:[%s6200_s2 + $0xd80] sm:$0xff]  ;;  %v962_v55 = vmul.f32 %v2098_v1, %v449_v47  ;;  %v1473_v60 = vadd.f32 %v2103_v2, %v960_v49 }
 0x19c   :  { %1962 = vst [vmem:[%s6201_s3 + $0xcb0] sm:$0xff] %v1450_v53  ;;  %v451_v53 = vld [vmem:[%s6200_s2 + $0xd88] sm:$0xff]  ;;  %v963_v58 = vmul.f32 %v2098_v1, %v450_v50  ;;  %v1474_v63 = vadd.f32 %v2103_v2, %v961_v52 }
 0x19d   :  { %1963 = vst [vmem:[%s6201_s3 + $0xcb8] sm:$0xff] %v1451_v56  ;;  %v452_v56 = vld [vmem:[%s6200_s2 + $0xd90] sm:$0xff]  ;;  %v964_v61 = vmul.f32 %v2098_v1, %v451_v53  ;;  %v1475_v4 = vadd.f32 %v2103_v2, %v962_v55 }
 0x19e   :  { %1964 = vst [vmem:[%s6201_s3 + $0xcc0] sm:$0xff] %v1452_v59  ;;  %v453_v59 = vld [vmem:[%s6200_s2 + $0xd98] sm:$0xff]  ;;  %v965_v0 = vmul.f32 %v2098_v1, %v452_v56  ;;  %v1476_v7 = vadd.f32 %v2103_v2, %v963_v58 }
 0x19f   :  { %1965 = vst [vmem:[%s6201_s3 + $0xcc8] sm:$0xff] %v1453_v62  ;;  %v454_v62 = vld [vmem:[%s6200_s2 + $0xda0] sm:$0xff]  ;;  %v966_v5 = vmul.f32 %v2098_v1, %v453_v59  ;;  %v1477_v10 = vadd.f32 %v2103_v2, %v964_v61 }
 0x1a0   :  { %1966 = vst [vmem:[%s6201_s3 + $0xcd0] sm:$0xff] %v1454_v3  ;;  %v455_v3 = vld [vmem:[%s6200_s2 + $0xda8] sm:$0xff]  ;;  %v967_v8 = vmul.f32 %v2098_v1, %v454_v62  ;;  %v1478_v13 = vadd.f32 %v2103_v2, %v965_v0 }
 0x1a1   :  { %1967 = vst [vmem:[%s6201_s3 + $0xcd8] sm:$0xff] %v1455_v6  ;;  %v456_v6 = vld [vmem:[%s6200_s2 + $0xdb0] sm:$0xff]  ;;  %v968_v11 = vmul.f32 %v2098_v1, %v455_v3  ;;  %v1479_v16 = vadd.f32 %v2103_v2, %v966_v5 }
 0x1a2   :  { %1968 = vst [vmem:[%s6201_s3 + $0xce0] sm:$0xff] %v1456_v9  ;;  %v457_v9 = vld [vmem:[%s6200_s2 + $0xdb8] sm:$0xff]  ;;  %v969_v14 = vmul.f32 %v2098_v1, %v456_v6  ;;  %v1480_v19 = vadd.f32 %v2103_v2, %v967_v8 }
 0x1a3   :  { %1969 = vst [vmem:[%s6201_s3 + $0xce8] sm:$0xff] %v1457_v12  ;;  %v458_v12 = vld [vmem:[%s6200_s2 + $0xdc0] sm:$0xff]  ;;  %v970_v17 = vmul.f32 %v2098_v1, %v457_v9  ;;  %v1481_v22 = vadd.f32 %v2103_v2, %v968_v11 }
 0x1a4   :  { %1970 = vst [vmem:[%s6201_s3 + $0xcf0] sm:$0xff] %v1458_v15  ;;  %v459_v15 = vld [vmem:[%s6200_s2 + $0xdc8] sm:$0xff]  ;;  %v971_v20 = vmul.f32 %v2098_v1, %v458_v12  ;;  %v1482_v25 = vadd.f32 %v2103_v2, %v969_v14 }
 0x1a5   :  { %1971 = vst [vmem:[%s6201_s3 + $0xcf8] sm:$0xff] %v1459_v18  ;;  %v460_v18 = vld [vmem:[%s6200_s2 + $0xdd0] sm:$0xff]  ;;  %v972_v23 = vmul.f32 %v2098_v1, %v459_v15  ;;  %v1483_v28 = vadd.f32 %v2103_v2, %v970_v17 }
 0x1a6   :  { %1972 = vst [vmem:[%s6201_s3 + $0xd00] sm:$0xff] %v1460_v21  ;;  %v461_v21 = vld [vmem:[%s6200_s2 + $0xdd8] sm:$0xff]  ;;  %v973_v26 = vmul.f32 %v2098_v1, %v460_v18  ;;  %v1484_v31 = vadd.f32 %v2103_v2, %v971_v20 }
 0x1a7   :  { %1973 = vst [vmem:[%s6201_s3 + $0xd08] sm:$0xff] %v1461_v24  ;;  %v462_v24 = vld [vmem:[%s6200_s2 + $0xde0] sm:$0xff]  ;;  %v974_v29 = vmul.f32 %v2098_v1, %v461_v21  ;;  %v1485_v34 = vadd.f32 %v2103_v2, %v972_v23 }
 0x1a8   :  { %1974 = vst [vmem:[%s6201_s3 + $0xd10] sm:$0xff] %v1462_v27  ;;  %v463_v27 = vld [vmem:[%s6200_s2 + $0xde8] sm:$0xff]  ;;  %v975_v32 = vmul.f32 %v2098_v1, %v462_v24  ;;  %v1486_v37 = vadd.f32 %v2103_v2, %v973_v26 }
 0x1a9   :  { %1975 = vst [vmem:[%s6201_s3 + $0xd18] sm:$0xff] %v1463_v30  ;;  %v464_v30 = vld [vmem:[%s6200_s2 + $0xdf0] sm:$0xff]  ;;  %v976_v35 = vmul.f32 %v2098_v1, %v463_v27  ;;  %v1487_v40 = vadd.f32 %v2103_v2, %v974_v29 }
 0x1aa   :  { %1976 = vst [vmem:[%s6201_s3 + $0xd20] sm:$0xff] %v1464_v33  ;;  %v465_v33 = vld [vmem:[%s6200_s2 + $0xdf8] sm:$0xff]  ;;  %v977_v38 = vmul.f32 %v2098_v1, %v464_v30  ;;  %v1488_v43 = vadd.f32 %v2103_v2, %v975_v32 }
 0x1ab   :  { %1977 = vst [vmem:[%s6201_s3 + $0xd28] sm:$0xff] %v1465_v36  ;;  %v466_v36 = vld [vmem:[%s6200_s2 + $0xe00] sm:$0xff]  ;;  %v978_v41 = vmul.f32 %v2098_v1, %v465_v33  ;;  %v1489_v46 = vadd.f32 %v2103_v2, %v976_v35 }
 0x1ac   :  { %1978 = vst [vmem:[%s6201_s3 + $0xd30] sm:$0xff] %v1466_v39  ;;  %v467_v39 = vld [vmem:[%s6200_s2 + $0xe08] sm:$0xff]  ;;  %v979_v44 = vmul.f32 %v2098_v1, %v466_v36  ;;  %v1490_v49 = vadd.f32 %v2103_v2, %v977_v38 }
 0x1ad   :  { %1979 = vst [vmem:[%s6201_s3 + $0xd38] sm:$0xff] %v1467_v42  ;;  %v468_v42 = vld [vmem:[%s6200_s2 + $0xe10] sm:$0xff]  ;;  %v980_v47 = vmul.f32 %v2098_v1, %v467_v39  ;;  %v1491_v52 = vadd.f32 %v2103_v2, %v978_v41 }
 0x1ae   :  { %1980 = vst [vmem:[%s6201_s3 + $0xd40] sm:$0xff] %v1468_v45  ;;  %v469_v45 = vld [vmem:[%s6200_s2 + $0xe18] sm:$0xff]  ;;  %v981_v50 = vmul.f32 %v2098_v1, %v468_v42  ;;  %v1492_v55 = vadd.f32 %v2103_v2, %v979_v44 }
 0x1af   :  { %1981 = vst [vmem:[%s6201_s3 + $0xd48] sm:$0xff] %v1469_v48  ;;  %v470_v48 = vld [vmem:[%s6200_s2 + $0xe20] sm:$0xff]  ;;  %v982_v53 = vmul.f32 %v2098_v1, %v469_v45  ;;  %v1493_v58 = vadd.f32 %v2103_v2, %v980_v47 }
 0x1b0   :  { %1982 = vst [vmem:[%s6201_s3 + $0xd50] sm:$0xff] %v1470_v51  ;;  %v471_v51 = vld [vmem:[%s6200_s2 + $0xe28] sm:$0xff]  ;;  %v983_v56 = vmul.f32 %v2098_v1, %v470_v48  ;;  %v1494_v61 = vadd.f32 %v2103_v2, %v981_v50 }
 0x1b1   :  { %1983 = vst [vmem:[%s6201_s3 + $0xd58] sm:$0xff] %v1471_v54  ;;  %v472_v54 = vld [vmem:[%s6200_s2 + $0xe30] sm:$0xff]  ;;  %v984_v59 = vmul.f32 %v2098_v1, %v471_v51  ;;  %v1495_v0 = vadd.f32 %v2103_v2, %v982_v53 }
 0x1b2   :  { %1984 = vst [vmem:[%s6201_s3 + $0xd60] sm:$0xff] %v1472_v57  ;;  %v473_v57 = vld [vmem:[%s6200_s2 + $0xe38] sm:$0xff]  ;;  %v985_v62 = vmul.f32 %v2098_v1, %v472_v54  ;;  %v1496_v5 = vadd.f32 %v2103_v2, %v983_v56 }
 0x1b3   :  { %1985 = vst [vmem:[%s6201_s3 + $0xd68] sm:$0xff] %v1473_v60  ;;  %v474_v60 = vld [vmem:[%s6200_s2 + $0xe40] sm:$0xff]  ;;  %v986_v3 = vmul.f32 %v2098_v1, %v473_v57  ;;  %v1497_v8 = vadd.f32 %v2103_v2, %v984_v59 }
 0x1b4   :  { %1986 = vst [vmem:[%s6201_s3 + $0xd70] sm:$0xff] %v1474_v63  ;;  %v475_v63 = vld [vmem:[%s6200_s2 + $0xe48] sm:$0xff]  ;;  %v987_v6 = vmul.f32 %v2098_v1, %v474_v60  ;;  %v1498_v11 = vadd.f32 %v2103_v2, %v985_v62 }
 0x1b5   :  { %1987 = vst [vmem:[%s6201_s3 + $0xd78] sm:$0xff] %v1475_v4  ;;  %v476_v4 = vld [vmem:[%s6200_s2 + $0xe50] sm:$0xff]  ;;  %v988_v9 = vmul.f32 %v2098_v1, %v475_v63  ;;  %v1499_v14 = vadd.f32 %v2103_v2, %v986_v3 }
 0x1b6   :  { %1988 = vst [vmem:[%s6201_s3 + $0xd80] sm:$0xff] %v1476_v7  ;;  %v477_v7 = vld [vmem:[%s6200_s2 + $0xe58] sm:$0xff]  ;;  %v989_v12 = vmul.f32 %v2098_v1, %v476_v4  ;;  %v1500_v17 = vadd.f32 %v2103_v2, %v987_v6 }
 0x1b7   :  { %1989 = vst [vmem:[%s6201_s3 + $0xd88] sm:$0xff] %v1477_v10  ;;  %v478_v10 = vld [vmem:[%s6200_s2 + $0xe60] sm:$0xff]  ;;  %v990_v15 = vmul.f32 %v2098_v1, %v477_v7  ;;  %v1501_v20 = vadd.f32 %v2103_v2, %v988_v9 }
 0x1b8   :  { %1990 = vst [vmem:[%s6201_s3 + $0xd90] sm:$0xff] %v1478_v13  ;;  %v479_v13 = vld [vmem:[%s6200_s2 + $0xe68] sm:$0xff]  ;;  %v991_v18 = vmul.f32 %v2098_v1, %v478_v10  ;;  %v1502_v23 = vadd.f32 %v2103_v2, %v989_v12 }
 0x1b9   :  { %1991 = vst [vmem:[%s6201_s3 + $0xd98] sm:$0xff] %v1479_v16  ;;  %v480_v16 = vld [vmem:[%s6200_s2 + $0xe70] sm:$0xff]  ;;  %v992_v21 = vmul.f32 %v2098_v1, %v479_v13  ;;  %v1503_v26 = vadd.f32 %v2103_v2, %v990_v15 }
 0x1ba   :  { %1992 = vst [vmem:[%s6201_s3 + $0xda0] sm:$0xff] %v1480_v19  ;;  %v481_v19 = vld [vmem:[%s6200_s2 + $0xe78] sm:$0xff]  ;;  %v993_v24 = vmul.f32 %v2098_v1, %v480_v16  ;;  %v1504_v29 = vadd.f32 %v2103_v2, %v991_v18 }
 0x1bb   :  { %1993 = vst [vmem:[%s6201_s3 + $0xda8] sm:$0xff] %v1481_v22  ;;  %v482_v22 = vld [vmem:[%s6200_s2 + $0xe80] sm:$0xff]  ;;  %v994_v27 = vmul.f32 %v2098_v1, %v481_v19  ;;  %v1505_v32 = vadd.f32 %v2103_v2, %v992_v21 }
 0x1bc   :  { %1994 = vst [vmem:[%s6201_s3 + $0xdb0] sm:$0xff] %v1482_v25  ;;  %v483_v25 = vld [vmem:[%s6200_s2 + $0xe88] sm:$0xff]  ;;  %v995_v30 = vmul.f32 %v2098_v1, %v482_v22  ;;  %v1506_v35 = vadd.f32 %v2103_v2, %v993_v24 }
 0x1bd   :  { %1995 = vst [vmem:[%s6201_s3 + $0xdb8] sm:$0xff] %v1483_v28  ;;  %v484_v28 = vld [vmem:[%s6200_s2 + $0xe90] sm:$0xff]  ;;  %v996_v33 = vmul.f32 %v2098_v1, %v483_v25  ;;  %v1507_v38 = vadd.f32 %v2103_v2, %v994_v27 }
 0x1be   :  { %1996 = vst [vmem:[%s6201_s3 + $0xdc0] sm:$0xff] %v1484_v31  ;;  %v485_v31 = vld [vmem:[%s6200_s2 + $0xe98] sm:$0xff]  ;;  %v997_v36 = vmul.f32 %v2098_v1, %v484_v28  ;;  %v1508_v41 = vadd.f32 %v2103_v2, %v995_v30 }
 0x1bf   :  { %1997 = vst [vmem:[%s6201_s3 + $0xdc8] sm:$0xff] %v1485_v34  ;;  %v486_v34 = vld [vmem:[%s6200_s2 + $0xea0] sm:$0xff]  ;;  %v998_v39 = vmul.f32 %v2098_v1, %v485_v31  ;;  %v1509_v44 = vadd.f32 %v2103_v2, %v996_v33 }
 0x1c0   :  { %1998 = vst [vmem:[%s6201_s3 + $0xdd0] sm:$0xff] %v1486_v37  ;;  %v487_v37 = vld [vmem:[%s6200_s2 + $0xea8] sm:$0xff]  ;;  %v999_v42 = vmul.f32 %v2098_v1, %v486_v34  ;;  %v1510_v47 = vadd.f32 %v2103_v2, %v997_v36 }
 0x1c1   :  { %1999 = vst [vmem:[%s6201_s3 + $0xdd8] sm:$0xff] %v1487_v40  ;;  %v488_v40 = vld [vmem:[%s6200_s2 + $0xeb0] sm:$0xff]  ;;  %v1000_v45 = vmul.f32 %v2098_v1, %v487_v37  ;;  %v1511_v50 = vadd.f32 %v2103_v2, %v998_v39 }
 0x1c2   :  { %2000 = vst [vmem:[%s6201_s3 + $0xde0] sm:$0xff] %v1488_v43  ;;  %v489_v43 = vld [vmem:[%s6200_s2 + $0xeb8] sm:$0xff]  ;;  %v1001_v48 = vmul.f32 %v2098_v1, %v488_v40  ;;  %v1512_v53 = vadd.f32 %v2103_v2, %v999_v42 }
 0x1c3   :  { %2001 = vst [vmem:[%s6201_s3 + $0xde8] sm:$0xff] %v1489_v46  ;;  %v490_v46 = vld [vmem:[%s6200_s2 + $0xec0] sm:$0xff]  ;;  %v1002_v51 = vmul.f32 %v2098_v1, %v489_v43  ;;  %v1513_v56 = vadd.f32 %v2103_v2, %v1000_v45 }
 0x1c4   :  { %2002 = vst [vmem:[%s6201_s3 + $0xdf0] sm:$0xff] %v1490_v49  ;;  %v491_v49 = vld [vmem:[%s6200_s2 + $0xec8] sm:$0xff]  ;;  %v1003_v54 = vmul.f32 %v2098_v1, %v490_v46  ;;  %v1514_v59 = vadd.f32 %v2103_v2, %v1001_v48 }
 0x1c5   :  { %2003 = vst [vmem:[%s6201_s3 + $0xdf8] sm:$0xff] %v1491_v52  ;;  %v492_v52 = vld [vmem:[%s6200_s2 + $0xed0] sm:$0xff]  ;;  %v1004_v57 = vmul.f32 %v2098_v1, %v491_v49  ;;  %v1515_v62 = vadd.f32 %v2103_v2, %v1002_v51 }
 0x1c6   :  { %2004 = vst [vmem:[%s6201_s3 + $0xe00] sm:$0xff] %v1492_v55  ;;  %v493_v55 = vld [vmem:[%s6200_s2 + $0xed8] sm:$0xff]  ;;  %v1005_v60 = vmul.f32 %v2098_v1, %v492_v52  ;;  %v1516_v3 = vadd.f32 %v2103_v2, %v1003_v54 }
 0x1c7   :  { %2005 = vst [vmem:[%s6201_s3 + $0xe08] sm:$0xff] %v1493_v58  ;;  %v494_v58 = vld [vmem:[%s6200_s2 + $0xee0] sm:$0xff]  ;;  %v1006_v63 = vmul.f32 %v2098_v1, %v493_v55  ;;  %v1517_v6 = vadd.f32 %v2103_v2, %v1004_v57 }
 0x1c8   :  { %2006 = vst [vmem:[%s6201_s3 + $0xe10] sm:$0xff] %v1494_v61  ;;  %v495_v61 = vld [vmem:[%s6200_s2 + $0xee8] sm:$0xff]  ;;  %v1007_v4 = vmul.f32 %v2098_v1, %v494_v58  ;;  %v1518_v9 = vadd.f32 %v2103_v2, %v1005_v60 }
 0x1c9   :  { %2007 = vst [vmem:[%s6201_s3 + $0xe18] sm:$0xff] %v1495_v0  ;;  %v496_v0 = vld [vmem:[%s6200_s2 + $0xef0] sm:$0xff]  ;;  %v1008_v7 = vmul.f32 %v2098_v1, %v495_v61  ;;  %v1519_v12 = vadd.f32 %v2103_v2, %v1006_v63 }
 0x1ca   :  { %2008 = vst [vmem:[%s6201_s3 + $0xe20] sm:$0xff] %v1496_v5  ;;  %v497_v5 = vld [vmem:[%s6200_s2 + $0xef8] sm:$0xff]  ;;  %v1009_v10 = vmul.f32 %v2098_v1, %v496_v0  ;;  %v1520_v15 = vadd.f32 %v2103_v2, %v1007_v4 }
 0x1cb   :  { %2009 = vst [vmem:[%s6201_s3 + $0xe28] sm:$0xff] %v1497_v8  ;;  %v498_v8 = vld [vmem:[%s6200_s2 + $0xf00] sm:$0xff]  ;;  %v1010_v13 = vmul.f32 %v2098_v1, %v497_v5  ;;  %v1521_v18 = vadd.f32 %v2103_v2, %v1008_v7 }
 0x1cc   :  { %2010 = vst [vmem:[%s6201_s3 + $0xe30] sm:$0xff] %v1498_v11  ;;  %v499_v11 = vld [vmem:[%s6200_s2 + $0xf08] sm:$0xff]  ;;  %v1011_v16 = vmul.f32 %v2098_v1, %v498_v8  ;;  %v1522_v21 = vadd.f32 %v2103_v2, %v1009_v10 }
 0x1cd   :  { %2011 = vst [vmem:[%s6201_s3 + $0xe38] sm:$0xff] %v1499_v14  ;;  %v500_v14 = vld [vmem:[%s6200_s2 + $0xf10] sm:$0xff]  ;;  %v1012_v19 = vmul.f32 %v2098_v1, %v499_v11  ;;  %v1523_v24 = vadd.f32 %v2103_v2, %v1010_v13 }
 0x1ce   :  { %2012 = vst [vmem:[%s6201_s3 + $0xe40] sm:$0xff] %v1500_v17  ;;  %v501_v17 = vld [vmem:[%s6200_s2 + $0xf18] sm:$0xff]  ;;  %v1013_v22 = vmul.f32 %v2098_v1, %v500_v14  ;;  %v1524_v27 = vadd.f32 %v2103_v2, %v1011_v16 }
 0x1cf   :  { %2013 = vst [vmem:[%s6201_s3 + $0xe48] sm:$0xff] %v1501_v20  ;;  %v502_v20 = vld [vmem:[%s6200_s2 + $0xf20] sm:$0xff]  ;;  %v1014_v25 = vmul.f32 %v2098_v1, %v501_v17  ;;  %v1525_v30 = vadd.f32 %v2103_v2, %v1012_v19 }
 0x1d0   :  { %2014 = vst [vmem:[%s6201_s3 + $0xe50] sm:$0xff] %v1502_v23  ;;  %v503_v23 = vld [vmem:[%s6200_s2 + $0xf28] sm:$0xff]  ;;  %v1015_v28 = vmul.f32 %v2098_v1, %v502_v20  ;;  %v1526_v33 = vadd.f32 %v2103_v2, %v1013_v22 }
 0x1d1   :  { %2015 = vst [vmem:[%s6201_s3 + $0xe58] sm:$0xff] %v1503_v26  ;;  %v504_v26 = vld [vmem:[%s6200_s2 + $0xf30] sm:$0xff]  ;;  %v1016_v31 = vmul.f32 %v2098_v1, %v503_v23  ;;  %v1527_v36 = vadd.f32 %v2103_v2, %v1014_v25 }
 0x1d2   :  { %2016 = vst [vmem:[%s6201_s3 + $0xe60] sm:$0xff] %v1504_v29  ;;  %v505_v29 = vld [vmem:[%s6200_s2 + $0xf38] sm:$0xff]  ;;  %v1017_v34 = vmul.f32 %v2098_v1, %v504_v26  ;;  %v1528_v39 = vadd.f32 %v2103_v2, %v1015_v28 }
 0x1d3   :  { %2017 = vst [vmem:[%s6201_s3 + $0xe68] sm:$0xff] %v1505_v32  ;;  %v506_v32 = vld [vmem:[%s6200_s2 + $0xf40] sm:$0xff]  ;;  %v1018_v37 = vmul.f32 %v2098_v1, %v505_v29  ;;  %v1529_v42 = vadd.f32 %v2103_v2, %v1016_v31 }
 0x1d4   :  { %2018 = vst [vmem:[%s6201_s3 + $0xe70] sm:$0xff] %v1506_v35  ;;  %v507_v35 = vld [vmem:[%s6200_s2 + $0xf48] sm:$0xff]  ;;  %v1019_v40 = vmul.f32 %v2098_v1, %v506_v32  ;;  %v1530_v45 = vadd.f32 %v2103_v2, %v1017_v34 }
 0x1d5   :  { %2019 = vst [vmem:[%s6201_s3 + $0xe78] sm:$0xff] %v1507_v38  ;;  %v508_v38 = vld [vmem:[%s6200_s2 + $0xf50] sm:$0xff]  ;;  %v1020_v43 = vmul.f32 %v2098_v1, %v507_v35  ;;  %v1531_v48 = vadd.f32 %v2103_v2, %v1018_v37 }
 0x1d6   :  { %2020 = vst [vmem:[%s6201_s3 + $0xe80] sm:$0xff] %v1508_v41  ;;  %v509_v41 = vld [vmem:[%s6200_s2 + $0xf58] sm:$0xff]  ;;  %v1021_v46 = vmul.f32 %v2098_v1, %v508_v38  ;;  %v1532_v51 = vadd.f32 %v2103_v2, %v1019_v40 }
 0x1d7   :  { %2021 = vst [vmem:[%s6201_s3 + $0xe88] sm:$0xff] %v1509_v44  ;;  %v510_v44 = vld [vmem:[%s6200_s2 + $0xf60] sm:$0xff]  ;;  %v1022_v49 = vmul.f32 %v2098_v1, %v509_v41  ;;  %v1533_v54 = vadd.f32 %v2103_v2, %v1020_v43 }
 0x1d8   :  { %2022 = vst [vmem:[%s6201_s3 + $0xe90] sm:$0xff] %v1510_v47  ;;  %v511_v47 = vld [vmem:[%s6200_s2 + $0xf68] sm:$0xff]  ;;  %v1023_v52 = vmul.f32 %v2098_v1, %v510_v44  ;;  %v1534_v57 = vadd.f32 %v2103_v2, %v1021_v46 }
 0x1d9   :  { %2023 = vst [vmem:[%s6201_s3 + $0xe98] sm:$0xff] %v1511_v50  ;;  %v512_v50 = vld [vmem:[%s6200_s2 + $0xf70] sm:$0xff]  ;;  %v1024_v55 = vmul.f32 %v2098_v1, %v511_v47  ;;  %v1535_v60 = vadd.f32 %v2103_v2, %v1022_v49 }
 0x1da   :  { %2024 = vst [vmem:[%s6201_s3 + $0xea0] sm:$0xff] %v1512_v53  ;;  %v513_v53 = vld [vmem:[%s6200_s2 + $0xf78] sm:$0xff]  ;;  %v1025_v58 = vmul.f32 %v2098_v1, %v512_v50  ;;  %v1536_v63 = vadd.f32 %v2103_v2, %v1023_v52 }
 0x1db   :  { %2025 = vst [vmem:[%s6201_s3 + $0xea8] sm:$0xff] %v1513_v56  ;;  %v514_v56 = vld [vmem:[%s6200_s2 + $0xf80] sm:$0xff]  ;;  %v1026_v61 = vmul.f32 %v2098_v1, %v513_v53  ;;  %v1537_v4 = vadd.f32 %v2103_v2, %v1024_v55 }
 0x1dc   :  { %2026 = vst [vmem:[%s6201_s3 + $0xeb0] sm:$0xff] %v1514_v59  ;;  %v515_v59 = vld [vmem:[%s6200_s2 + $0xf88] sm:$0xff]  ;;  %v1027_v0 = vmul.f32 %v2098_v1, %v514_v56  ;;  %v1538_v7 = vadd.f32 %v2103_v2, %v1025_v58 }
 0x1dd   :  { %2027 = vst [vmem:[%s6201_s3 + $0xeb8] sm:$0xff] %v1515_v62  ;;  %v516_v62 = vld [vmem:[%s6200_s2 + $0xf90] sm:$0xff]  ;;  %v1028_v5 = vmul.f32 %v2098_v1, %v515_v59  ;;  %v1539_v10 = vadd.f32 %v2103_v2, %v1026_v61 }
 0x1de   :  { %2028 = vst [vmem:[%s6201_s3 + $0xec0] sm:$0xff] %v1516_v3  ;;  %v517_v3 = vld [vmem:[%s6200_s2 + $0xf98] sm:$0xff]  ;;  %v1029_v8 = vmul.f32 %v2098_v1, %v516_v62  ;;  %v1540_v13 = vadd.f32 %v2103_v2, %v1027_v0 }
 0x1df   :  { %2029 = vst [vmem:[%s6201_s3 + $0xec8] sm:$0xff] %v1517_v6  ;;  %v518_v6 = vld [vmem:[%s6200_s2 + $0xfa0] sm:$0xff]  ;;  %v1030_v11 = vmul.f32 %v2098_v1, %v517_v3  ;;  %v1541_v16 = vadd.f32 %v2103_v2, %v1028_v5 }
 0x1e0   :  { %2030 = vst [vmem:[%s6201_s3 + $0xed0] sm:$0xff] %v1518_v9  ;;  %v519_v9 = vld [vmem:[%s6200_s2 + $0xfa8] sm:$0xff]  ;;  %v1031_v14 = vmul.f32 %v2098_v1, %v518_v6  ;;  %v1542_v19 = vadd.f32 %v2103_v2, %v1029_v8 }
 0x1e1   :  { %2031 = vst [vmem:[%s6201_s3 + $0xed8] sm:$0xff] %v1519_v12  ;;  %v520_v12 = vld [vmem:[%s6200_s2 + $0xfb0] sm:$0xff]  ;;  %v1032_v17 = vmul.f32 %v2098_v1, %v519_v9  ;;  %v1543_v22 = vadd.f32 %v2103_v2, %v1030_v11 }
 0x1e2   :  { %2032 = vst [vmem:[%s6201_s3 + $0xee0] sm:$0xff] %v1520_v15  ;;  %v521_v15 = vld [vmem:[%s6200_s2 + $0xfb8] sm:$0xff]  ;;  %v1033_v20 = vmul.f32 %v2098_v1, %v520_v12  ;;  %v1544_v25 = vadd.f32 %v2103_v2, %v1031_v14 }
 0x1e3   :  { %2033 = vst [vmem:[%s6201_s3 + $0xee8] sm:$0xff] %v1521_v18  ;;  %v522_v18 = vld [vmem:[%s6200_s2 + $0xfc0] sm:$0xff]  ;;  %v1034_v23 = vmul.f32 %v2098_v1, %v521_v15  ;;  %v1545_v28 = vadd.f32 %v2103_v2, %v1032_v17 }
 0x1e4   :  { %2034 = vst [vmem:[%s6201_s3 + $0xef0] sm:$0xff] %v1522_v21  ;;  %v523_v21 = vld [vmem:[%s6200_s2 + $0xfc8] sm:$0xff]  ;;  %v1035_v26 = vmul.f32 %v2098_v1, %v522_v18  ;;  %v1546_v31 = vadd.f32 %v2103_v2, %v1033_v20 }
 0x1e5   :  { %2035 = vst [vmem:[%s6201_s3 + $0xef8] sm:$0xff] %v1523_v24  ;;  %v524_v24 = vld [vmem:[%s6200_s2 + $0xfd0] sm:$0xff]  ;;  %v1036_v29 = vmul.f32 %v2098_v1, %v523_v21  ;;  %v1547_v34 = vadd.f32 %v2103_v2, %v1034_v23 }
 0x1e6   :  { %2036 = vst [vmem:[%s6201_s3 + $0xf00] sm:$0xff] %v1524_v27  ;;  %v525_v27 = vld [vmem:[%s6200_s2 + $0xfd8] sm:$0xff]  ;;  %v1037_v32 = vmul.f32 %v2098_v1, %v524_v24  ;;  %v1548_v37 = vadd.f32 %v2103_v2, %v1035_v26 }
 0x1e7   :  { %2037 = vst [vmem:[%s6201_s3 + $0xf08] sm:$0xff] %v1525_v30  ;;  %v526_v30 = vld [vmem:[%s6200_s2 + $0xfe0] sm:$0xff]  ;;  %v1038_v35 = vmul.f32 %v2098_v1, %v525_v27  ;;  %v1549_v40 = vadd.f32 %v2103_v2, %v1036_v29 }
 0x1e8   :  { %2038 = vst [vmem:[%s6201_s3 + $0xf10] sm:$0xff] %v1526_v33  ;;  %v527_v33 = vld [vmem:[%s6200_s2 + $0xfe8] sm:$0xff]  ;;  %v1039_v38 = vmul.f32 %v2098_v1, %v526_v30 }
 0x1e9   :  { %2039 = vst [vmem:[%s6201_s3 + $0xf18] sm:$0xff] %v1527_v36  ;;  %v528_v36 = vld [vmem:[%s6200_s2 + $0xff0] sm:$0xff]  ;;  %v1040_v41 = vmul.f32 %v2098_v1, %v527_v33  ;;  %v1551_v44 = vadd.f32 %v2103_v2, %v1038_v35 }
 0x1ea   :  { %2040 = vst [vmem:[%s6201_s3 + $0xf20] sm:$0xff] %v1528_v39  ;;  %v529_v39 = vld [vmem:[%s6200_s2 + $0xff8] sm:$0xff]  ;;  %v1041_v43 = vmul.f32 %v2098_v1, %v528_v36  ;;  %v1552_v46 = vadd.f32 %v2103_v2, %v1039_v38 }
 0x1eb   :  { %2041 = vst [vmem:[%s6201_s3 + $0xf28] sm:$0xff] %v1529_v42  ;;  %v1550_v42 = vadd.f32 %v2103_v2, %v1037_v32  ;;  %v1553_v47 = vadd.f32 %v2103_v2, %v1040_v41 }
 0x1ec   :  { %2042 = vst [vmem:[%s6201_s3 + $0xf30] sm:$0xff] %v1530_v45  ;;  %v1042_v45 = vmul.f32 %v2098_v1, %v529_v39 }
 0x1ed   :  { %2043 = vst [vmem:[%s6201_s3 + $0xf38] sm:$0xff] %v1531_v48  ;;  %v1554_v48 = vadd.f32 %v2103_v2, %v1041_v43 }
 0x1ee   :  { %2044 = vst [vmem:[%s6201_s3 + $0xf40] sm:$0xff] %v1532_v51  ;;  %v1555_v1 = vadd.f32 %v2103_v2, %v1042_v45 }
 0x1ef   :  { %2045 = vst [vmem:[%s6201_s3 + $0xf48] sm:$0xff] %v1533_v54 }
 0x1f0   :  { %2046 = vst [vmem:[%s6201_s3 + $0xf50] sm:$0xff] %v1534_v57 }
 0x1f1   :  { %2047 = vst [vmem:[%s6201_s3 + $0xf58] sm:$0xff] %v1535_v60 }
 0x1f2   :  { %2048 = vst [vmem:[%s6201_s3 + $0xf60] sm:$0xff] %v1536_v63 }
 0x1f3   :  { %2049 = vst [vmem:[%s6201_s3 + $0xf68] sm:$0xff] %v1537_v4 }
 0x1f4   :  { %2050 = vst [vmem:[%s6201_s3 + $0xf70] sm:$0xff] %v1538_v7 }
 0x1f5   :  { %2051 = vst [vmem:[%s6201_s3 + $0xf78] sm:$0xff] %v1539_v10 }
 0x1f6   :  { %2052 = vst [vmem:[%s6201_s3 + $0xf80] sm:$0xff] %v1540_v13 }
 0x1f7   :  { %2053 = vst [vmem:[%s6201_s3 + $0xf88] sm:$0xff] %v1541_v16 }
 0x1f8   :  { %2054 = vst [vmem:[%s6201_s3 + $0xf90] sm:$0xff] %v1542_v19 }
 0x1f9   :  { %2055 = vst [vmem:[%s6201_s3 + $0xf98] sm:$0xff] %v1543_v22 }
 0x1fa   :  { %2056 = vst [vmem:[%s6201_s3 + $0xfa0] sm:$0xff] %v1544_v25 }
 0x1fb   :  { %2057 = vst [vmem:[%s6201_s3 + $0xfa8] sm:$0xff] %v1545_v28 }
 0x1fc   :  { %2058 = vst [vmem:[%s6201_s3 + $0xfb0] sm:$0xff] %v1546_v31 }
 0x1fd   :  { %2059 = vst [vmem:[%s6201_s3 + $0xfb8] sm:$0xff] %v1547_v34 }
 0x1fe   :  { %2060 = vst [vmem:[%s6201_s3 + $0xfc0] sm:$0xff] %v1548_v37 }
 0x1ff   :  { %2061 = vst [vmem:[%s6201_s3 + $0xfc8] sm:$0xff] %v1549_v40 }
 0x200   :  { %2062 = vst [vmem:[%s6201_s3 + $0xfd0] sm:$0xff] %v1550_v42 }
 0x201   :  { %2063 = vst [vmem:[%s6201_s3 + $0xfd8] sm:$0xff] %v1551_v44 }
 0x202   :  { %2064 = vst [vmem:[%s6201_s3 + $0xfe0] sm:$0xff] %v1552_v46 }
 0x203   :  { %2065 = vst [vmem:[%s6201_s3 + $0xfe8] sm:$0xff] %v1553_v47 }
 0x204   :  { %2066 = vst [vmem:[%s6201_s3 + $0xff0] sm:$0xff] %v1554_v48 }
 0x205   :  { %2067 = vst [vmem:[%s6201_s3 + $0xff8] sm:$0xff] %v1555_v1 }

</bundles_post_ra>
